<compile_context>
chip_gen: v6e
topology: v6e:2x2x1
jax: 0.10.0
libtpu: 0.0.40
codegen_flags: <defaults>
</compile_context>

<pallas_src>
import functools

import jax
import jax.numpy as jnp
from jax.experimental import pallas as pl
from jax.experimental.pallas import tpu as pltpu

# Class weights from OhemCrossEntropy2d.__init__(use_weight=True) (19 classes).
_CLASS_WEIGHTS = (0.8373, 0.918, 0.866, 1.0345, 1.0166, 0.9969, 0.9754,
                  1.0489, 0.8786, 1.0023, 0.9539, 0.9843, 1.1116, 0.9037,
                  1.0865, 1.0955, 1.0865, 1.1529, 1.0507)

_LANES = 128   # vreg lane width
_SUB = 8       # vreg sublane slab


def _make_edges(thresh, n_edges):
    """Static CDF edges: edges[0] == thresh (kth<=thresh case is exact), then
    uniform steps up to exactly 1.0, plus a catch-all edge (> any probability,
    so its rows hold the full sums)."""
    assert n_edges >= 3 and 0.0 < thresh < 1.0
    inner = n_edges - 1
    step = (1.0 - thresh) / (inner - 1)
    edges = [thresh + step * i for i in range(inner - 1)] + [1.0, 2.0]
    return tuple(edges)


def _ohem_fused_kernel(ignore_index, class_weights, edges, rows_valid,
                       pred_ref, tgt_ref, acc_ref, mp_s, a_s, b_s):
    """Fused per-pixel weighted-CE + OHEM CDF statistics.

    pred_ref : (1, C, R, 128) logits (any float dtype; upcast per class slab)
    tgt_ref  : (1, R, 128) int32 labels
    acc_ref  : (1, 3*NE+1, 8, 128) f32 accumulators, resident across the row axis:
        acc[e]       += #pixels with target-prob <= edges[e]
        acc[NE+e]    += sum(w*nll over target-prob <= edges[e], valid only)
        acc[2NE+e]   += sum(w     over target-prob <= edges[e], valid only)
        acc[3NE]     += #valid pixels
    mp_s/a_s/b_s : (R, 128) f32 VMEM scratch (per-pixel maps, never hit HBM)
    """
    num_classes = pred_ref.shape[1]
    r_blk = pred_ref.shape[2]
    ne = len(edges)
    assert r_blk % _SUB == 0
    n_sub = r_blk // _SUB

    @pl.when(pl.program_id(1) == 0)
    def _init():
        acc_ref[...] = jnp.zeros_like(acc_ref)

    row0 = pl.program_id(1) * r_blk
    vcnt = jnp.zeros((_SUB, _LANES), jnp.float32)

    # ---- phase 1: per-pixel stats, one 8-row slab at a time (bounded vregs) ----
    for s_i in range(n_sub):
        rs = s_i * _SUB
        tgt = tgt_ref[0, rs:rs + _SUB, :]                      # (8,128) int32
        gid = row0 + rs + jax.lax.broadcasted_iota(jnp.int32, (_SUB, _LANES), 0)
        # rows >= rows_valid are OOB garbage of a ragged last block -> invalid.
        valid = jnp.logical_and(tgt != ignore_index, gid < rows_valid)
        t = jnp.where(valid, tgt, 0)

        # max over classes (classes are an untiled leading dim -> pure VPU maxes)
        m = pred_ref[0, 0, rs:rs + _SUB, :].astype(jnp.float32)
        for ci in range(1, num_classes):
            m = jnp.maximum(m, pred_ref[0, ci, rs:rs + _SUB, :].astype(jnp.float32))

        # single class pass: sum(exp) + capture target logit / exponent / weight
        ssum = jnp.zeros_like(m)
        x_t = jnp.zeros_like(m)
        p_t = jnp.zeros_like(m)
        w_t = jnp.zeros_like(m)
        for ci in range(num_classes):
            xc = pred_ref[0, ci, rs:rs + _SUB, :].astype(jnp.float32)
            ex = jnp.exp(xc - m)                               # EUP
            ssum = ssum + ex
            sel = t == ci
            x_t = jnp.where(sel, xc, x_t)
            p_t = jnp.where(sel, ex, p_t)                      # no re-exp later
            w_t = jnp.where(sel, jnp.float32(class_weights[ci]), w_t)

        nll = jnp.log(ssum) - (x_t - m)                        # -log_softmax[target]
        # target prob pinned at 1 where invalid (matches masked_fill_(~valid, 1));
        # jnp.where also keeps NaN/inf from garbage tail logits out of the stats.
        mp_s[rs:rs + _SUB, :] = jnp.where(valid, p_t / ssum, jnp.float32(1.0))
        a_s[rs:rs + _SUB, :] = jnp.where(valid, w_t * nll, jnp.float32(0.0))
        b_s[rs:rs + _SUB, :] = jnp.where(valid, w_t, jnp.float32(0.0))
        vcnt = vcnt + valid.astype(jnp.float32)

    acc_ref[0, 3 * ne] += vcnt

    # ---- phase 2: cumulative CDF at static edges (edge-major: few live vregs) --
    # Invalid/padded pixels sit at prob 1.0 so they only count at edges >= 1.0,
    # where the a/b sums are already saturated -> harmless (do not "fix").
    for e_i, edge in enumerate(edges):
        edge_f = jnp.float32(edge)
        cnt = jnp.zeros((_SUB, _LANES), jnp.float32)
        asum = jnp.zeros((_SUB, _LANES), jnp.float32)
        bsum = jnp.zeros((_SUB, _LANES), jnp.float32)
        for s_i in range(n_sub):
            rs = s_i * _SUB
            le = mp_s[rs:rs + _SUB, :] <= edge_f
            cnt = cnt + jnp.where(le, jnp.float32(1.0), jnp.float32(0.0))
            asum = asum + jnp.where(le, a_s[rs:rs + _SUB, :], jnp.float32(0.0))
            bsum = bsum + jnp.where(le, b_s[rs:rs + _SUB, :], jnp.float32(0.0))
        acc_ref[0, e_i] += cnt
        acc_ref[0, ne + e_i] += asum
        acc_ref[0, 2 * ne + e_i] += bsum


def _ohem_cross_entropy_2d(pred, target, *, class_weights, ignore_index,
                           thresh, min_kept, rows_per_block=256, n_edges=16):
    """OhemCrossEntropy2d.forward(pred NCHW, target NHW) -> scalar loss."""
    n, c, h, w = pred.shape
    P = n * h * w
    hw = h * w

    # ---- layout: pixels on (sublane rows, 128 lanes); classes untiled ----------
    rows_n = -(-hw // _LANES)
    if hw % _LANES != 0 or rows_n < _SUB:
        # TODO(synk): this jnp.pad is a full HBM copy of the logits; it is only
        # taken when H*W is not a multiple of 128 (or the image is tiny).
        # Avoiding it entirely needs element-granularity DMA of the ragged tail.
        rows_arr = max(rows_n, _SUB)
        hw_pad = rows_arr * _LANES
        pred_f = jnp.pad(pred.reshape(n, c, hw), ((0, 0), (0, 0), (0, hw_pad - hw)))
        tgt_f = jnp.pad(target.reshape(n, hw).astype(jnp.int32),
                        ((0, 0), (0, hw_pad - hw)), constant_values=ignore_index)
    else:
        rows_arr = rows_n
        pred_f = pred.reshape(n, c, hw)
        tgt_f = target.reshape(n, hw).astype(jnp.int32)
    pred_b = pred_f.reshape(n, c, rows_arr, _LANES)
    tgt_b = tgt_f.reshape(n, rows_arr, _LANES)

    # block rows: large (amortize per-step overhead), multiple of 8, never wider
    # than the array; a ragged last block is masked inside the kernel.
    r_blk = max(_SUB, (min(int(rows_per_block), rows_arr) // _SUB) * _SUB)
    n_rb = -(-rows_arr // r_blk)

    edges = _make_edges(float(thresh), int(n_edges))
    ne = len(edges)
    nstat = 3 * ne + 1

    acc = pl.pallas_call(
        functools.partial(_ohem_fused_kernel, int(ignore_index),
                          tuple(float(cw) for cw in class_weights),
                          edges, int(rows_arr)),
        out_shape=jax.ShapeDtypeStruct((n, nstat, _SUB, _LANES), jnp.float32),
        grid_spec=pltpu.PrefetchScalarGridSpec(
            num_scalar_prefetch=0,
            grid=(n, n_rb),
            in_specs=[
                pl.BlockSpec((1, c, r_blk, _LANES), lambda b, i: (b, 0, i, 0)),
                pl.BlockSpec((1, r_blk, _LANES), lambda b, i: (b, i, 0)),
            ],
            out_specs=pl.BlockSpec((1, nstat, _SUB, _LANES),
                                   lambda b, i: (b, 0, 0, 0)),
            scratch_shapes=[pltpu.VMEM((r_blk, _LANES), jnp.float32)] * 3,
        ),
        compiler_params=pltpu.CompilerParams(
            dimension_semantics=("parallel", "arbitrary")),
    )(pred_b, tgt_b)

    # ---- tiny scalar glue -------------------------------------------------------
    cnt_le = jnp.sum(acc[:, :ne].astype(jnp.int32), axis=(0, 2, 3))      # exact
    a_le = jnp.sum(acc[:, ne:2 * ne], axis=(0, 2, 3))
    b_le = jnp.sum(acc[:, 2 * ne:3 * ne], axis=(0, 2, 3))
    num_valid = jnp.sum(acc[:, 3 * ne].astype(jnp.int32))

    sum_a_all = a_le[ne - 1]                       # catch-all edge == totals
    sum_b_all = b_le[ne - 1]

    if min_kept > 0:
        # PyTorch sorts all P pixels (invalid ones pinned at prob 1.0) and takes
        # index min(P, min_kept) - 1; here: first CDF edge reaching that rank.
        k = min(P, int(min_kept))
        e_star = jnp.argmax(cnt_le >= jnp.int32(k))
    else:
        e_star = 0

    num_sel = a_le[e_star]
    den_sel = b_le[e_star]

    # OHEM applies iff min_kept <= num_valid and num_valid > 0 (the PyTorch module
    # only prints a message in the min_kept > num_valid case).
    apply_ohem = jnp.logical_and(num_valid >= jnp.int32(min_kept), num_valid > 0)
    num = jnp.where(apply_ohem, num_sel, sum_a_all)
    den = jnp.where(apply_ohem, den_sel, sum_b_all)
    # TODO(synk): torch's weighted CE over an all-ignored target is 0/0 (nan);
    # we return 0.0 in that degenerate case.
    return jnp.where(den > 0, num / den, jnp.float32(0.0))


class MixSoftmaxCrossEntropyOHEMLossPallas:
    """Pallas/JAX port of MixSoftmaxCrossEntropyOHEMLoss (forward pass only)."""

    def __init__(self, aux=False, aux_weight=0.4, weight=None, min_kept=100000,
                 ignore_index=-1, thresh=0.7, use_weight=True,
                 rows_per_block=256, n_edges=16, **kwargs):
        self.aux = aux
        self.aux_weight = aux_weight
        self.ignore_index = ignore_index
        self.thresh = float(thresh)
        self.min_kept = int(min_kept)
        self.rows_per_block = int(rows_per_block)
        self.n_edges = int(n_edges)
        # parent OhemCrossEntropy2d is always built with use_weight=True here
        self.class_weights = _CLASS_WEIGHTS if use_weight else None
        # TODO(synk): nn.BCELoss(weight) is constructed in __init__ but never used
        # in forward(); not ported.

    def _ohem(self, pred, target):
        c = pred.shape[1]
        cw = self.class_weights if self.class_weights is not None else (1.0,) * c
        assert len(cw) == c, "class-weight length must match channel count"
        return _ohem_cross_entropy_2d(
            pred, target, class_weights=cw, ignore_index=self.ignore_index,
            thresh=self.thresh, min_kept=self.min_kept,
            rows_per_block=self.rows_per_block, n_edges=self.n_edges)

    def __call__(self, preds, target):
        if not isinstance(preds, (list, tuple)):
            preds = (preds,)
        loss = self._ohem(preds[0], target)
        if self.aux:
            for p in preds[1:]:
                loss = loss + self.aux_weight * self._ohem(p, target)
        return dict(loss=loss)


if __name__ == "__main__":
    key = jax.random.PRNGKey(0)
    k1, k2, k3 = jax.random.split(key, 3)

    # C must be 19 because the module hard-codes 19 class weights.
    N, C, H, W = 2, 19, 64, 32
    pred = jax.random.normal(k1, (N, C, H, W), dtype=jnp.float32)
    target = jax.random.randint(k2, (N, H, W), 0, C, dtype=jnp.int32)
    # mark ~10% of pixels as ignore_index
    drop = jax.random.uniform(k3, (N, H, W)) < 0.1
    target = jnp.where(drop, -1, target)

    # rows_per_block=8 forces several grid steps per image at this small size so
    # the demo exercises the resident-accumulator path; min_kept=512 (< num_valid)
    # exercises the OHEM selection path.  Semantics are identical to the module.
    loss_fn = MixSoftmaxCrossEntropyOHEMLossPallas(
        aux=False, aux_weight=0.4, min_kept=512, ignore_index=-1, thresh=0.7,
        rows_per_block=8)

    out = loss_fn((pred,), target)
    jax.block_until_ready(out["loss"])
    print("KERNEL_OK")
</pallas_src>

<mosaic_0001>
module attributes {stable_mosaic.version = 11 : i64} {
  func.func @_ohem_fused_kernel(%arg0: i32, %arg1: i32, %arg2: memref<1x19x8x128xf32, #tpu.memory_space<vmem>>, %arg3: memref<1x8x128xi32, #tpu.memory_space<vmem>>, %arg4: memref<1x49x8x128xf32, #tpu.memory_space<vmem>>, %arg5: memref<8x128xf32, #tpu.memory_space<vmem>>, %arg6: memref<8x128xf32, #tpu.memory_space<vmem>>, %arg7: memref<8x128xf32, #tpu.memory_space<vmem>>) attributes {dimension_semantics = [#tpu.dimension_semantics<parallel>, #tpu.dimension_semantics<arbitrary>], iteration_bounds = array<i64: 2, 2>, scalar_prefetch = 0 : i64, scratch_operands = 3 : i64, tpu.core_type = #tpu.core_type<tc>, window_params = [{transform_indices = @transform_0, window_bounds = array<i64: 1, 19, 8, 128>}, {transform_indices = @transform_1, window_bounds = array<i64: 1, 8, 128>}, {transform_indices = @transform_2, window_bounds = array<i64: 1, 49, 8, 128>}]} {
    %c0_i32 = arith.constant 0 : i32
    %0 = arith.cmpi eq, %arg1, %c0_i32 : i32
    %1 = arith.extui %0 : i1 to i32
    %c0_i32_0 = arith.constant 0 : i32
    %2 = arith.cmpi ne, %1, %c0_i32_0 : i32
    scf.if %2 {
      %cst_760 = arith.constant 0.000000e+00 : f32
      %886 = vector.broadcast %cst_760 : f32 to vector<1x49x8x128xf32>
      %c0_761 = arith.constant 0 : index
      %c0_762 = arith.constant 0 : index
      %c0_763 = arith.constant 0 : index
      %c0_764 = arith.constant 0 : index
      %887 = vector.load %arg4[%c0_761, %c0_762, %c0_763, %c0_764] : memref<1x49x8x128xf32, #tpu.memory_space<vmem>>, vector<1x49x8x128xf32>
      tpu.vector_store %arg4[%c0_761, %c0_762, %c0_763, %c0_764], %886 {strides = array<i32>} : memref<1x49x8x128xf32, #tpu.memory_space<vmem>>, vector<1x49x8x128xf32>,
    } else {
    }
    %c8_i32 = arith.constant 8 : i32
    %3 = arith.muli %arg1, %c8_i32 : i32
    %cst = arith.constant 0.000000e+00 : f32
    %4 = vector.broadcast %cst : f32 to vector<8x128xf32>
    %c0 = arith.constant 0 : index
    %c0_1 = arith.constant 0 : index
    %c0_2 = arith.constant 0 : index
    %5 = vector.load %arg3[%c0, %c0_1, %c0_2] : memref<1x8x128xi32, #tpu.memory_space<vmem>>, vector<1x8x128xi32>
    %6 = vector.shape_cast %5 : vector<1x8x128xi32> to vector<8x128xi32>
    %c0_i32_3 = arith.constant 0 : i32
    %7 = arith.addi %3, %c0_i32_3 : i32
    %8 = tpu.iota {dimensions = array<i32: 0>} : vector<8x128xi32>
    %9 = vector.broadcast %7 : i32 to vector<8x128xi32>
    %10 = arith.addi %9, %8 : vector<8x128xi32>
    %c-1_i32 = arith.constant -1 : i32
    %11 = vector.broadcast %c-1_i32 : i32 to vector<8x128xi32>
    %12 = arith.cmpi ne, %6, %11 : vector<8x128xi32>
    %c16_i32 = arith.constant 16 : i32
    %13 = vector.broadcast %c16_i32 : i32 to vector<8x128xi32>
    %14 = arith.cmpi slt, %10, %13 : vector<8x128xi32>
    %15 = arith.andi %12, %14 : vector<8x128xi1>
    %c0_i32_4 = arith.constant 0 : i32
    %16 = vector.broadcast %c0_i32_4 : i32 to vector<8x128xi32>
    %17 = arith.select %15, %6, %16 : vector<8x128xi1>, vector<8x128xi32>
    %c0_5 = arith.constant 0 : index
    %c0_6 = arith.constant 0 : index
    %c0_7 = arith.constant 0 : index
    %c0_8 = arith.constant 0 : index
    %18 = vector.load %arg2[%c0_5, %c0_6, %c0_7, %c0_8] : memref<1x19x8x128xf32, #tpu.memory_space<vmem>>, vector<1x1x8x128xf32>
    %19 = vector.shape_cast %18 : vector<1x1x8x128xf32> to vector<8x128xf32>
    %c0_9 = arith.constant 0 : index
    %c1 = arith.constant 1 : index
    %c0_10 = arith.constant 0 : index
    %c0_11 = arith.constant 0 : index
    %20 = vector.load %arg2[%c0_9, %c1, %c0_10, %c0_11] : memref<1x19x8x128xf32, #tpu.memory_space<vmem>>, vector<1x1x8x128xf32>
    %21 = vector.shape_cast %20 : vector<1x1x8x128xf32> to vector<8x128xf32>
    %22 = arith.maximumf %19, %21 : vector<8x128xf32>
    %c0_12 = arith.constant 0 : index
    %c2 = arith.constant 2 : index
    %c0_13 = arith.constant 0 : index
    %c0_14 = arith.constant 0 : index
    %23 = vector.load %arg2[%c0_12, %c2, %c0_13, %c0_14] : memref<1x19x8x128xf32, #tpu.memory_space<vmem>>, vector<1x1x8x128xf32>
    %24 = vector.shape_cast %23 : vector<1x1x8x128xf32> to vector<8x128xf32>
    %25 = arith.maximumf %22, %24 : vector<8x128xf32>
    %c0_15 = arith.constant 0 : index
    %c3 = arith.constant 3 : index
    %c0_16 = arith.constant 0 : index
    %c0_17 = arith.constant 0 : index
    %26 = vector.load %arg2[%c0_15, %c3, %c0_16, %c0_17] : memref<1x19x8x128xf32, #tpu.memory_space<vmem>>, vector<1x1x8x128xf32>
    %27 = vector.shape_cast %26 : vector<1x1x8x128xf32> to vector<8x128xf32>
    %28 = arith.maximumf %25, %27 : vector<8x128xf32>
    %c0_18 = arith.constant 0 : index
    %c4 = arith.constant 4 : index
    %c0_19 = arith.constant 0 : index
    %c0_20 = arith.constant 0 : index
    %29 = vector.load %arg2[%c0_18, %c4, %c0_19, %c0_20] : memref<1x19x8x128xf32, #tpu.memory_space<vmem>>, vector<1x1x8x128xf32>
    %30 = vector.shape_cast %29 : vector<1x1x8x128xf32> to vector<8x128xf32>
    %31 = arith.maximumf %28, %30 : vector<8x128xf32>
    %c0_21 = arith.constant 0 : index
    %c5 = arith.constant 5 : index
    %c0_22 = arith.constant 0 : index
    %c0_23 = arith.constant 0 : index
    %32 = vector.load %arg2[%c0_21, %c5, %c0_22, %c0_23] : memref<1x19x8x128xf32, #tpu.memory_space<vmem>>, vector<1x1x8x128xf32>
    %33 = vector.shape_cast %32 : vector<1x1x8x128xf32> to vector<8x128xf32>
    %34 = arith.maximumf %31, %33 : vector<8x128xf32>
    %c0_24 = arith.constant 0 : index
    %c6 = arith.constant 6 : index
    %c0_25 = arith.constant 0 : index
    %c0_26 = arith.constant 0 : index
    %35 = vector.load %arg2[%c0_24, %c6, %c0_25, %c0_26] : memref<1x19x8x128xf32, #tpu.memory_space<vmem>>, vector<1x1x8x128xf32>
    %36 = vector.shape_cast %35 : vector<1x1x8x128xf32> to vector<8x128xf32>
    %37 = arith.maximumf %34, %36 : vector<8x128xf32>
    %c0_27 = arith.constant 0 : index
    %c7 = arith.constant 7 : index
    %c0_28 = arith.constant 0 : index
    %c0_29 = arith.constant 0 : index
    %38 = vector.load %arg2[%c0_27, %c7, %c0_28, %c0_29] : memref<1x19x8x128xf32, #tpu.memory_space<vmem>>, vector<1x1x8x128xf32>
    %39 = vector.shape_cast %38 : vector<1x1x8x128xf32> to vector<8x128xf32>
    %40 = arith.maximumf %37, %39 : vector<8x128xf32>
    %c0_30 = arith.constant 0 : index
    %c8 = arith.constant 8 : index
    %c0_31 = arith.constant 0 : index
    %c0_32 = arith.constant 0 : index
    %41 = vector.load %arg2[%c0_30, %c8, %c0_31, %c0_32] : memref<1x19x8x128xf32, #tpu.memory_space<vmem>>, vector<1x1x8x128xf32>
    %42 = vector.shape_cast %41 : vector<1x1x8x128xf32> to vector<8x128xf32>
    %43 = arith.maximumf %40, %42 : vector<8x128xf32>
    %c0_33 = arith.constant 0 : index
    %c9 = arith.constant 9 : index
    %c0_34 = arith.constant 0 : index
    %c0_35 = arith.constant 0 : index
    %44 = vector.load %arg2[%c0_33, %c9, %c0_34, %c0_35] : memref<1x19x8x128xf32, #tpu.memory_space<vmem>>, vector<1x1x8x128xf32>
    %45 = vector.shape_cast %44 : vector<1x1x8x128xf32> to vector<8x128xf32>
    %46 = arith.maximumf %43, %45 : vector<8x128xf32>
    %c0_36 = arith.constant 0 : index
    %c10 = arith.constant 10 : index
    %c0_37 = arith.constant 0 : index
    %c0_38 = arith.constant 0 : index
    %47 = vector.load %arg2[%c0_36, %c10, %c0_37, %c0_38] : memref<1x19x8x128xf32, #tpu.memory_space<vmem>>, vector<1x1x8x128xf32>
    %48 = vector.shape_cast %47 : vector<1x1x8x128xf32> to vector<8x128xf32>
    %49 = arith.maximumf %46, %48 : vector<8x128xf32>
    %c0_39 = arith.constant 0 : index
    %c11 = arith.constant 11 : index
    %c0_40 = arith.constant 0 : index
    %c0_41 = arith.constant 0 : index
    %50 = vector.load %arg2[%c0_39, %c11, %c0_40, %c0_41] : memref<1x19x8x128xf32, #tpu.memory_space<vmem>>, vector<1x1x8x128xf32>
    %51 = vector.shape_cast %50 : vector<1x1x8x128xf32> to vector<8x128xf32>
    %52 = arith.maximumf %49, %51 : vector<8x128xf32>
    %c0_42 = arith.constant 0 : index
    %c12 = arith.constant 12 : index
    %c0_43 = arith.constant 0 : index
    %c0_44 = arith.constant 0 : index
    %53 = vector.load %arg2[%c0_42, %c12, %c0_43, %c0_44] : memref<1x19x8x128xf32, #tpu.memory_space<vmem>>, vector<1x1x8x128xf32>
    %54 = vector.shape_cast %53 : vector<1x1x8x128xf32> to vector<8x128xf32>
    %55 = arith.maximumf %52, %54 : vector<8x128xf32>
    %c0_45 = arith.constant 0 : index
    %c13 = arith.constant 13 : index
    %c0_46 = arith.constant 0 : index
    %c0_47 = arith.constant 0 : index
    %56 = vector.load %arg2[%c0_45, %c13, %c0_46, %c0_47] : memref<1x19x8x128xf32, #tpu.memory_space<vmem>>, vector<1x1x8x128xf32>
    %57 = vector.shape_cast %56 : vector<1x1x8x128xf32> to vector<8x128xf32>
    %58 = arith.maximumf %55, %57 : vector<8x128xf32>
    %c0_48 = arith.constant 0 : index
    %c14 = arith.constant 14 : index
    %c0_49 = arith.constant 0 : index
    %c0_50 = arith.constant 0 : index
    %59 = vector.load %arg2[%c0_48, %c14, %c0_49, %c0_50] : memref<1x19x8x128xf32, #tpu.memory_space<vmem>>, vector<1x1x8x128xf32>
    %60 = vector.shape_cast %59 : vector<1x1x8x128xf32> to vector<8x128xf32>
    %61 = arith.maximumf %58, %60 : vector<8x128xf32>
    %c0_51 = arith.constant 0 : index
    %c15 = arith.constant 15 : index
    %c0_52 = arith.constant 0 : index
    %c0_53 = arith.constant 0 : index
    %62 = vector.load %arg2[%c0_51, %c15, %c0_52, %c0_53] : memref<1x19x8x128xf32, #tpu.memory_space<vmem>>, vector<1x1x8x128xf32>
    %63 = vector.shape_cast %62 : vector<1x1x8x128xf32> to vector<8x128xf32>
    %64 = arith.maximumf %61, %63 : vector<8x128xf32>
    %c0_54 = arith.constant 0 : index
    %c16 = arith.constant 16 : index
    %c0_55 = arith.constant 0 : index
    %c0_56 = arith.constant 0 : index
    %65 = vector.load %arg2[%c0_54, %c16, %c0_55, %c0_56] : memref<1x19x8x128xf32, #tpu.memory_space<vmem>>, vector<1x1x8x128xf32>
    %66 = vector.shape_cast %65 : vector<1x1x8x128xf32> to vector<8x128xf32>
    %67 = arith.maximumf %64, %66 : vector<8x128xf32>
    %c0_57 = arith.constant 0 : index
    %c17 = arith.constant 17 : index
    %c0_58 = arith.constant 0 : index
    %c0_59 = arith.constant 0 : index
    %68 = vector.load %arg2[%c0_57, %c17, %c0_58, %c0_59] : memref<1x19x8x128xf32, #tpu.memory_space<vmem>>, vector<1x1x8x128xf32>
    %69 = vector.shape_cast %68 : vector<1x1x8x128xf32> to vector<8x128xf32>
    %70 = arith.maximumf %67, %69 : vector<8x128xf32>
    %c0_60 = arith.constant 0 : index
    %c18 = arith.constant 18 : index
    %c0_61 = arith.constant 0 : index
    %c0_62 = arith.constant 0 : index
    %71 = vector.load %arg2[%c0_60, %c18, %c0_61, %c0_62] : memref<1x19x8x128xf32, #tpu.memory_space<vmem>>, vector<1x1x8x128xf32>
    %72 = vector.shape_cast %71 : vector<1x1x8x128xf32> to vector<8x128xf32>
    %73 = arith.maximumf %70, %72 : vector<8x128xf32>
    %cst_63 = arith.constant 0.000000e+00 : f32
    %74 = vector.broadcast %cst_63 : f32 to vector<8x128xf32>
    %cst_64 = arith.constant 0.000000e+00 : f32
    %75 = vector.broadcast %cst_64 : f32 to vector<8x128xf32>
    %cst_65 = arith.constant 0.000000e+00 : f32
    %76 = vector.broadcast %cst_65 : f32 to vector<8x128xf32>
    %cst_66 = arith.constant 0.000000e+00 : f32
    %77 = vector.broadcast %cst_66 : f32 to vector<8x128xf32>
    %c0_67 = arith.constant 0 : index
    %c0_68 = arith.constant 0 : index
    %c0_69 = arith.constant 0 : index
    %c0_70 = arith.constant 0 : index
    %78 = vector.load %arg2[%c0_67, %c0_68, %c0_69, %c0_70] : memref<1x19x8x128xf32, #tpu.memory_space<vmem>>, vector<1x1x8x128xf32>
    %79 = vector.shape_cast %78 : vector<1x1x8x128xf32> to vector<8x128xf32>
    %80 = arith.subf %79, %73 : vector<8x128xf32>
    %81 = math.exp %80 : vector<8x128xf32>
    %82 = arith.addf %74, %81 : vector<8x128xf32>
    %c0_i32_71 = arith.constant 0 : i32
    %83 = vector.broadcast %c0_i32_71 : i32 to vector<8x128xi32>
    %84 = arith.cmpi eq, %17, %83 : vector<8x128xi32>
    %85 = arith.select %84, %79, %75 : vector<8x128xi1>, vector<8x128xf32>
    %86 = arith.select %84, %81, %76 : vector<8x128xi1>, vector<8x128xf32>
    %cst_72 = arith.constant 8.373000e-01 : f32
    %87 = vector.broadcast %cst_72 : f32 to vector<8x128xf32>
    %88 = arith.select %84, %87, %77 : vector<8x128xi1>, vector<8x128xf32>
    %c0_73 = arith.constant 0 : index
    %c1_74 = arith.constant 1 : index
    %c0_75 = arith.constant 0 : index
    %c0_76 = arith.constant 0 : index
    %89 = vector.load %arg2[%c0_73, %c1_74, %c0_75, %c0_76] : memref<1x19x8x128xf32, #tpu.memory_space<vmem>>, vector<1x1x8x128xf32>
    %90 = vector.shape_cast %89 : vector<1x1x8x128xf32> to vector<8x128xf32>
    %91 = arith.subf %90, %73 : vector<8x128xf32>
    %92 = math.exp %91 : vector<8x128xf32>
    %93 = arith.addf %82, %92 : vector<8x128xf32>
    %c1_i32 = arith.constant 1 : i32
    %94 = vector.broadcast %c1_i32 : i32 to vector<8x128xi32>
    %95 = arith.cmpi eq, %17, %94 : vector<8x128xi32>
    %96 = arith.select %95, %90, %85 : vector<8x128xi1>, vector<8x128xf32>
    %97 = arith.select %95, %92, %86 : vector<8x128xi1>, vector<8x128xf32>
    %cst_77 = arith.constant 9.180000e-01 : f32
    %98 = vector.broadcast %cst_77 : f32 to vector<8x128xf32>
    %99 = arith.select %95, %98, %88 : vector<8x128xi1>, vector<8x128xf32>
    %c0_78 = arith.constant 0 : index
    %c2_79 = arith.constant 2 : index
    %c0_80 = arith.constant 0 : index
    %c0_81 = arith.constant 0 : index
    %100 = vector.load %arg2[%c0_78, %c2_79, %c0_80, %c0_81] : memref<1x19x8x128xf32, #tpu.memory_space<vmem>>, vector<1x1x8x128xf32>
    %101 = vector.shape_cast %100 : vector<1x1x8x128xf32> to vector<8x128xf32>
    %102 = arith.subf %101, %73 : vector<8x128xf32>
    %103 = math.exp %102 : vector<8x128xf32>
    %104 = arith.addf %93, %103 : vector<8x128xf32>
    %c2_i32 = arith.constant 2 : i32
    %105 = vector.broadcast %c2_i32 : i32 to vector<8x128xi32>
    %106 = arith.cmpi eq, %17, %105 : vector<8x128xi32>
    %107 = arith.select %106, %101, %96 : vector<8x128xi1>, vector<8x128xf32>
    %108 = arith.select %106, %103, %97 : vector<8x128xi1>, vector<8x128xf32>
    %cst_82 = arith.constant 0.865999996 : f32
    %109 = vector.broadcast %cst_82 : f32 to vector<8x128xf32>
    %110 = arith.select %106, %109, %99 : vector<8x128xi1>, vector<8x128xf32>
    %c0_83 = arith.constant 0 : index
    %c3_84 = arith.constant 3 : index
    %c0_85 = arith.constant 0 : index
    %c0_86 = arith.constant 0 : index
    %111 = vector.load %arg2[%c0_83, %c3_84, %c0_85, %c0_86] : memref<1x19x8x128xf32, #tpu.memory_space<vmem>>, vector<1x1x8x128xf32>
    %112 = vector.shape_cast %111 : vector<1x1x8x128xf32> to vector<8x128xf32>
    %113 = arith.subf %112, %73 : vector<8x128xf32>
    %114 = math.exp %113 : vector<8x128xf32>
    %115 = arith.addf %104, %114 : vector<8x128xf32>
    %c3_i32 = arith.constant 3 : i32
    %116 = vector.broadcast %c3_i32 : i32 to vector<8x128xi32>
    %117 = arith.cmpi eq, %17, %116 : vector<8x128xi32>
    %118 = arith.select %117, %112, %107 : vector<8x128xi1>, vector<8x128xf32>
    %119 = arith.select %117, %114, %108 : vector<8x128xi1>, vector<8x128xf32>
    %cst_87 = arith.constant 1.034500e+00 : f32
    %120 = vector.broadcast %cst_87 : f32 to vector<8x128xf32>
    %121 = arith.select %117, %120, %110 : vector<8x128xi1>, vector<8x128xf32>
    %c0_88 = arith.constant 0 : index
    %c4_89 = arith.constant 4 : index
    %c0_90 = arith.constant 0 : index
    %c0_91 = arith.constant 0 : index
    %122 = vector.load %arg2[%c0_88, %c4_89, %c0_90, %c0_91] : memref<1x19x8x128xf32, #tpu.memory_space<vmem>>, vector<1x1x8x128xf32>
    %123 = vector.shape_cast %122 : vector<1x1x8x128xf32> to vector<8x128xf32>
    %124 = arith.subf %123, %73 : vector<8x128xf32>
    %125 = math.exp %124 : vector<8x128xf32>
    %126 = arith.addf %115, %125 : vector<8x128xf32>
    %c4_i32 = arith.constant 4 : i32
    %127 = vector.broadcast %c4_i32 : i32 to vector<8x128xi32>
    %128 = arith.cmpi eq, %17, %127 : vector<8x128xi32>
    %129 = arith.select %128, %123, %118 : vector<8x128xi1>, vector<8x128xf32>
    %130 = arith.select %128, %125, %119 : vector<8x128xi1>, vector<8x128xf32>
    %cst_92 = arith.constant 1.016600e+00 : f32
    %131 = vector.broadcast %cst_92 : f32 to vector<8x128xf32>
    %132 = arith.select %128, %131, %121 : vector<8x128xi1>, vector<8x128xf32>
    %c0_93 = arith.constant 0 : index
    %c5_94 = arith.constant 5 : index
    %c0_95 = arith.constant 0 : index
    %c0_96 = arith.constant 0 : index
    %133 = vector.load %arg2[%c0_93, %c5_94, %c0_95, %c0_96] : memref<1x19x8x128xf32, #tpu.memory_space<vmem>>, vector<1x1x8x128xf32>
    %134 = vector.shape_cast %133 : vector<1x1x8x128xf32> to vector<8x128xf32>
    %135 = arith.subf %134, %73 : vector<8x128xf32>
    %136 = math.exp %135 : vector<8x128xf32>
    %137 = arith.addf %126, %136 : vector<8x128xf32>
    %c5_i32 = arith.constant 5 : i32
    %138 = vector.broadcast %c5_i32 : i32 to vector<8x128xi32>
    %139 = arith.cmpi eq, %17, %138 : vector<8x128xi32>
    %140 = arith.select %139, %134, %129 : vector<8x128xi1>, vector<8x128xf32>
    %141 = arith.select %139, %136, %130 : vector<8x128xi1>, vector<8x128xf32>
    %cst_97 = arith.constant 9.969000e-01 : f32
    %142 = vector.broadcast %cst_97 : f32 to vector<8x128xf32>
    %143 = arith.select %139, %142, %132 : vector<8x128xi1>, vector<8x128xf32>
    %c0_98 = arith.constant 0 : index
    %c6_99 = arith.constant 6 : index
    %c0_100 = arith.constant 0 : index
    %c0_101 = arith.constant 0 : index
    %144 = vector.load %arg2[%c0_98, %c6_99, %c0_100, %c0_101] : memref<1x19x8x128xf32, #tpu.memory_space<vmem>>, vector<1x1x8x128xf32>
    %145 = vector.shape_cast %144 : vector<1x1x8x128xf32> to vector<8x128xf32>
    %146 = arith.subf %145, %73 : vector<8x128xf32>
    %147 = math.exp %146 : vector<8x128xf32>
    %148 = arith.addf %137, %147 : vector<8x128xf32>
    %c6_i32 = arith.constant 6 : i32
    %149 = vector.broadcast %c6_i32 : i32 to vector<8x128xi32>
    %150 = arith.cmpi eq, %17, %149 : vector<8x128xi32>
    %151 = arith.select %150, %145, %140 : vector<8x128xi1>, vector<8x128xf32>
    %152 = arith.select %150, %147, %141 : vector<8x128xi1>, vector<8x128xf32>
    %cst_102 = arith.constant 0.975399971 : f32
    %153 = vector.broadcast %cst_102 : f32 to vector<8x128xf32>
    %154 = arith.select %150, %153, %143 : vector<8x128xi1>, vector<8x128xf32>
    %c0_103 = arith.constant 0 : index
    %c7_104 = arith.constant 7 : index
    %c0_105 = arith.constant 0 : index
    %c0_106 = arith.constant 0 : index
    %155 = vector.load %arg2[%c0_103, %c7_104, %c0_105, %c0_106] : memref<1x19x8x128xf32, #tpu.memory_space<vmem>>, vector<1x1x8x128xf32>
    %156 = vector.shape_cast %155 : vector<1x1x8x128xf32> to vector<8x128xf32>
    %157 = arith.subf %156, %73 : vector<8x128xf32>
    %158 = math.exp %157 : vector<8x128xf32>
    %159 = arith.addf %148, %158 : vector<8x128xf32>
    %c7_i32 = arith.constant 7 : i32
    %160 = vector.broadcast %c7_i32 : i32 to vector<8x128xi32>
    %161 = arith.cmpi eq, %17, %160 : vector<8x128xi32>
    %162 = arith.select %161, %156, %151 : vector<8x128xi1>, vector<8x128xf32>
    %163 = arith.select %161, %158, %152 : vector<8x128xi1>, vector<8x128xf32>
    %cst_107 = arith.constant 1.048900e+00 : f32
    %164 = vector.broadcast %cst_107 : f32 to vector<8x128xf32>
    %165 = arith.select %161, %164, %154 : vector<8x128xi1>, vector<8x128xf32>
    %c0_108 = arith.constant 0 : index
    %c8_109 = arith.constant 8 : index
    %c0_110 = arith.constant 0 : index
    %c0_111 = arith.constant 0 : index
    %166 = vector.load %arg2[%c0_108, %c8_109, %c0_110, %c0_111] : memref<1x19x8x128xf32, #tpu.memory_space<vmem>>, vector<1x1x8x128xf32>
    %167 = vector.shape_cast %166 : vector<1x1x8x128xf32> to vector<8x128xf32>
    %168 = arith.subf %167, %73 : vector<8x128xf32>
    %169 = math.exp %168 : vector<8x128xf32>
    %170 = arith.addf %159, %169 : vector<8x128xf32>
    %c8_i32_112 = arith.constant 8 : i32
    %171 = vector.broadcast %c8_i32_112 : i32 to vector<8x128xi32>
    %172 = arith.cmpi eq, %17, %171 : vector<8x128xi32>
    %173 = arith.select %172, %167, %162 : vector<8x128xi1>, vector<8x128xf32>
    %174 = arith.select %172, %169, %163 : vector<8x128xi1>, vector<8x128xf32>
    %cst_113 = arith.constant 8.786000e-01 : f32
    %175 = vector.broadcast %cst_113 : f32 to vector<8x128xf32>
    %176 = arith.select %172, %175, %165 : vector<8x128xi1>, vector<8x128xf32>
    %c0_114 = arith.constant 0 : index
    %c9_115 = arith.constant 9 : index
    %c0_116 = arith.constant 0 : index
    %c0_117 = arith.constant 0 : index
    %177 = vector.load %arg2[%c0_114, %c9_115, %c0_116, %c0_117] : memref<1x19x8x128xf32, #tpu.memory_space<vmem>>, vector<1x1x8x128xf32>
    %178 = vector.shape_cast %177 : vector<1x1x8x128xf32> to vector<8x128xf32>
    %179 = arith.subf %178, %73 : vector<8x128xf32>
    %180 = math.exp %179 : vector<8x128xf32>
    %181 = arith.addf %170, %180 : vector<8x128xf32>
    %c9_i32 = arith.constant 9 : i32
    %182 = vector.broadcast %c9_i32 : i32 to vector<8x128xi32>
    %183 = arith.cmpi eq, %17, %182 : vector<8x128xi32>
    %184 = arith.select %183, %178, %173 : vector<8x128xi1>, vector<8x128xf32>
    %185 = arith.select %183, %180, %174 : vector<8x128xi1>, vector<8x128xf32>
    %cst_118 = arith.constant 1.002300e+00 : f32
    %186 = vector.broadcast %cst_118 : f32 to vector<8x128xf32>
    %187 = arith.select %183, %186, %176 : vector<8x128xi1>, vector<8x128xf32>
    %c0_119 = arith.constant 0 : index
    %c10_120 = arith.constant 10 : index
    %c0_121 = arith.constant 0 : index
    %c0_122 = arith.constant 0 : index
    %188 = vector.load %arg2[%c0_119, %c10_120, %c0_121, %c0_122] : memref<1x19x8x128xf32, #tpu.memory_space<vmem>>, vector<1x1x8x128xf32>
    %189 = vector.shape_cast %188 : vector<1x1x8x128xf32> to vector<8x128xf32>
    %190 = arith.subf %189, %73 : vector<8x128xf32>
    %191 = math.exp %190 : vector<8x128xf32>
    %192 = arith.addf %181, %191 : vector<8x128xf32>
    %c10_i32 = arith.constant 10 : i32
    %193 = vector.broadcast %c10_i32 : i32 to vector<8x128xi32>
    %194 = arith.cmpi eq, %17, %193 : vector<8x128xi32>
    %195 = arith.select %194, %189, %184 : vector<8x128xi1>, vector<8x128xf32>
    %196 = arith.select %194, %191, %185 : vector<8x128xi1>, vector<8x128xf32>
    %cst_123 = arith.constant 0.953899979 : f32
    %197 = vector.broadcast %cst_123 : f32 to vector<8x128xf32>
    %198 = arith.select %194, %197, %187 : vector<8x128xi1>, vector<8x128xf32>
    %c0_124 = arith.constant 0 : index
    %c11_125 = arith.constant 11 : index
    %c0_126 = arith.constant 0 : index
    %c0_127 = arith.constant 0 : index
    %199 = vector.load %arg2[%c0_124, %c11_125, %c0_126, %c0_127] : memref<1x19x8x128xf32, #tpu.memory_space<vmem>>, vector<1x1x8x128xf32>
    %200 = vector.shape_cast %199 : vector<1x1x8x128xf32> to vector<8x128xf32>
    %201 = arith.subf %200, %73 : vector<8x128xf32>
    %202 = math.exp %201 : vector<8x128xf32>
    %203 = arith.addf %192, %202 : vector<8x128xf32>
    %c11_i32 = arith.constant 11 : i32
    %204 = vector.broadcast %c11_i32 : i32 to vector<8x128xi32>
    %205 = arith.cmpi eq, %17, %204 : vector<8x128xi32>
    %206 = arith.select %205, %200, %195 : vector<8x128xi1>, vector<8x128xf32>
    %207 = arith.select %205, %202, %196 : vector<8x128xi1>, vector<8x128xf32>
    %cst_128 = arith.constant 9.843000e-01 : f32
    %208 = vector.broadcast %cst_128 : f32 to vector<8x128xf32>
    %209 = arith.select %205, %208, %198 : vector<8x128xi1>, vector<8x128xf32>
    %c0_129 = arith.constant 0 : index
    %c12_130 = arith.constant 12 : index
    %c0_131 = arith.constant 0 : index
    %c0_132 = arith.constant 0 : index
    %210 = vector.load %arg2[%c0_129, %c12_130, %c0_131, %c0_132] : memref<1x19x8x128xf32, #tpu.memory_space<vmem>>, vector<1x1x8x128xf32>
    %211 = vector.shape_cast %210 : vector<1x1x8x128xf32> to vector<8x128xf32>
    %212 = arith.subf %211, %73 : vector<8x128xf32>
    %213 = math.exp %212 : vector<8x128xf32>
    %214 = arith.addf %203, %213 : vector<8x128xf32>
    %c12_i32 = arith.constant 12 : i32
    %215 = vector.broadcast %c12_i32 : i32 to vector<8x128xi32>
    %216 = arith.cmpi eq, %17, %215 : vector<8x128xi32>
    %217 = arith.select %216, %211, %206 : vector<8x128xi1>, vector<8x128xf32>
    %218 = arith.select %216, %213, %207 : vector<8x128xi1>, vector<8x128xf32>
    %cst_133 = arith.constant 1.111600e+00 : f32
    %219 = vector.broadcast %cst_133 : f32 to vector<8x128xf32>
    %220 = arith.select %216, %219, %209 : vector<8x128xi1>, vector<8x128xf32>
    %c0_134 = arith.constant 0 : index
    %c13_135 = arith.constant 13 : index
    %c0_136 = arith.constant 0 : index
    %c0_137 = arith.constant 0 : index
    %221 = vector.load %arg2[%c0_134, %c13_135, %c0_136, %c0_137] : memref<1x19x8x128xf32, #tpu.memory_space<vmem>>, vector<1x1x8x128xf32>
    %222 = vector.shape_cast %221 : vector<1x1x8x128xf32> to vector<8x128xf32>
    %223 = arith.subf %222, %73 : vector<8x128xf32>
    %224 = math.exp %223 : vector<8x128xf32>
    %225 = arith.addf %214, %224 : vector<8x128xf32>
    %c13_i32 = arith.constant 13 : i32
    %226 = vector.broadcast %c13_i32 : i32 to vector<8x128xi32>
    %227 = arith.cmpi eq, %17, %226 : vector<8x128xi32>
    %228 = arith.select %227, %222, %217 : vector<8x128xi1>, vector<8x128xf32>
    %229 = arith.select %227, %224, %218 : vector<8x128xi1>, vector<8x128xf32>
    %cst_138 = arith.constant 0.903699994 : f32
    %230 = vector.broadcast %cst_138 : f32 to vector<8x128xf32>
    %231 = arith.select %227, %230, %220 : vector<8x128xi1>, vector<8x128xf32>
    %c0_139 = arith.constant 0 : index
    %c14_140 = arith.constant 14 : index
    %c0_141 = arith.constant 0 : index
    %c0_142 = arith.constant 0 : index
    %232 = vector.load %arg2[%c0_139, %c14_140, %c0_141, %c0_142] : memref<1x19x8x128xf32, #tpu.memory_space<vmem>>, vector<1x1x8x128xf32>
    %233 = vector.shape_cast %232 : vector<1x1x8x128xf32> to vector<8x128xf32>
    %234 = arith.subf %233, %73 : vector<8x128xf32>
    %235 = math.exp %234 : vector<8x128xf32>
    %236 = arith.addf %225, %235 : vector<8x128xf32>
    %c14_i32 = arith.constant 14 : i32
    %237 = vector.broadcast %c14_i32 : i32 to vector<8x128xi32>
    %238 = arith.cmpi eq, %17, %237 : vector<8x128xi32>
    %239 = arith.select %238, %233, %228 : vector<8x128xi1>, vector<8x128xf32>
    %240 = arith.select %238, %235, %229 : vector<8x128xi1>, vector<8x128xf32>
    %cst_143 = arith.constant 1.086500e+00 : f32
    %241 = vector.broadcast %cst_143 : f32 to vector<8x128xf32>
    %242 = arith.select %238, %241, %231 : vector<8x128xi1>, vector<8x128xf32>
    %c0_144 = arith.constant 0 : index
    %c15_145 = arith.constant 15 : index
    %c0_146 = arith.constant 0 : index
    %c0_147 = arith.constant 0 : index
    %243 = vector.load %arg2[%c0_144, %c15_145, %c0_146, %c0_147] : memref<1x19x8x128xf32, #tpu.memory_space<vmem>>, vector<1x1x8x128xf32>
    %244 = vector.shape_cast %243 : vector<1x1x8x128xf32> to vector<8x128xf32>
    %245 = arith.subf %244, %73 : vector<8x128xf32>
    %246 = math.exp %245 : vector<8x128xf32>
    %247 = arith.addf %236, %246 : vector<8x128xf32>
    %c15_i32 = arith.constant 15 : i32
    %248 = vector.broadcast %c15_i32 : i32 to vector<8x128xi32>
    %249 = arith.cmpi eq, %17, %248 : vector<8x128xi32>
    %250 = arith.select %249, %244, %239 : vector<8x128xi1>, vector<8x128xf32>
    %251 = arith.select %249, %246, %240 : vector<8x128xi1>, vector<8x128xf32>
    %cst_148 = arith.constant 1.095500e+00 : f32
    %252 = vector.broadcast %cst_148 : f32 to vector<8x128xf32>
    %253 = arith.select %249, %252, %242 : vector<8x128xi1>, vector<8x128xf32>
    %c0_149 = arith.constant 0 : index
    %c16_150 = arith.constant 16 : index
    %c0_151 = arith.constant 0 : index
    %c0_152 = arith.constant 0 : index
    %254 = vector.load %arg2[%c0_149, %c16_150, %c0_151, %c0_152] : memref<1x19x8x128xf32, #tpu.memory_space<vmem>>, vector<1x1x8x128xf32>
    %255 = vector.shape_cast %254 : vector<1x1x8x128xf32> to vector<8x128xf32>
    %256 = arith.subf %255, %73 : vector<8x128xf32>
    %257 = math.exp %256 : vector<8x128xf32>
    %258 = arith.addf %247, %257 : vector<8x128xf32>
    %c16_i32_153 = arith.constant 16 : i32
    %259 = vector.broadcast %c16_i32_153 : i32 to vector<8x128xi32>
    %260 = arith.cmpi eq, %17, %259 : vector<8x128xi32>
    %261 = arith.select %260, %255, %250 : vector<8x128xi1>, vector<8x128xf32>
    %262 = arith.select %260, %257, %251 : vector<8x128xi1>, vector<8x128xf32>
    %cst_154 = arith.constant 1.086500e+00 : f32
    %263 = vector.broadcast %cst_154 : f32 to vector<8x128xf32>
    %264 = arith.select %260, %263, %253 : vector<8x128xi1>, vector<8x128xf32>
    %c0_155 = arith.constant 0 : index
    %c17_156 = arith.constant 17 : index
    %c0_157 = arith.constant 0 : index
    %c0_158 = arith.constant 0 : index
    %265 = vector.load %arg2[%c0_155, %c17_156, %c0_157, %c0_158] : memref<1x19x8x128xf32, #tpu.memory_space<vmem>>, vector<1x1x8x128xf32>
    %266 = vector.shape_cast %265 : vector<1x1x8x128xf32> to vector<8x128xf32>
    %267 = arith.subf %266, %73 : vector<8x128xf32>
    %268 = math.exp %267 : vector<8x128xf32>
    %269 = arith.addf %258, %268 : vector<8x128xf32>
    %c17_i32 = arith.constant 17 : i32
    %270 = vector.broadcast %c17_i32 : i32 to vector<8x128xi32>
    %271 = arith.cmpi eq, %17, %270 : vector<8x128xi32>
    %272 = arith.select %271, %266, %261 : vector<8x128xi1>, vector<8x128xf32>
    %273 = arith.select %271, %268, %262 : vector<8x128xi1>, vector<8x128xf32>
    %cst_159 = arith.constant 1.152900e+00 : f32
    %274 = vector.broadcast %cst_159 : f32 to vector<8x128xf32>
    %275 = arith.select %271, %274, %264 : vector<8x128xi1>, vector<8x128xf32>
    %c0_160 = arith.constant 0 : index
    %c18_161 = arith.constant 18 : index
    %c0_162 = arith.constant 0 : index
    %c0_163 = arith.constant 0 : index
    %276 = vector.load %arg2[%c0_160, %c18_161, %c0_162, %c0_163] : memref<1x19x8x128xf32, #tpu.memory_space<vmem>>, vector<1x1x8x128xf32>
    %277 = vector.shape_cast %276 : vector<1x1x8x128xf32> to vector<8x128xf32>
    %278 = arith.subf %277, %73 : vector<8x128xf32>
    %279 = math.exp %278 : vector<8x128xf32>
    %280 = arith.addf %269, %279 : vector<8x128xf32>
    %c18_i32 = arith.constant 18 : i32
    %281 = vector.broadcast %c18_i32 : i32 to vector<8x128xi32>
    %282 = arith.cmpi eq, %17, %281 : vector<8x128xi32>
    %283 = arith.select %282, %277, %272 : vector<8x128xi1>, vector<8x128xf32>
    %284 = arith.select %282, %279, %273 : vector<8x128xi1>, vector<8x128xf32>
    %cst_164 = arith.constant 1.050700e+00 : f32
    %285 = vector.broadcast %cst_164 : f32 to vector<8x128xf32>
    %286 = arith.select %282, %285, %275 : vector<8x128xi1>, vector<8x128xf32>
    %287 = math.log %280 : vector<8x128xf32>
    %288 = arith.subf %283, %73 : vector<8x128xf32>
    %289 = arith.subf %287, %288 : vector<8x128xf32>
    %290 = arith.divf %284, %280 : vector<8x128xf32>
    %cst_165 = arith.constant 1.000000e+00 : f32
    %291 = vector.broadcast %cst_165 : f32 to vector<8x128xf32>
    %292 = arith.select %15, %290, %291 : vector<8x128xi1>, vector<8x128xf32>
    %c0_166 = arith.constant 0 : index
    %c0_167 = arith.constant 0 : index
    %293 = vector.load %arg5[%c0_166, %c0_167] : memref<8x128xf32, #tpu.memory_space<vmem>>, vector<8x128xf32>
    tpu.vector_store %arg5[%c0_166, %c0_167], %292 {strides = array<i32>} : memref<8x128xf32, #tpu.memory_space<vmem>>, vector<8x128xf32>,
    %294 = arith.mulf %286, %289 : vector<8x128xf32>
    %cst_168 = arith.constant 0.000000e+00 : f32
    %295 = vector.broadcast %cst_168 : f32 to vector<8x128xf32>
    %296 = arith.select %15, %294, %295 : vector<8x128xi1>, vector<8x128xf32>
    %c0_169 = arith.constant 0 : index
    %c0_170 = arith.constant 0 : index
    %297 = vector.load %arg6[%c0_169, %c0_170] : memref<8x128xf32, #tpu.memory_space<vmem>>, vector<8x128xf32>
    tpu.vector_store %arg6[%c0_169, %c0_170], %296 {strides = array<i32>} : memref<8x128xf32, #tpu.memory_space<vmem>>, vector<8x128xf32>,
    %cst_171 = arith.constant 0.000000e+00 : f32
    %298 = vector.broadcast %cst_171 : f32 to vector<8x128xf32>
    %299 = arith.select %15, %286, %298 : vector<8x128xi1>, vector<8x128xf32>
    %c0_172 = arith.constant 0 : index
    %c0_173 = arith.constant 0 : index
    %300 = vector.load %arg7[%c0_172, %c0_173] : memref<8x128xf32, #tpu.memory_space<vmem>>, vector<8x128xf32>
    tpu.vector_store %arg7[%c0_172, %c0_173], %299 {strides = array<i32>} : memref<8x128xf32, #tpu.memory_space<vmem>>, vector<8x128xf32>,
    %301 = arith.extui %15 : vector<8x128xi1> to vector<8x128xi32>
    %302 = arith.sitofp %301 : vector<8x128xi32> to vector<8x128xf32>
    %303 = arith.addf %4, %302 : vector<8x128xf32>
    %c0_174 = arith.constant 0 : index
    %c48 = arith.constant 48 : index
    %c0_175 = arith.constant 0 : index
    %c0_176 = arith.constant 0 : index
    %304 = vector.load %arg4[%c0_174, %c48, %c0_175, %c0_176] : memref<1x49x8x128xf32, #tpu.memory_space<vmem>>, vector<1x1x8x128xf32>
    %305 = vector.shape_cast %304 : vector<1x1x8x128xf32> to vector<8x128xf32>
    %306 = arith.addf %305, %303 : vector<8x128xf32>
    %c0_177 = arith.constant 0 : index
    %c48_178 = arith.constant 48 : index
    %c0_179 = arith.constant 0 : index
    %c0_180 = arith.constant 0 : index
    %307 = vector.load %arg4[%c0_177, %c48_178, %c0_179, %c0_180] : memref<1x49x8x128xf32, #tpu.memory_space<vmem>>, vector<1x1x8x128xf32>
    %308 = vector.shape_cast %307 : vector<1x1x8x128xf32> to vector<8x128xf32>
    %309 = vector.shape_cast %306 : vector<8x128xf32> to vector<1x1x8x128xf32>
    tpu.vector_store %arg4[%c0_177, %c48_178, %c0_179, %c0_180], %309 {strides = array<i32>} : memref<1x49x8x128xf32, #tpu.memory_space<vmem>>, vector<1x1x8x128xf32>,
    %cst_181 = arith.constant 0.000000e+00 : f32
    %310 = vector.broadcast %cst_181 : f32 to vector<8x128xf32>
    %cst_182 = arith.constant 0.000000e+00 : f32
    %311 = vector.broadcast %cst_182 : f32 to vector<8x128xf32>
    %cst_183 = arith.constant 0.000000e+00 : f32
    %312 = vector.broadcast %cst_183 : f32 to vector<8x128xf32>
    %c0_184 = arith.constant 0 : index
    %c0_185 = arith.constant 0 : index
    %313 = vector.load %arg5[%c0_184, %c0_185] : memref<8x128xf32, #tpu.memory_space<vmem>>, vector<8x128xf32>
    %cst_186 = arith.constant 0.699999988 : f32
    %314 = vector.broadcast %cst_186 : f32 to vector<8x128xf32>
    %315 = arith.cmpf ole, %313, %314 : vector<8x128xf32>
    %cst_187 = arith.constant 1.000000e+00 : f32
    %cst_188 = arith.constant 0.000000e+00 : f32
    %316 = vector.broadcast %cst_187 : f32 to vector<8x128xf32>
    %317 = vector.broadcast %cst_188 : f32 to vector<8x128xf32>
    %318 = arith.select %315, %316, %317 : vector<8x128xi1>, vector<8x128xf32>
    %319 = arith.addf %310, %318 : vector<8x128xf32>
    %c0_189 = arith.constant 0 : index
    %c0_190 = arith.constant 0 : index
    %320 = vector.load %arg6[%c0_189, %c0_190] : memref<8x128xf32, #tpu.memory_space<vmem>>, vector<8x128xf32>
    %cst_191 = arith.constant 0.000000e+00 : f32
    %321 = vector.broadcast %cst_191 : f32 to vector<8x128xf32>
    %322 = arith.select %315, %320, %321 : vector<8x128xi1>, vector<8x128xf32>
    %323 = arith.addf %311, %322 : vector<8x128xf32>
    %c0_192 = arith.constant 0 : index
    %c0_193 = arith.constant 0 : index
    %324 = vector.load %arg7[%c0_192, %c0_193] : memref<8x128xf32, #tpu.memory_space<vmem>>, vector<8x128xf32>
    %cst_194 = arith.constant 0.000000e+00 : f32
    %325 = vector.broadcast %cst_194 : f32 to vector<8x128xf32>
    %326 = arith.select %315, %324, %325 : vector<8x128xi1>, vector<8x128xf32>
    %327 = arith.addf %312, %326 : vector<8x128xf32>
    %c0_195 = arith.constant 0 : index
    %c0_196 = arith.constant 0 : index
    %c0_197 = arith.constant 0 : index
    %c0_198 = arith.constant 0 : index
    %328 = vector.load %arg4[%c0_195, %c0_196, %c0_197, %c0_198] : memref<1x49x8x128xf32, #tpu.memory_space<vmem>>, vector<1x1x8x128xf32>
    %329 = vector.shape_cast %328 : vector<1x1x8x128xf32> to vector<8x128xf32>
    %330 = arith.addf %329, %319 : vector<8x128xf32>
    %c0_199 = arith.constant 0 : index
    %c0_200 = arith.constant 0 : index
    %c0_201 = arith.constant 0 : index
    %c0_202 = arith.constant 0 : index
    %331 = vector.load %arg4[%c0_199, %c0_200, %c0_201, %c0_202] : memref<1x49x8x128xf32, #tpu.memory_space<vmem>>, vector<1x1x8x128xf32>
    %332 = vector.shape_cast %331 : vector<1x1x8x128xf32> to vector<8x128xf32>
    %333 = vector.shape_cast %330 : vector<8x128xf32> to vector<1x1x8x128xf32>
    tpu.vector_store %arg4[%c0_199, %c0_200, %c0_201, %c0_202], %333 {strides = array<i32>} : memref<1x49x8x128xf32, #tpu.memory_space<vmem>>, vector<1x1x8x128xf32>,
    %c0_203 = arith.constant 0 : index
    %c16_204 = arith.constant 16 : index
    %c0_205 = arith.constant 0 : index
    %c0_206 = arith.constant 0 : index
    %334 = vector.load %arg4[%c0_203, %c16_204, %c0_205, %c0_206] : memref<1x49x8x128xf32, #tpu.memory_space<vmem>>, vector<1x1x8x128xf32>
    %335 = vector.shape_cast %334 : vector<1x1x8x128xf32> to vector<8x128xf32>
    %336 = arith.addf %335, %323 : vector<8x128xf32>
    %c0_207 = arith.constant 0 : index
    %c16_208 = arith.constant 16 : index
    %c0_209 = arith.constant 0 : index
    %c0_210 = arith.constant 0 : index
    %337 = vector.load %arg4[%c0_207, %c16_208, %c0_209, %c0_210] : memref<1x49x8x128xf32, #tpu.memory_space<vmem>>, vector<1x1x8x128xf32>
    %338 = vector.shape_cast %337 : vector<1x1x8x128xf32> to vector<8x128xf32>
    %339 = vector.shape_cast %336 : vector<8x128xf32> to vector<1x1x8x128xf32>
    tpu.vector_store %arg4[%c0_207, %c16_208, %c0_209, %c0_210], %339 {strides = array<i32>} : memref<1x49x8x128xf32, #tpu.memory_space<vmem>>, vector<1x1x8x128xf32>,
    %c0_211 = arith.constant 0 : index
    %c32 = arith.constant 32 : index
    %c0_212 = arith.constant 0 : index
    %c0_213 = arith.constant 0 : index
    %340 = vector.load %arg4[%c0_211, %c32, %c0_212, %c0_213] : memref<1x49x8x128xf32, #tpu.memory_space<vmem>>, vector<1x1x8x128xf32>
    %341 = vector.shape_cast %340 : vector<1x1x8x128xf32> to vector<8x128xf32>
    %342 = arith.addf %341, %327 : vector<8x128xf32>
    %c0_214 = arith.constant 0 : index
    %c32_215 = arith.constant 32 : index
    %c0_216 = arith.constant 0 : index
    %c0_217 = arith.constant 0 : index
    %343 = vector.load %arg4[%c0_214, %c32_215, %c0_216, %c0_217] : memref<1x49x8x128xf32, #tpu.memory_space<vmem>>, vector<1x1x8x128xf32>
    %344 = vector.shape_cast %343 : vector<1x1x8x128xf32> to vector<8x128xf32>
    %345 = vector.shape_cast %342 : vector<8x128xf32> to vector<1x1x8x128xf32>
    tpu.vector_store %arg4[%c0_214, %c32_215, %c0_216, %c0_217], %345 {strides = array<i32>} : memref<1x49x8x128xf32, #tpu.memory_space<vmem>>, vector<1x1x8x128xf32>,
    %cst_218 = arith.constant 0.000000e+00 : f32
    %346 = vector.broadcast %cst_218 : f32 to vector<8x128xf32>
    %cst_219 = arith.constant 0.000000e+00 : f32
    %347 = vector.broadcast %cst_219 : f32 to vector<8x128xf32>
    %cst_220 = arith.constant 0.000000e+00 : f32
    %348 = vector.broadcast %cst_220 : f32 to vector<8x128xf32>
    %c0_221 = arith.constant 0 : index
    %c0_222 = arith.constant 0 : index
    %349 = vector.load %arg5[%c0_221, %c0_222] : memref<8x128xf32, #tpu.memory_space<vmem>>, vector<8x128xf32>
    %cst_223 = arith.constant 0.721428573 : f32
    %350 = vector.broadcast %cst_223 : f32 to vector<8x128xf32>
    %351 = arith.cmpf ole, %349, %350 : vector<8x128xf32>
    %cst_224 = arith.constant 1.000000e+00 : f32
    %cst_225 = arith.constant 0.000000e+00 : f32
    %352 = vector.broadcast %cst_224 : f32 to vector<8x128xf32>
    %353 = vector.broadcast %cst_225 : f32 to vector<8x128xf32>
    %354 = arith.select %351, %352, %353 : vector<8x128xi1>, vector<8x128xf32>
    %355 = arith.addf %346, %354 : vector<8x128xf32>
    %c0_226 = arith.constant 0 : index
    %c0_227 = arith.constant 0 : index
    %356 = vector.load %arg6[%c0_226, %c0_227] : memref<8x128xf32, #tpu.memory_space<vmem>>, vector<8x128xf32>
    %cst_228 = arith.constant 0.000000e+00 : f32
    %357 = vector.broadcast %cst_228 : f32 to vector<8x128xf32>
    %358 = arith.select %351, %356, %357 : vector<8x128xi1>, vector<8x128xf32>
    %359 = arith.addf %347, %358 : vector<8x128xf32>
    %c0_229 = arith.constant 0 : index
    %c0_230 = arith.constant 0 : index
    %360 = vector.load %arg7[%c0_229, %c0_230] : memref<8x128xf32, #tpu.memory_space<vmem>>, vector<8x128xf32>
    %cst_231 = arith.constant 0.000000e+00 : f32
    %361 = vector.broadcast %cst_231 : f32 to vector<8x128xf32>
    %362 = arith.select %351, %360, %361 : vector<8x128xi1>, vector<8x128xf32>
    %363 = arith.addf %348, %362 : vector<8x128xf32>
    %c0_232 = arith.constant 0 : index
    %c1_233 = arith.constant 1 : index
    %c0_234 = arith.constant 0 : index
    %c0_235 = arith.constant 0 : index
    %364 = vector.load %arg4[%c0_232, %c1_233, %c0_234, %c0_235] : memref<1x49x8x128xf32, #tpu.memory_space<vmem>>, vector<1x1x8x128xf32>
    %365 = vector.shape_cast %364 : vector<1x1x8x128xf32> to vector<8x128xf32>
    %366 = arith.addf %365, %355 : vector<8x128xf32>
    %c0_236 = arith.constant 0 : index
    %c1_237 = arith.constant 1 : index
    %c0_238 = arith.constant 0 : index
    %c0_239 = arith.constant 0 : index
    %367 = vector.load %arg4[%c0_236, %c1_237, %c0_238, %c0_239] : memref<1x49x8x128xf32, #tpu.memory_space<vmem>>, vector<1x1x8x128xf32>
    %368 = vector.shape_cast %367 : vector<1x1x8x128xf32> to vector<8x128xf32>
    %369 = vector.shape_cast %366 : vector<8x128xf32> to vector<1x1x8x128xf32>
    tpu.vector_store %arg4[%c0_236, %c1_237, %c0_238, %c0_239], %369 {strides = array<i32>} : memref<1x49x8x128xf32, #tpu.memory_space<vmem>>, vector<1x1x8x128xf32>,
    %c0_240 = arith.constant 0 : index
    %c17_241 = arith.constant 17 : index
    %c0_242 = arith.constant 0 : index
    %c0_243 = arith.constant 0 : index
    %370 = vector.load %arg4[%c0_240, %c17_241, %c0_242, %c0_243] : memref<1x49x8x128xf32, #tpu.memory_space<vmem>>, vector<1x1x8x128xf32>
    %371 = vector.shape_cast %370 : vector<1x1x8x128xf32> to vector<8x128xf32>
    %372 = arith.addf %371, %359 : vector<8x128xf32>
    %c0_244 = arith.constant 0 : index
    %c17_245 = arith.constant 17 : index
    %c0_246 = arith.constant 0 : index
    %c0_247 = arith.constant 0 : index
    %373 = vector.load %arg4[%c0_244, %c17_245, %c0_246, %c0_247] : memref<1x49x8x128xf32, #tpu.memory_space<vmem>>, vector<1x1x8x128xf32>
    %374 = vector.shape_cast %373 : vector<1x1x8x128xf32> to vector<8x128xf32>
    %375 = vector.shape_cast %372 : vector<8x128xf32> to vector<1x1x8x128xf32>
    tpu.vector_store %arg4[%c0_244, %c17_245, %c0_246, %c0_247], %375 {strides = array<i32>} : memref<1x49x8x128xf32, #tpu.memory_space<vmem>>, vector<1x1x8x128xf32>,
    %c0_248 = arith.constant 0 : index
    %c33 = arith.constant 33 : index
    %c0_249 = arith.constant 0 : index
    %c0_250 = arith.constant 0 : index
    %376 = vector.load %arg4[%c0_248, %c33, %c0_249, %c0_250] : memref<1x49x8x128xf32, #tpu.memory_space<vmem>>, vector<1x1x8x128xf32>
    %377 = vector.shape_cast %376 : vector<1x1x8x128xf32> to vector<8x128xf32>
    %378 = arith.addf %377, %363 : vector<8x128xf32>
    %c0_251 = arith.constant 0 : index
    %c33_252 = arith.constant 33 : index
    %c0_253 = arith.constant 0 : index
    %c0_254 = arith.constant 0 : index
    %379 = vector.load %arg4[%c0_251, %c33_252, %c0_253, %c0_254] : memref<1x49x8x128xf32, #tpu.memory_space<vmem>>, vector<1x1x8x128xf32>
    %380 = vector.shape_cast %379 : vector<1x1x8x128xf32> to vector<8x128xf32>
    %381 = vector.shape_cast %378 : vector<8x128xf32> to vector<1x1x8x128xf32>
    tpu.vector_store %arg4[%c0_251, %c33_252, %c0_253, %c0_254], %381 {strides = array<i32>} : memref<1x49x8x128xf32, #tpu.memory_space<vmem>>, vector<1x1x8x128xf32>,
    %cst_255 = arith.constant 0.000000e+00 : f32
    %382 = vector.broadcast %cst_255 : f32 to vector<8x128xf32>
    %cst_256 = arith.constant 0.000000e+00 : f32
    %383 = vector.broadcast %cst_256 : f32 to vector<8x128xf32>
    %cst_257 = arith.constant 0.000000e+00 : f32
    %384 = vector.broadcast %cst_257 : f32 to vector<8x128xf32>
    %c0_258 = arith.constant 0 : index
    %c0_259 = arith.constant 0 : index
    %385 = vector.load %arg5[%c0_258, %c0_259] : memref<8x128xf32, #tpu.memory_space<vmem>>, vector<8x128xf32>
    %cst_260 = arith.constant 0.742857158 : f32
    %386 = vector.broadcast %cst_260 : f32 to vector<8x128xf32>
    %387 = arith.cmpf ole, %385, %386 : vector<8x128xf32>
    %cst_261 = arith.constant 1.000000e+00 : f32
    %cst_262 = arith.constant 0.000000e+00 : f32
    %388 = vector.broadcast %cst_261 : f32 to vector<8x128xf32>
    %389 = vector.broadcast %cst_262 : f32 to vector<8x128xf32>
    %390 = arith.select %387, %388, %389 : vector<8x128xi1>, vector<8x128xf32>
    %391 = arith.addf %382, %390 : vector<8x128xf32>
    %c0_263 = arith.constant 0 : index
    %c0_264 = arith.constant 0 : index
    %392 = vector.load %arg6[%c0_263, %c0_264] : memref<8x128xf32, #tpu.memory_space<vmem>>, vector<8x128xf32>
    %cst_265 = arith.constant 0.000000e+00 : f32
    %393 = vector.broadcast %cst_265 : f32 to vector<8x128xf32>
    %394 = arith.select %387, %392, %393 : vector<8x128xi1>, vector<8x128xf32>
    %395 = arith.addf %383, %394 : vector<8x128xf32>
    %c0_266 = arith.constant 0 : index
    %c0_267 = arith.constant 0 : index
    %396 = vector.load %arg7[%c0_266, %c0_267] : memref<8x128xf32, #tpu.memory_space<vmem>>, vector<8x128xf32>
    %cst_268 = arith.constant 0.000000e+00 : f32
    %397 = vector.broadcast %cst_268 : f32 to vector<8x128xf32>
    %398 = arith.select %387, %396, %397 : vector<8x128xi1>, vector<8x128xf32>
    %399 = arith.addf %384, %398 : vector<8x128xf32>
    %c0_269 = arith.constant 0 : index
    %c2_270 = arith.constant 2 : index
    %c0_271 = arith.constant 0 : index
    %c0_272 = arith.constant 0 : index
    %400 = vector.load %arg4[%c0_269, %c2_270, %c0_271, %c0_272] : memref<1x49x8x128xf32, #tpu.memory_space<vmem>>, vector<1x1x8x128xf32>
    %401 = vector.shape_cast %400 : vector<1x1x8x128xf32> to vector<8x128xf32>
    %402 = arith.addf %401, %391 : vector<8x128xf32>
    %c0_273 = arith.constant 0 : index
    %c2_274 = arith.constant 2 : index
    %c0_275 = arith.constant 0 : index
    %c0_276 = arith.constant 0 : index
    %403 = vector.load %arg4[%c0_273, %c2_274, %c0_275, %c0_276] : memref<1x49x8x128xf32, #tpu.memory_space<vmem>>, vector<1x1x8x128xf32>
    %404 = vector.shape_cast %403 : vector<1x1x8x128xf32> to vector<8x128xf32>
    %405 = vector.shape_cast %402 : vector<8x128xf32> to vector<1x1x8x128xf32>
    tpu.vector_store %arg4[%c0_273, %c2_274, %c0_275, %c0_276], %405 {strides = array<i32>} : memref<1x49x8x128xf32, #tpu.memory_space<vmem>>, vector<1x1x8x128xf32>,
    %c0_277 = arith.constant 0 : index
    %c18_278 = arith.constant 18 : index
    %c0_279 = arith.constant 0 : index
    %c0_280 = arith.constant 0 : index
    %406 = vector.load %arg4[%c0_277, %c18_278, %c0_279, %c0_280] : memref<1x49x8x128xf32, #tpu.memory_space<vmem>>, vector<1x1x8x128xf32>
    %407 = vector.shape_cast %406 : vector<1x1x8x128xf32> to vector<8x128xf32>
    %408 = arith.addf %407, %395 : vector<8x128xf32>
    %c0_281 = arith.constant 0 : index
    %c18_282 = arith.constant 18 : index
    %c0_283 = arith.constant 0 : index
    %c0_284 = arith.constant 0 : index
    %409 = vector.load %arg4[%c0_281, %c18_282, %c0_283, %c0_284] : memref<1x49x8x128xf32, #tpu.memory_space<vmem>>, vector<1x1x8x128xf32>
    %410 = vector.shape_cast %409 : vector<1x1x8x128xf32> to vector<8x128xf32>
    %411 = vector.shape_cast %408 : vector<8x128xf32> to vector<1x1x8x128xf32>
    tpu.vector_store %arg4[%c0_281, %c18_282, %c0_283, %c0_284], %411 {strides = array<i32>} : memref<1x49x8x128xf32, #tpu.memory_space<vmem>>, vector<1x1x8x128xf32>,
    %c0_285 = arith.constant 0 : index
    %c34 = arith.constant 34 : index
    %c0_286 = arith.constant 0 : index
    %c0_287 = arith.constant 0 : index
    %412 = vector.load %arg4[%c0_285, %c34, %c0_286, %c0_287] : memref<1x49x8x128xf32, #tpu.memory_space<vmem>>, vector<1x1x8x128xf32>
    %413 = vector.shape_cast %412 : vector<1x1x8x128xf32> to vector<8x128xf32>
    %414 = arith.addf %413, %399 : vector<8x128xf32>
    %c0_288 = arith.constant 0 : index
    %c34_289 = arith.constant 34 : index
    %c0_290 = arith.constant 0 : index
    %c0_291 = arith.constant 0 : index
    %415 = vector.load %arg4[%c0_288, %c34_289, %c0_290, %c0_291] : memref<1x49x8x128xf32, #tpu.memory_space<vmem>>, vector<1x1x8x128xf32>
    %416 = vector.shape_cast %415 : vector<1x1x8x128xf32> to vector<8x128xf32>
    %417 = vector.shape_cast %414 : vector<8x128xf32> to vector<1x1x8x128xf32>
    tpu.vector_store %arg4[%c0_288, %c34_289, %c0_290, %c0_291], %417 {strides = array<i32>} : memref<1x49x8x128xf32, #tpu.memory_space<vmem>>, vector<1x1x8x128xf32>,
    %cst_292 = arith.constant 0.000000e+00 : f32
    %418 = vector.broadcast %cst_292 : f32 to vector<8x128xf32>
    %cst_293 = arith.constant 0.000000e+00 : f32
    %419 = vector.broadcast %cst_293 : f32 to vector<8x128xf32>
    %cst_294 = arith.constant 0.000000e+00 : f32
    %420 = vector.broadcast %cst_294 : f32 to vector<8x128xf32>
    %c0_295 = arith.constant 0 : index
    %c0_296 = arith.constant 0 : index
    %421 = vector.load %arg5[%c0_295, %c0_296] : memref<8x128xf32, #tpu.memory_space<vmem>>, vector<8x128xf32>
    %cst_297 = arith.constant 0.764285743 : f32
    %422 = vector.broadcast %cst_297 : f32 to vector<8x128xf32>
    %423 = arith.cmpf ole, %421, %422 : vector<8x128xf32>
    %cst_298 = arith.constant 1.000000e+00 : f32
    %cst_299 = arith.constant 0.000000e+00 : f32
    %424 = vector.broadcast %cst_298 : f32 to vector<8x128xf32>
    %425 = vector.broadcast %cst_299 : f32 to vector<8x128xf32>
    %426 = arith.select %423, %424, %425 : vector<8x128xi1>, vector<8x128xf32>
    %427 = arith.addf %418, %426 : vector<8x128xf32>
    %c0_300 = arith.constant 0 : index
    %c0_301 = arith.constant 0 : index
    %428 = vector.load %arg6[%c0_300, %c0_301] : memref<8x128xf32, #tpu.memory_space<vmem>>, vector<8x128xf32>
    %cst_302 = arith.constant 0.000000e+00 : f32
    %429 = vector.broadcast %cst_302 : f32 to vector<8x128xf32>
    %430 = arith.select %423, %428, %429 : vector<8x128xi1>, vector<8x128xf32>
    %431 = arith.addf %419, %430 : vector<8x128xf32>
    %c0_303 = arith.constant 0 : index
    %c0_304 = arith.constant 0 : index
    %432 = vector.load %arg7[%c0_303, %c0_304] : memref<8x128xf32, #tpu.memory_space<vmem>>, vector<8x128xf32>
    %cst_305 = arith.constant 0.000000e+00 : f32
    %433 = vector.broadcast %cst_305 : f32 to vector<8x128xf32>
    %434 = arith.select %423, %432, %433 : vector<8x128xi1>, vector<8x128xf32>
    %435 = arith.addf %420, %434 : vector<8x128xf32>
    %c0_306 = arith.constant 0 : index
    %c3_307 = arith.constant 3 : index
    %c0_308 = arith.constant 0 : index
    %c0_309 = arith.constant 0 : index
    %436 = vector.load %arg4[%c0_306, %c3_307, %c0_308, %c0_309] : memref<1x49x8x128xf32, #tpu.memory_space<vmem>>, vector<1x1x8x128xf32>
    %437 = vector.shape_cast %436 : vector<1x1x8x128xf32> to vector<8x128xf32>
    %438 = arith.addf %437, %427 : vector<8x128xf32>
    %c0_310 = arith.constant 0 : index
    %c3_311 = arith.constant 3 : index
    %c0_312 = arith.constant 0 : index
    %c0_313 = arith.constant 0 : index
    %439 = vector.load %arg4[%c0_310, %c3_311, %c0_312, %c0_313] : memref<1x49x8x128xf32, #tpu.memory_space<vmem>>, vector<1x1x8x128xf32>
    %440 = vector.shape_cast %439 : vector<1x1x8x128xf32> to vector<8x128xf32>
    %441 = vector.shape_cast %438 : vector<8x128xf32> to vector<1x1x8x128xf32>
    tpu.vector_store %arg4[%c0_310, %c3_311, %c0_312, %c0_313], %441 {strides = array<i32>} : memref<1x49x8x128xf32, #tpu.memory_space<vmem>>, vector<1x1x8x128xf32>,
    %c0_314 = arith.constant 0 : index
    %c19 = arith.constant 19 : index
    %c0_315 = arith.constant 0 : index
    %c0_316 = arith.constant 0 : index
    %442 = vector.load %arg4[%c0_314, %c19, %c0_315, %c0_316] : memref<1x49x8x128xf32, #tpu.memory_space<vmem>>, vector<1x1x8x128xf32>
    %443 = vector.shape_cast %442 : vector<1x1x8x128xf32> to vector<8x128xf32>
    %444 = arith.addf %443, %431 : vector<8x128xf32>
    %c0_317 = arith.constant 0 : index
    %c19_318 = arith.constant 19 : index
    %c0_319 = arith.constant 0 : index
    %c0_320 = arith.constant 0 : index
    %445 = vector.load %arg4[%c0_317, %c19_318, %c0_319, %c0_320] : memref<1x49x8x128xf32, #tpu.memory_space<vmem>>, vector<1x1x8x128xf32>
    %446 = vector.shape_cast %445 : vector<1x1x8x128xf32> to vector<8x128xf32>
    %447 = vector.shape_cast %444 : vector<8x128xf32> to vector<1x1x8x128xf32>
    tpu.vector_store %arg4[%c0_317, %c19_318, %c0_319, %c0_320], %447 {strides = array<i32>} : memref<1x49x8x128xf32, #tpu.memory_space<vmem>>, vector<1x1x8x128xf32>,
    %c0_321 = arith.constant 0 : index
    %c35 = arith.constant 35 : index
    %c0_322 = arith.constant 0 : index
    %c0_323 = arith.constant 0 : index
    %448 = vector.load %arg4[%c0_321, %c35, %c0_322, %c0_323] : memref<1x49x8x128xf32, #tpu.memory_space<vmem>>, vector<1x1x8x128xf32>
    %449 = vector.shape_cast %448 : vector<1x1x8x128xf32> to vector<8x128xf32>
    %450 = arith.addf %449, %435 : vector<8x128xf32>
    %c0_324 = arith.constant 0 : index
    %c35_325 = arith.constant 35 : index
    %c0_326 = arith.constant 0 : index
    %c0_327 = arith.constant 0 : index
    %451 = vector.load %arg4[%c0_324, %c35_325, %c0_326, %c0_327] : memref<1x49x8x128xf32, #tpu.memory_space<vmem>>, vector<1x1x8x128xf32>
    %452 = vector.shape_cast %451 : vector<1x1x8x128xf32> to vector<8x128xf32>
    %453 = vector.shape_cast %450 : vector<8x128xf32> to vector<1x1x8x128xf32>
    tpu.vector_store %arg4[%c0_324, %c35_325, %c0_326, %c0_327], %453 {strides = array<i32>} : memref<1x49x8x128xf32, #tpu.memory_space<vmem>>, vector<1x1x8x128xf32>,
    %cst_328 = arith.constant 0.000000e+00 : f32
    %454 = vector.broadcast %cst_328 : f32 to vector<8x128xf32>
    %cst_329 = arith.constant 0.000000e+00 : f32
    %455 = vector.broadcast %cst_329 : f32 to vector<8x128xf32>
    %cst_330 = arith.constant 0.000000e+00 : f32
    %456 = vector.broadcast %cst_330 : f32 to vector<8x128xf32>
    %c0_331 = arith.constant 0 : index
    %c0_332 = arith.constant 0 : index
    %457 = vector.load %arg5[%c0_331, %c0_332] : memref<8x128xf32, #tpu.memory_space<vmem>>, vector<8x128xf32>
    %cst_333 = arith.constant 0.785714268 : f32
    %458 = vector.broadcast %cst_333 : f32 to vector<8x128xf32>
    %459 = arith.cmpf ole, %457, %458 : vector<8x128xf32>
    %cst_334 = arith.constant 1.000000e+00 : f32
    %cst_335 = arith.constant 0.000000e+00 : f32
    %460 = vector.broadcast %cst_334 : f32 to vector<8x128xf32>
    %461 = vector.broadcast %cst_335 : f32 to vector<8x128xf32>
    %462 = arith.select %459, %460, %461 : vector<8x128xi1>, vector<8x128xf32>
    %463 = arith.addf %454, %462 : vector<8x128xf32>
    %c0_336 = arith.constant 0 : index
    %c0_337 = arith.constant 0 : index
    %464 = vector.load %arg6[%c0_336, %c0_337] : memref<8x128xf32, #tpu.memory_space<vmem>>, vector<8x128xf32>
    %cst_338 = arith.constant 0.000000e+00 : f32
    %465 = vector.broadcast %cst_338 : f32 to vector<8x128xf32>
    %466 = arith.select %459, %464, %465 : vector<8x128xi1>, vector<8x128xf32>
    %467 = arith.addf %455, %466 : vector<8x128xf32>
    %c0_339 = arith.constant 0 : index
    %c0_340 = arith.constant 0 : index
    %468 = vector.load %arg7[%c0_339, %c0_340] : memref<8x128xf32, #tpu.memory_space<vmem>>, vector<8x128xf32>
    %cst_341 = arith.constant 0.000000e+00 : f32
    %469 = vector.broadcast %cst_341 : f32 to vector<8x128xf32>
    %470 = arith.select %459, %468, %469 : vector<8x128xi1>, vector<8x128xf32>
    %471 = arith.addf %456, %470 : vector<8x128xf32>
    %c0_342 = arith.constant 0 : index
    %c4_343 = arith.constant 4 : index
    %c0_344 = arith.constant 0 : index
    %c0_345 = arith.constant 0 : index
    %472 = vector.load %arg4[%c0_342, %c4_343, %c0_344, %c0_345] : memref<1x49x8x128xf32, #tpu.memory_space<vmem>>, vector<1x1x8x128xf32>
    %473 = vector.shape_cast %472 : vector<1x1x8x128xf32> to vector<8x128xf32>
    %474 = arith.addf %473, %463 : vector<8x128xf32>
    %c0_346 = arith.constant 0 : index
    %c4_347 = arith.constant 4 : index
    %c0_348 = arith.constant 0 : index
    %c0_349 = arith.constant 0 : index
    %475 = vector.load %arg4[%c0_346, %c4_347, %c0_348, %c0_349] : memref<1x49x8x128xf32, #tpu.memory_space<vmem>>, vector<1x1x8x128xf32>
    %476 = vector.shape_cast %475 : vector<1x1x8x128xf32> to vector<8x128xf32>
    %477 = vector.shape_cast %474 : vector<8x128xf32> to vector<1x1x8x128xf32>
    tpu.vector_store %arg4[%c0_346, %c4_347, %c0_348, %c0_349], %477 {strides = array<i32>} : memref<1x49x8x128xf32, #tpu.memory_space<vmem>>, vector<1x1x8x128xf32>,
    %c0_350 = arith.constant 0 : index
    %c20 = arith.constant 20 : index
    %c0_351 = arith.constant 0 : index
    %c0_352 = arith.constant 0 : index
    %478 = vector.load %arg4[%c0_350, %c20, %c0_351, %c0_352] : memref<1x49x8x128xf32, #tpu.memory_space<vmem>>, vector<1x1x8x128xf32>
    %479 = vector.shape_cast %478 : vector<1x1x8x128xf32> to vector<8x128xf32>
    %480 = arith.addf %479, %467 : vector<8x128xf32>
    %c0_353 = arith.constant 0 : index
    %c20_354 = arith.constant 20 : index
    %c0_355 = arith.constant 0 : index
    %c0_356 = arith.constant 0 : index
    %481 = vector.load %arg4[%c0_353, %c20_354, %c0_355, %c0_356] : memref<1x49x8x128xf32, #tpu.memory_space<vmem>>, vector<1x1x8x128xf32>
    %482 = vector.shape_cast %481 : vector<1x1x8x128xf32> to vector<8x128xf32>
    %483 = vector.shape_cast %480 : vector<8x128xf32> to vector<1x1x8x128xf32>
    tpu.vector_store %arg4[%c0_353, %c20_354, %c0_355, %c0_356], %483 {strides = array<i32>} : memref<1x49x8x128xf32, #tpu.memory_space<vmem>>, vector<1x1x8x128xf32>,
    %c0_357 = arith.constant 0 : index
    %c36 = arith.constant 36 : index
    %c0_358 = arith.constant 0 : index
    %c0_359 = arith.constant 0 : index
    %484 = vector.load %arg4[%c0_357, %c36, %c0_358, %c0_359] : memref<1x49x8x128xf32, #tpu.memory_space<vmem>>, vector<1x1x8x128xf32>
    %485 = vector.shape_cast %484 : vector<1x1x8x128xf32> to vector<8x128xf32>
    %486 = arith.addf %485, %471 : vector<8x128xf32>
    %c0_360 = arith.constant 0 : index
    %c36_361 = arith.constant 36 : index
    %c0_362 = arith.constant 0 : index
    %c0_363 = arith.constant 0 : index
    %487 = vector.load %arg4[%c0_360, %c36_361, %c0_362, %c0_363] : memref<1x49x8x128xf32, #tpu.memory_space<vmem>>, vector<1x1x8x128xf32>
    %488 = vector.shape_cast %487 : vector<1x1x8x128xf32> to vector<8x128xf32>
    %489 = vector.shape_cast %486 : vector<8x128xf32> to vector<1x1x8x128xf32>
    tpu.vector_store %arg4[%c0_360, %c36_361, %c0_362, %c0_363], %489 {strides = array<i32>} : memref<1x49x8x128xf32, #tpu.memory_space<vmem>>, vector<1x1x8x128xf32>,
    %cst_364 = arith.constant 0.000000e+00 : f32
    %490 = vector.broadcast %cst_364 : f32 to vector<8x128xf32>
    %cst_365 = arith.constant 0.000000e+00 : f32
    %491 = vector.broadcast %cst_365 : f32 to vector<8x128xf32>
    %cst_366 = arith.constant 0.000000e+00 : f32
    %492 = vector.broadcast %cst_366 : f32 to vector<8x128xf32>
    %c0_367 = arith.constant 0 : index
    %c0_368 = arith.constant 0 : index
    %493 = vector.load %arg5[%c0_367, %c0_368] : memref<8x128xf32, #tpu.memory_space<vmem>>, vector<8x128xf32>
    %cst_369 = arith.constant 0.807142853 : f32
    %494 = vector.broadcast %cst_369 : f32 to vector<8x128xf32>
    %495 = arith.cmpf ole, %493, %494 : vector<8x128xf32>
    %cst_370 = arith.constant 1.000000e+00 : f32
    %cst_371 = arith.constant 0.000000e+00 : f32
    %496 = vector.broadcast %cst_370 : f32 to vector<8x128xf32>
    %497 = vector.broadcast %cst_371 : f32 to vector<8x128xf32>
    %498 = arith.select %495, %496, %497 : vector<8x128xi1>, vector<8x128xf32>
    %499 = arith.addf %490, %498 : vector<8x128xf32>
    %c0_372 = arith.constant 0 : index
    %c0_373 = arith.constant 0 : index
    %500 = vector.load %arg6[%c0_372, %c0_373] : memref<8x128xf32, #tpu.memory_space<vmem>>, vector<8x128xf32>
    %cst_374 = arith.constant 0.000000e+00 : f32
    %501 = vector.broadcast %cst_374 : f32 to vector<8x128xf32>
    %502 = arith.select %495, %500, %501 : vector<8x128xi1>, vector<8x128xf32>
    %503 = arith.addf %491, %502 : vector<8x128xf32>
    %c0_375 = arith.constant 0 : index
    %c0_376 = arith.constant 0 : index
    %504 = vector.load %arg7[%c0_375, %c0_376] : memref<8x128xf32, #tpu.memory_space<vmem>>, vector<8x128xf32>
    %cst_377 = arith.constant 0.000000e+00 : f32
    %505 = vector.broadcast %cst_377 : f32 to vector<8x128xf32>
    %506 = arith.select %495, %504, %505 : vector<8x128xi1>, vector<8x128xf32>
    %507 = arith.addf %492, %506 : vector<8x128xf32>
    %c0_378 = arith.constant 0 : index
    %c5_379 = arith.constant 5 : index
    %c0_380 = arith.constant 0 : index
    %c0_381 = arith.constant 0 : index
    %508 = vector.load %arg4[%c0_378, %c5_379, %c0_380, %c0_381] : memref<1x49x8x128xf32, #tpu.memory_space<vmem>>, vector<1x1x8x128xf32>
    %509 = vector.shape_cast %508 : vector<1x1x8x128xf32> to vector<8x128xf32>
    %510 = arith.addf %509, %499 : vector<8x128xf32>
    %c0_382 = arith.constant 0 : index
    %c5_383 = arith.constant 5 : index
    %c0_384 = arith.constant 0 : index
    %c0_385 = arith.constant 0 : index
    %511 = vector.load %arg4[%c0_382, %c5_383, %c0_384, %c0_385] : memref<1x49x8x128xf32, #tpu.memory_space<vmem>>, vector<1x1x8x128xf32>
    %512 = vector.shape_cast %511 : vector<1x1x8x128xf32> to vector<8x128xf32>
    %513 = vector.shape_cast %510 : vector<8x128xf32> to vector<1x1x8x128xf32>
    tpu.vector_store %arg4[%c0_382, %c5_383, %c0_384, %c0_385], %513 {strides = array<i32>} : memref<1x49x8x128xf32, #tpu.memory_space<vmem>>, vector<1x1x8x128xf32>,
    %c0_386 = arith.constant 0 : index
    %c21 = arith.constant 21 : index
    %c0_387 = arith.constant 0 : index
    %c0_388 = arith.constant 0 : index
    %514 = vector.load %arg4[%c0_386, %c21, %c0_387, %c0_388] : memref<1x49x8x128xf32, #tpu.memory_space<vmem>>, vector<1x1x8x128xf32>
    %515 = vector.shape_cast %514 : vector<1x1x8x128xf32> to vector<8x128xf32>
    %516 = arith.addf %515, %503 : vector<8x128xf32>
    %c0_389 = arith.constant 0 : index
    %c21_390 = arith.constant 21 : index
    %c0_391 = arith.constant 0 : index
    %c0_392 = arith.constant 0 : index
    %517 = vector.load %arg4[%c0_389, %c21_390, %c0_391, %c0_392] : memref<1x49x8x128xf32, #tpu.memory_space<vmem>>, vector<1x1x8x128xf32>
    %518 = vector.shape_cast %517 : vector<1x1x8x128xf32> to vector<8x128xf32>
    %519 = vector.shape_cast %516 : vector<8x128xf32> to vector<1x1x8x128xf32>
    tpu.vector_store %arg4[%c0_389, %c21_390, %c0_391, %c0_392], %519 {strides = array<i32>} : memref<1x49x8x128xf32, #tpu.memory_space<vmem>>, vector<1x1x8x128xf32>,
    %c0_393 = arith.constant 0 : index
    %c37 = arith.constant 37 : index
    %c0_394 = arith.constant 0 : index
    %c0_395 = arith.constant 0 : index
    %520 = vector.load %arg4[%c0_393, %c37, %c0_394, %c0_395] : memref<1x49x8x128xf32, #tpu.memory_space<vmem>>, vector<1x1x8x128xf32>
    %521 = vector.shape_cast %520 : vector<1x1x8x128xf32> to vector<8x128xf32>
    %522 = arith.addf %521, %507 : vector<8x128xf32>
    %c0_396 = arith.constant 0 : index
    %c37_397 = arith.constant 37 : index
    %c0_398 = arith.constant 0 : index
    %c0_399 = arith.constant 0 : index
    %523 = vector.load %arg4[%c0_396, %c37_397, %c0_398, %c0_399] : memref<1x49x8x128xf32, #tpu.memory_space<vmem>>, vector<1x1x8x128xf32>
    %524 = vector.shape_cast %523 : vector<1x1x8x128xf32> to vector<8x128xf32>
    %525 = vector.shape_cast %522 : vector<8x128xf32> to vector<1x1x8x128xf32>
    tpu.vector_store %arg4[%c0_396, %c37_397, %c0_398, %c0_399], %525 {strides = array<i32>} : memref<1x49x8x128xf32, #tpu.memory_space<vmem>>, vector<1x1x8x128xf32>,
    %cst_400 = arith.constant 0.000000e+00 : f32
    %526 = vector.broadcast %cst_400 : f32 to vector<8x128xf32>
    %cst_401 = arith.constant 0.000000e+00 : f32
    %527 = vector.broadcast %cst_401 : f32 to vector<8x128xf32>
    %cst_402 = arith.constant 0.000000e+00 : f32
    %528 = vector.broadcast %cst_402 : f32 to vector<8x128xf32>
    %c0_403 = arith.constant 0 : index
    %c0_404 = arith.constant 0 : index
    %529 = vector.load %arg5[%c0_403, %c0_404] : memref<8x128xf32, #tpu.memory_space<vmem>>, vector<8x128xf32>
    %cst_405 = arith.constant 0.828571438 : f32
    %530 = vector.broadcast %cst_405 : f32 to vector<8x128xf32>
    %531 = arith.cmpf ole, %529, %530 : vector<8x128xf32>
    %cst_406 = arith.constant 1.000000e+00 : f32
    %cst_407 = arith.constant 0.000000e+00 : f32
    %532 = vector.broadcast %cst_406 : f32 to vector<8x128xf32>
    %533 = vector.broadcast %cst_407 : f32 to vector<8x128xf32>
    %534 = arith.select %531, %532, %533 : vector<8x128xi1>, vector<8x128xf32>
    %535 = arith.addf %526, %534 : vector<8x128xf32>
    %c0_408 = arith.constant 0 : index
    %c0_409 = arith.constant 0 : index
    %536 = vector.load %arg6[%c0_408, %c0_409] : memref<8x128xf32, #tpu.memory_space<vmem>>, vector<8x128xf32>
    %cst_410 = arith.constant 0.000000e+00 : f32
    %537 = vector.broadcast %cst_410 : f32 to vector<8x128xf32>
    %538 = arith.select %531, %536, %537 : vector<8x128xi1>, vector<8x128xf32>
    %539 = arith.addf %527, %538 : vector<8x128xf32>
    %c0_411 = arith.constant 0 : index
    %c0_412 = arith.constant 0 : index
    %540 = vector.load %arg7[%c0_411, %c0_412] : memref<8x128xf32, #tpu.memory_space<vmem>>, vector<8x128xf32>
    %cst_413 = arith.constant 0.000000e+00 : f32
    %541 = vector.broadcast %cst_413 : f32 to vector<8x128xf32>
    %542 = arith.select %531, %540, %541 : vector<8x128xi1>, vector<8x128xf32>
    %543 = arith.addf %528, %542 : vector<8x128xf32>
    %c0_414 = arith.constant 0 : index
    %c6_415 = arith.constant 6 : index
    %c0_416 = arith.constant 0 : index
    %c0_417 = arith.constant 0 : index
    %544 = vector.load %arg4[%c0_414, %c6_415, %c0_416, %c0_417] : memref<1x49x8x128xf32, #tpu.memory_space<vmem>>, vector<1x1x8x128xf32>
    %545 = vector.shape_cast %544 : vector<1x1x8x128xf32> to vector<8x128xf32>
    %546 = arith.addf %545, %535 : vector<8x128xf32>
    %c0_418 = arith.constant 0 : index
    %c6_419 = arith.constant 6 : index
    %c0_420 = arith.constant 0 : index
    %c0_421 = arith.constant 0 : index
    %547 = vector.load %arg4[%c0_418, %c6_419, %c0_420, %c0_421] : memref<1x49x8x128xf32, #tpu.memory_space<vmem>>, vector<1x1x8x128xf32>
    %548 = vector.shape_cast %547 : vector<1x1x8x128xf32> to vector<8x128xf32>
    %549 = vector.shape_cast %546 : vector<8x128xf32> to vector<1x1x8x128xf32>
    tpu.vector_store %arg4[%c0_418, %c6_419, %c0_420, %c0_421], %549 {strides = array<i32>} : memref<1x49x8x128xf32, #tpu.memory_space<vmem>>, vector<1x1x8x128xf32>,
    %c0_422 = arith.constant 0 : index
    %c22 = arith.constant 22 : index
    %c0_423 = arith.constant 0 : index
    %c0_424 = arith.constant 0 : index
    %550 = vector.load %arg4[%c0_422, %c22, %c0_423, %c0_424] : memref<1x49x8x128xf32, #tpu.memory_space<vmem>>, vector<1x1x8x128xf32>
    %551 = vector.shape_cast %550 : vector<1x1x8x128xf32> to vector<8x128xf32>
    %552 = arith.addf %551, %539 : vector<8x128xf32>
    %c0_425 = arith.constant 0 : index
    %c22_426 = arith.constant 22 : index
    %c0_427 = arith.constant 0 : index
    %c0_428 = arith.constant 0 : index
    %553 = vector.load %arg4[%c0_425, %c22_426, %c0_427, %c0_428] : memref<1x49x8x128xf32, #tpu.memory_space<vmem>>, vector<1x1x8x128xf32>
    %554 = vector.shape_cast %553 : vector<1x1x8x128xf32> to vector<8x128xf32>
    %555 = vector.shape_cast %552 : vector<8x128xf32> to vector<1x1x8x128xf32>
    tpu.vector_store %arg4[%c0_425, %c22_426, %c0_427, %c0_428], %555 {strides = array<i32>} : memref<1x49x8x128xf32, #tpu.memory_space<vmem>>, vector<1x1x8x128xf32>,
    %c0_429 = arith.constant 0 : index
    %c38 = arith.constant 38 : index
    %c0_430 = arith.constant 0 : index
    %c0_431 = arith.constant 0 : index
    %556 = vector.load %arg4[%c0_429, %c38, %c0_430, %c0_431] : memref<1x49x8x128xf32, #tpu.memory_space<vmem>>, vector<1x1x8x128xf32>
    %557 = vector.shape_cast %556 : vector<1x1x8x128xf32> to vector<8x128xf32>
    %558 = arith.addf %557, %543 : vector<8x128xf32>
    %c0_432 = arith.constant 0 : index
    %c38_433 = arith.constant 38 : index
    %c0_434 = arith.constant 0 : index
    %c0_435 = arith.constant 0 : index
    %559 = vector.load %arg4[%c0_432, %c38_433, %c0_434, %c0_435] : memref<1x49x8x128xf32, #tpu.memory_space<vmem>>, vector<1x1x8x128xf32>
    %560 = vector.shape_cast %559 : vector<1x1x8x128xf32> to vector<8x128xf32>
    %561 = vector.shape_cast %558 : vector<8x128xf32> to vector<1x1x8x128xf32>
    tpu.vector_store %arg4[%c0_432, %c38_433, %c0_434, %c0_435], %561 {strides = array<i32>} : memref<1x49x8x128xf32, #tpu.memory_space<vmem>>, vector<1x1x8x128xf32>,
    %cst_436 = arith.constant 0.000000e+00 : f32
    %562 = vector.broadcast %cst_436 : f32 to vector<8x128xf32>
    %cst_437 = arith.constant 0.000000e+00 : f32
    %563 = vector.broadcast %cst_437 : f32 to vector<8x128xf32>
    %cst_438 = arith.constant 0.000000e+00 : f32
    %564 = vector.broadcast %cst_438 : f32 to vector<8x128xf32>
    %c0_439 = arith.constant 0 : index
    %c0_440 = arith.constant 0 : index
    %565 = vector.load %arg5[%c0_439, %c0_440] : memref<8x128xf32, #tpu.memory_space<vmem>>, vector<8x128xf32>
    %cst_441 = arith.constant 8.500000e-01 : f32
    %566 = vector.broadcast %cst_441 : f32 to vector<8x128xf32>
    %567 = arith.cmpf ole, %565, %566 : vector<8x128xf32>
    %cst_442 = arith.constant 1.000000e+00 : f32
    %cst_443 = arith.constant 0.000000e+00 : f32
    %568 = vector.broadcast %cst_442 : f32 to vector<8x128xf32>
    %569 = vector.broadcast %cst_443 : f32 to vector<8x128xf32>
    %570 = arith.select %567, %568, %569 : vector<8x128xi1>, vector<8x128xf32>
    %571 = arith.addf %562, %570 : vector<8x128xf32>
    %c0_444 = arith.constant 0 : index
    %c0_445 = arith.constant 0 : index
    %572 = vector.load %arg6[%c0_444, %c0_445] : memref<8x128xf32, #tpu.memory_space<vmem>>, vector<8x128xf32>
    %cst_446 = arith.constant 0.000000e+00 : f32
    %573 = vector.broadcast %cst_446 : f32 to vector<8x128xf32>
    %574 = arith.select %567, %572, %573 : vector<8x128xi1>, vector<8x128xf32>
    %575 = arith.addf %563, %574 : vector<8x128xf32>
    %c0_447 = arith.constant 0 : index
    %c0_448 = arith.constant 0 : index
    %576 = vector.load %arg7[%c0_447, %c0_448] : memref<8x128xf32, #tpu.memory_space<vmem>>, vector<8x128xf32>
    %cst_449 = arith.constant 0.000000e+00 : f32
    %577 = vector.broadcast %cst_449 : f32 to vector<8x128xf32>
    %578 = arith.select %567, %576, %577 : vector<8x128xi1>, vector<8x128xf32>
    %579 = arith.addf %564, %578 : vector<8x128xf32>
    %c0_450 = arith.constant 0 : index
    %c7_451 = arith.constant 7 : index
    %c0_452 = arith.constant 0 : index
    %c0_453 = arith.constant 0 : index
    %580 = vector.load %arg4[%c0_450, %c7_451, %c0_452, %c0_453] : memref<1x49x8x128xf32, #tpu.memory_space<vmem>>, vector<1x1x8x128xf32>
    %581 = vector.shape_cast %580 : vector<1x1x8x128xf32> to vector<8x128xf32>
    %582 = arith.addf %581, %571 : vector<8x128xf32>
    %c0_454 = arith.constant 0 : index
    %c7_455 = arith.constant 7 : index
    %c0_456 = arith.constant 0 : index
    %c0_457 = arith.constant 0 : index
    %583 = vector.load %arg4[%c0_454, %c7_455, %c0_456, %c0_457] : memref<1x49x8x128xf32, #tpu.memory_space<vmem>>, vector<1x1x8x128xf32>
    %584 = vector.shape_cast %583 : vector<1x1x8x128xf32> to vector<8x128xf32>
    %585 = vector.shape_cast %582 : vector<8x128xf32> to vector<1x1x8x128xf32>
    tpu.vector_store %arg4[%c0_454, %c7_455, %c0_456, %c0_457], %585 {strides = array<i32>} : memref<1x49x8x128xf32, #tpu.memory_space<vmem>>, vector<1x1x8x128xf32>,
    %c0_458 = arith.constant 0 : index
    %c23 = arith.constant 23 : index
    %c0_459 = arith.constant 0 : index
    %c0_460 = arith.constant 0 : index
    %586 = vector.load %arg4[%c0_458, %c23, %c0_459, %c0_460] : memref<1x49x8x128xf32, #tpu.memory_space<vmem>>, vector<1x1x8x128xf32>
    %587 = vector.shape_cast %586 : vector<1x1x8x128xf32> to vector<8x128xf32>
    %588 = arith.addf %587, %575 : vector<8x128xf32>
    %c0_461 = arith.constant 0 : index
    %c23_462 = arith.constant 23 : index
    %c0_463 = arith.constant 0 : index
    %c0_464 = arith.constant 0 : index
    %589 = vector.load %arg4[%c0_461, %c23_462, %c0_463, %c0_464] : memref<1x49x8x128xf32, #tpu.memory_space<vmem>>, vector<1x1x8x128xf32>
    %590 = vector.shape_cast %589 : vector<1x1x8x128xf32> to vector<8x128xf32>
    %591 = vector.shape_cast %588 : vector<8x128xf32> to vector<1x1x8x128xf32>
    tpu.vector_store %arg4[%c0_461, %c23_462, %c0_463, %c0_464], %591 {strides = array<i32>} : memref<1x49x8x128xf32, #tpu.memory_space<vmem>>, vector<1x1x8x128xf32>,
    %c0_465 = arith.constant 0 : index
    %c39 = arith.constant 39 : index
    %c0_466 = arith.constant 0 : index
    %c0_467 = arith.constant 0 : index
    %592 = vector.load %arg4[%c0_465, %c39, %c0_466, %c0_467] : memref<1x49x8x128xf32, #tpu.memory_space<vmem>>, vector<1x1x8x128xf32>
    %593 = vector.shape_cast %592 : vector<1x1x8x128xf32> to vector<8x128xf32>
    %594 = arith.addf %593, %579 : vector<8x128xf32>
    %c0_468 = arith.constant 0 : index
    %c39_469 = arith.constant 39 : index
    %c0_470 = arith.constant 0 : index
    %c0_471 = arith.constant 0 : index
    %595 = vector.load %arg4[%c0_468, %c39_469, %c0_470, %c0_471] : memref<1x49x8x128xf32, #tpu.memory_space<vmem>>, vector<1x1x8x128xf32>
    %596 = vector.shape_cast %595 : vector<1x1x8x128xf32> to vector<8x128xf32>
    %597 = vector.shape_cast %594 : vector<8x128xf32> to vector<1x1x8x128xf32>
    tpu.vector_store %arg4[%c0_468, %c39_469, %c0_470, %c0_471], %597 {strides = array<i32>} : memref<1x49x8x128xf32, #tpu.memory_space<vmem>>, vector<1x1x8x128xf32>,
    %cst_472 = arith.constant 0.000000e+00 : f32
    %598 = vector.broadcast %cst_472 : f32 to vector<8x128xf32>
    %cst_473 = arith.constant 0.000000e+00 : f32
    %599 = vector.broadcast %cst_473 : f32 to vector<8x128xf32>
    %cst_474 = arith.constant 0.000000e+00 : f32
    %600 = vector.broadcast %cst_474 : f32 to vector<8x128xf32>
    %c0_475 = arith.constant 0 : index
    %c0_476 = arith.constant 0 : index
    %601 = vector.load %arg5[%c0_475, %c0_476] : memref<8x128xf32, #tpu.memory_space<vmem>>, vector<8x128xf32>
    %cst_477 = arith.constant 0.871428549 : f32
    %602 = vector.broadcast %cst_477 : f32 to vector<8x128xf32>
    %603 = arith.cmpf ole, %601, %602 : vector<8x128xf32>
    %cst_478 = arith.constant 1.000000e+00 : f32
    %cst_479 = arith.constant 0.000000e+00 : f32
    %604 = vector.broadcast %cst_478 : f32 to vector<8x128xf32>
    %605 = vector.broadcast %cst_479 : f32 to vector<8x128xf32>
    %606 = arith.select %603, %604, %605 : vector<8x128xi1>, vector<8x128xf32>
    %607 = arith.addf %598, %606 : vector<8x128xf32>
    %c0_480 = arith.constant 0 : index
    %c0_481 = arith.constant 0 : index
    %608 = vector.load %arg6[%c0_480, %c0_481] : memref<8x128xf32, #tpu.memory_space<vmem>>, vector<8x128xf32>
    %cst_482 = arith.constant 0.000000e+00 : f32
    %609 = vector.broadcast %cst_482 : f32 to vector<8x128xf32>
    %610 = arith.select %603, %608, %609 : vector<8x128xi1>, vector<8x128xf32>
    %611 = arith.addf %599, %610 : vector<8x128xf32>
    %c0_483 = arith.constant 0 : index
    %c0_484 = arith.constant 0 : index
    %612 = vector.load %arg7[%c0_483, %c0_484] : memref<8x128xf32, #tpu.memory_space<vmem>>, vector<8x128xf32>
    %cst_485 = arith.constant 0.000000e+00 : f32
    %613 = vector.broadcast %cst_485 : f32 to vector<8x128xf32>
    %614 = arith.select %603, %612, %613 : vector<8x128xi1>, vector<8x128xf32>
    %615 = arith.addf %600, %614 : vector<8x128xf32>
    %c0_486 = arith.constant 0 : index
    %c8_487 = arith.constant 8 : index
    %c0_488 = arith.constant 0 : index
    %c0_489 = arith.constant 0 : index
    %616 = vector.load %arg4[%c0_486, %c8_487, %c0_488, %c0_489] : memref<1x49x8x128xf32, #tpu.memory_space<vmem>>, vector<1x1x8x128xf32>
    %617 = vector.shape_cast %616 : vector<1x1x8x128xf32> to vector<8x128xf32>
    %618 = arith.addf %617, %607 : vector<8x128xf32>
    %c0_490 = arith.constant 0 : index
    %c8_491 = arith.constant 8 : index
    %c0_492 = arith.constant 0 : index
    %c0_493 = arith.constant 0 : index
    %619 = vector.load %arg4[%c0_490, %c8_491, %c0_492, %c0_493] : memref<1x49x8x128xf32, #tpu.memory_space<vmem>>, vector<1x1x8x128xf32>
    %620 = vector.shape_cast %619 : vector<1x1x8x128xf32> to vector<8x128xf32>
    %621 = vector.shape_cast %618 : vector<8x128xf32> to vector<1x1x8x128xf32>
    tpu.vector_store %arg4[%c0_490, %c8_491, %c0_492, %c0_493], %621 {strides = array<i32>} : memref<1x49x8x128xf32, #tpu.memory_space<vmem>>, vector<1x1x8x128xf32>,
    %c0_494 = arith.constant 0 : index
    %c24 = arith.constant 24 : index
    %c0_495 = arith.constant 0 : index
    %c0_496 = arith.constant 0 : index
    %622 = vector.load %arg4[%c0_494, %c24, %c0_495, %c0_496] : memref<1x49x8x128xf32, #tpu.memory_space<vmem>>, vector<1x1x8x128xf32>
    %623 = vector.shape_cast %622 : vector<1x1x8x128xf32> to vector<8x128xf32>
    %624 = arith.addf %623, %611 : vector<8x128xf32>
    %c0_497 = arith.constant 0 : index
    %c24_498 = arith.constant 24 : index
    %c0_499 = arith.constant 0 : index
    %c0_500 = arith.constant 0 : index
    %625 = vector.load %arg4[%c0_497, %c24_498, %c0_499, %c0_500] : memref<1x49x8x128xf32, #tpu.memory_space<vmem>>, vector<1x1x8x128xf32>
    %626 = vector.shape_cast %625 : vector<1x1x8x128xf32> to vector<8x128xf32>
    %627 = vector.shape_cast %624 : vector<8x128xf32> to vector<1x1x8x128xf32>
    tpu.vector_store %arg4[%c0_497, %c24_498, %c0_499, %c0_500], %627 {strides = array<i32>} : memref<1x49x8x128xf32, #tpu.memory_space<vmem>>, vector<1x1x8x128xf32>,
    %c0_501 = arith.constant 0 : index
    %c40 = arith.constant 40 : index
    %c0_502 = arith.constant 0 : index
    %c0_503 = arith.constant 0 : index
    %628 = vector.load %arg4[%c0_501, %c40, %c0_502, %c0_503] : memref<1x49x8x128xf32, #tpu.memory_space<vmem>>, vector<1x1x8x128xf32>
    %629 = vector.shape_cast %628 : vector<1x1x8x128xf32> to vector<8x128xf32>
    %630 = arith.addf %629, %615 : vector<8x128xf32>
    %c0_504 = arith.constant 0 : index
    %c40_505 = arith.constant 40 : index
    %c0_506 = arith.constant 0 : index
    %c0_507 = arith.constant 0 : index
    %631 = vector.load %arg4[%c0_504, %c40_505, %c0_506, %c0_507] : memref<1x49x8x128xf32, #tpu.memory_space<vmem>>, vector<1x1x8x128xf32>
    %632 = vector.shape_cast %631 : vector<1x1x8x128xf32> to vector<8x128xf32>
    %633 = vector.shape_cast %630 : vector<8x128xf32> to vector<1x1x8x128xf32>
    tpu.vector_store %arg4[%c0_504, %c40_505, %c0_506, %c0_507], %633 {strides = array<i32>} : memref<1x49x8x128xf32, #tpu.memory_space<vmem>>, vector<1x1x8x128xf32>,
    %cst_508 = arith.constant 0.000000e+00 : f32
    %634 = vector.broadcast %cst_508 : f32 to vector<8x128xf32>
    %cst_509 = arith.constant 0.000000e+00 : f32
    %635 = vector.broadcast %cst_509 : f32 to vector<8x128xf32>
    %cst_510 = arith.constant 0.000000e+00 : f32
    %636 = vector.broadcast %cst_510 : f32 to vector<8x128xf32>
    %c0_511 = arith.constant 0 : index
    %c0_512 = arith.constant 0 : index
    %637 = vector.load %arg5[%c0_511, %c0_512] : memref<8x128xf32, #tpu.memory_space<vmem>>, vector<8x128xf32>
    %cst_513 = arith.constant 0.892857134 : f32
    %638 = vector.broadcast %cst_513 : f32 to vector<8x128xf32>
    %639 = arith.cmpf ole, %637, %638 : vector<8x128xf32>
    %cst_514 = arith.constant 1.000000e+00 : f32
    %cst_515 = arith.constant 0.000000e+00 : f32
    %640 = vector.broadcast %cst_514 : f32 to vector<8x128xf32>
    %641 = vector.broadcast %cst_515 : f32 to vector<8x128xf32>
    %642 = arith.select %639, %640, %641 : vector<8x128xi1>, vector<8x128xf32>
    %643 = arith.addf %634, %642 : vector<8x128xf32>
    %c0_516 = arith.constant 0 : index
    %c0_517 = arith.constant 0 : index
    %644 = vector.load %arg6[%c0_516, %c0_517] : memref<8x128xf32, #tpu.memory_space<vmem>>, vector<8x128xf32>
    %cst_518 = arith.constant 0.000000e+00 : f32
    %645 = vector.broadcast %cst_518 : f32 to vector<8x128xf32>
    %646 = arith.select %639, %644, %645 : vector<8x128xi1>, vector<8x128xf32>
    %647 = arith.addf %635, %646 : vector<8x128xf32>
    %c0_519 = arith.constant 0 : index
    %c0_520 = arith.constant 0 : index
    %648 = vector.load %arg7[%c0_519, %c0_520] : memref<8x128xf32, #tpu.memory_space<vmem>>, vector<8x128xf32>
    %cst_521 = arith.constant 0.000000e+00 : f32
    %649 = vector.broadcast %cst_521 : f32 to vector<8x128xf32>
    %650 = arith.select %639, %648, %649 : vector<8x128xi1>, vector<8x128xf32>
    %651 = arith.addf %636, %650 : vector<8x128xf32>
    %c0_522 = arith.constant 0 : index
    %c9_523 = arith.constant 9 : index
    %c0_524 = arith.constant 0 : index
    %c0_525 = arith.constant 0 : index
    %652 = vector.load %arg4[%c0_522, %c9_523, %c0_524, %c0_525] : memref<1x49x8x128xf32, #tpu.memory_space<vmem>>, vector<1x1x8x128xf32>
    %653 = vector.shape_cast %652 : vector<1x1x8x128xf32> to vector<8x128xf32>
    %654 = arith.addf %653, %643 : vector<8x128xf32>
    %c0_526 = arith.constant 0 : index
    %c9_527 = arith.constant 9 : index
    %c0_528 = arith.constant 0 : index
    %c0_529 = arith.constant 0 : index
    %655 = vector.load %arg4[%c0_526, %c9_527, %c0_528, %c0_529] : memref<1x49x8x128xf32, #tpu.memory_space<vmem>>, vector<1x1x8x128xf32>
    %656 = vector.shape_cast %655 : vector<1x1x8x128xf32> to vector<8x128xf32>
    %657 = vector.shape_cast %654 : vector<8x128xf32> to vector<1x1x8x128xf32>
    tpu.vector_store %arg4[%c0_526, %c9_527, %c0_528, %c0_529], %657 {strides = array<i32>} : memref<1x49x8x128xf32, #tpu.memory_space<vmem>>, vector<1x1x8x128xf32>,
    %c0_530 = arith.constant 0 : index
    %c25 = arith.constant 25 : index
    %c0_531 = arith.constant 0 : index
    %c0_532 = arith.constant 0 : index
    %658 = vector.load %arg4[%c0_530, %c25, %c0_531, %c0_532] : memref<1x49x8x128xf32, #tpu.memory_space<vmem>>, vector<1x1x8x128xf32>
    %659 = vector.shape_cast %658 : vector<1x1x8x128xf32> to vector<8x128xf32>
    %660 = arith.addf %659, %647 : vector<8x128xf32>
    %c0_533 = arith.constant 0 : index
    %c25_534 = arith.constant 25 : index
    %c0_535 = arith.constant 0 : index
    %c0_536 = arith.constant 0 : index
    %661 = vector.load %arg4[%c0_533, %c25_534, %c0_535, %c0_536] : memref<1x49x8x128xf32, #tpu.memory_space<vmem>>, vector<1x1x8x128xf32>
    %662 = vector.shape_cast %661 : vector<1x1x8x128xf32> to vector<8x128xf32>
    %663 = vector.shape_cast %660 : vector<8x128xf32> to vector<1x1x8x128xf32>
    tpu.vector_store %arg4[%c0_533, %c25_534, %c0_535, %c0_536], %663 {strides = array<i32>} : memref<1x49x8x128xf32, #tpu.memory_space<vmem>>, vector<1x1x8x128xf32>,
    %c0_537 = arith.constant 0 : index
    %c41 = arith.constant 41 : index
    %c0_538 = arith.constant 0 : index
    %c0_539 = arith.constant 0 : index
    %664 = vector.load %arg4[%c0_537, %c41, %c0_538, %c0_539] : memref<1x49x8x128xf32, #tpu.memory_space<vmem>>, vector<1x1x8x128xf32>
    %665 = vector.shape_cast %664 : vector<1x1x8x128xf32> to vector<8x128xf32>
    %666 = arith.addf %665, %651 : vector<8x128xf32>
    %c0_540 = arith.constant 0 : index
    %c41_541 = arith.constant 41 : index
    %c0_542 = arith.constant 0 : index
    %c0_543 = arith.constant 0 : index
    %667 = vector.load %arg4[%c0_540, %c41_541, %c0_542, %c0_543] : memref<1x49x8x128xf32, #tpu.memory_space<vmem>>, vector<1x1x8x128xf32>
    %668 = vector.shape_cast %667 : vector<1x1x8x128xf32> to vector<8x128xf32>
    %669 = vector.shape_cast %666 : vector<8x128xf32> to vector<1x1x8x128xf32>
    tpu.vector_store %arg4[%c0_540, %c41_541, %c0_542, %c0_543], %669 {strides = array<i32>} : memref<1x49x8x128xf32, #tpu.memory_space<vmem>>, vector<1x1x8x128xf32>,
    %cst_544 = arith.constant 0.000000e+00 : f32
    %670 = vector.broadcast %cst_544 : f32 to vector<8x128xf32>
    %cst_545 = arith.constant 0.000000e+00 : f32
    %671 = vector.broadcast %cst_545 : f32 to vector<8x128xf32>
    %cst_546 = arith.constant 0.000000e+00 : f32
    %672 = vector.broadcast %cst_546 : f32 to vector<8x128xf32>
    %c0_547 = arith.constant 0 : index
    %c0_548 = arith.constant 0 : index
    %673 = vector.load %arg5[%c0_547, %c0_548] : memref<8x128xf32, #tpu.memory_space<vmem>>, vector<8x128xf32>
    %cst_549 = arith.constant 0.914285719 : f32
    %674 = vector.broadcast %cst_549 : f32 to vector<8x128xf32>
    %675 = arith.cmpf ole, %673, %674 : vector<8x128xf32>
    %cst_550 = arith.constant 1.000000e+00 : f32
    %cst_551 = arith.constant 0.000000e+00 : f32
    %676 = vector.broadcast %cst_550 : f32 to vector<8x128xf32>
    %677 = vector.broadcast %cst_551 : f32 to vector<8x128xf32>
    %678 = arith.select %675, %676, %677 : vector<8x128xi1>, vector<8x128xf32>
    %679 = arith.addf %670, %678 : vector<8x128xf32>
    %c0_552 = arith.constant 0 : index
    %c0_553 = arith.constant 0 : index
    %680 = vector.load %arg6[%c0_552, %c0_553] : memref<8x128xf32, #tpu.memory_space<vmem>>, vector<8x128xf32>
    %cst_554 = arith.constant 0.000000e+00 : f32
    %681 = vector.broadcast %cst_554 : f32 to vector<8x128xf32>
    %682 = arith.select %675, %680, %681 : vector<8x128xi1>, vector<8x128xf32>
    %683 = arith.addf %671, %682 : vector<8x128xf32>
    %c0_555 = arith.constant 0 : index
    %c0_556 = arith.constant 0 : index
    %684 = vector.load %arg7[%c0_555, %c0_556] : memref<8x128xf32, #tpu.memory_space<vmem>>, vector<8x128xf32>
    %cst_557 = arith.constant 0.000000e+00 : f32
    %685 = vector.broadcast %cst_557 : f32 to vector<8x128xf32>
    %686 = arith.select %675, %684, %685 : vector<8x128xi1>, vector<8x128xf32>
    %687 = arith.addf %672, %686 : vector<8x128xf32>
    %c0_558 = arith.constant 0 : index
    %c10_559 = arith.constant 10 : index
    %c0_560 = arith.constant 0 : index
    %c0_561 = arith.constant 0 : index
    %688 = vector.load %arg4[%c0_558, %c10_559, %c0_560, %c0_561] : memref<1x49x8x128xf32, #tpu.memory_space<vmem>>, vector<1x1x8x128xf32>
    %689 = vector.shape_cast %688 : vector<1x1x8x128xf32> to vector<8x128xf32>
    %690 = arith.addf %689, %679 : vector<8x128xf32>
    %c0_562 = arith.constant 0 : index
    %c10_563 = arith.constant 10 : index
    %c0_564 = arith.constant 0 : index
    %c0_565 = arith.constant 0 : index
    %691 = vector.load %arg4[%c0_562, %c10_563, %c0_564, %c0_565] : memref<1x49x8x128xf32, #tpu.memory_space<vmem>>, vector<1x1x8x128xf32>
    %692 = vector.shape_cast %691 : vector<1x1x8x128xf32> to vector<8x128xf32>
    %693 = vector.shape_cast %690 : vector<8x128xf32> to vector<1x1x8x128xf32>
    tpu.vector_store %arg4[%c0_562, %c10_563, %c0_564, %c0_565], %693 {strides = array<i32>} : memref<1x49x8x128xf32, #tpu.memory_space<vmem>>, vector<1x1x8x128xf32>,
    %c0_566 = arith.constant 0 : index
    %c26 = arith.constant 26 : index
    %c0_567 = arith.constant 0 : index
    %c0_568 = arith.constant 0 : index
    %694 = vector.load %arg4[%c0_566, %c26, %c0_567, %c0_568] : memref<1x49x8x128xf32, #tpu.memory_space<vmem>>, vector<1x1x8x128xf32>
    %695 = vector.shape_cast %694 : vector<1x1x8x128xf32> to vector<8x128xf32>
    %696 = arith.addf %695, %683 : vector<8x128xf32>
    %c0_569 = arith.constant 0 : index
    %c26_570 = arith.constant 26 : index
    %c0_571 = arith.constant 0 : index
    %c0_572 = arith.constant 0 : index
    %697 = vector.load %arg4[%c0_569, %c26_570, %c0_571, %c0_572] : memref<1x49x8x128xf32, #tpu.memory_space<vmem>>, vector<1x1x8x128xf32>
    %698 = vector.shape_cast %697 : vector<1x1x8x128xf32> to vector<8x128xf32>
    %699 = vector.shape_cast %696 : vector<8x128xf32> to vector<1x1x8x128xf32>
    tpu.vector_store %arg4[%c0_569, %c26_570, %c0_571, %c0_572], %699 {strides = array<i32>} : memref<1x49x8x128xf32, #tpu.memory_space<vmem>>, vector<1x1x8x128xf32>,
    %c0_573 = arith.constant 0 : index
    %c42 = arith.constant 42 : index
    %c0_574 = arith.constant 0 : index
    %c0_575 = arith.constant 0 : index
    %700 = vector.load %arg4[%c0_573, %c42, %c0_574, %c0_575] : memref<1x49x8x128xf32, #tpu.memory_space<vmem>>, vector<1x1x8x128xf32>
    %701 = vector.shape_cast %700 : vector<1x1x8x128xf32> to vector<8x128xf32>
    %702 = arith.addf %701, %687 : vector<8x128xf32>
    %c0_576 = arith.constant 0 : index
    %c42_577 = arith.constant 42 : index
    %c0_578 = arith.constant 0 : index
    %c0_579 = arith.constant 0 : index
    %703 = vector.load %arg4[%c0_576, %c42_577, %c0_578, %c0_579] : memref<1x49x8x128xf32, #tpu.memory_space<vmem>>, vector<1x1x8x128xf32>
    %704 = vector.shape_cast %703 : vector<1x1x8x128xf32> to vector<8x128xf32>
    %705 = vector.shape_cast %702 : vector<8x128xf32> to vector<1x1x8x128xf32>
    tpu.vector_store %arg4[%c0_576, %c42_577, %c0_578, %c0_579], %705 {strides = array<i32>} : memref<1x49x8x128xf32, #tpu.memory_space<vmem>>, vector<1x1x8x128xf32>,
    %cst_580 = arith.constant 0.000000e+00 : f32
    %706 = vector.broadcast %cst_580 : f32 to vector<8x128xf32>
    %cst_581 = arith.constant 0.000000e+00 : f32
    %707 = vector.broadcast %cst_581 : f32 to vector<8x128xf32>
    %cst_582 = arith.constant 0.000000e+00 : f32
    %708 = vector.broadcast %cst_582 : f32 to vector<8x128xf32>
    %c0_583 = arith.constant 0 : index
    %c0_584 = arith.constant 0 : index
    %709 = vector.load %arg5[%c0_583, %c0_584] : memref<8x128xf32, #tpu.memory_space<vmem>>, vector<8x128xf32>
    %cst_585 = arith.constant 0.935714304 : f32
    %710 = vector.broadcast %cst_585 : f32 to vector<8x128xf32>
    %711 = arith.cmpf ole, %709, %710 : vector<8x128xf32>
    %cst_586 = arith.constant 1.000000e+00 : f32
    %cst_587 = arith.constant 0.000000e+00 : f32
    %712 = vector.broadcast %cst_586 : f32 to vector<8x128xf32>
    %713 = vector.broadcast %cst_587 : f32 to vector<8x128xf32>
    %714 = arith.select %711, %712, %713 : vector<8x128xi1>, vector<8x128xf32>
    %715 = arith.addf %706, %714 : vector<8x128xf32>
    %c0_588 = arith.constant 0 : index
    %c0_589 = arith.constant 0 : index
    %716 = vector.load %arg6[%c0_588, %c0_589] : memref<8x128xf32, #tpu.memory_space<vmem>>, vector<8x128xf32>
    %cst_590 = arith.constant 0.000000e+00 : f32
    %717 = vector.broadcast %cst_590 : f32 to vector<8x128xf32>
    %718 = arith.select %711, %716, %717 : vector<8x128xi1>, vector<8x128xf32>
    %719 = arith.addf %707, %718 : vector<8x128xf32>
    %c0_591 = arith.constant 0 : index
    %c0_592 = arith.constant 0 : index
    %720 = vector.load %arg7[%c0_591, %c0_592] : memref<8x128xf32, #tpu.memory_space<vmem>>, vector<8x128xf32>
    %cst_593 = arith.constant 0.000000e+00 : f32
    %721 = vector.broadcast %cst_593 : f32 to vector<8x128xf32>
    %722 = arith.select %711, %720, %721 : vector<8x128xi1>, vector<8x128xf32>
    %723 = arith.addf %708, %722 : vector<8x128xf32>
    %c0_594 = arith.constant 0 : index
    %c11_595 = arith.constant 11 : index
    %c0_596 = arith.constant 0 : index
    %c0_597 = arith.constant 0 : index
    %724 = vector.load %arg4[%c0_594, %c11_595, %c0_596, %c0_597] : memref<1x49x8x128xf32, #tpu.memory_space<vmem>>, vector<1x1x8x128xf32>
    %725 = vector.shape_cast %724 : vector<1x1x8x128xf32> to vector<8x128xf32>
    %726 = arith.addf %725, %715 : vector<8x128xf32>
    %c0_598 = arith.constant 0 : index
    %c11_599 = arith.constant 11 : index
    %c0_600 = arith.constant 0 : index
    %c0_601 = arith.constant 0 : index
    %727 = vector.load %arg4[%c0_598, %c11_599, %c0_600, %c0_601] : memref<1x49x8x128xf32, #tpu.memory_space<vmem>>, vector<1x1x8x128xf32>
    %728 = vector.shape_cast %727 : vector<1x1x8x128xf32> to vector<8x128xf32>
    %729 = vector.shape_cast %726 : vector<8x128xf32> to vector<1x1x8x128xf32>
    tpu.vector_store %arg4[%c0_598, %c11_599, %c0_600, %c0_601], %729 {strides = array<i32>} : memref<1x49x8x128xf32, #tpu.memory_space<vmem>>, vector<1x1x8x128xf32>,
    %c0_602 = arith.constant 0 : index
    %c27 = arith.constant 27 : index
    %c0_603 = arith.constant 0 : index
    %c0_604 = arith.constant 0 : index
    %730 = vector.load %arg4[%c0_602, %c27, %c0_603, %c0_604] : memref<1x49x8x128xf32, #tpu.memory_space<vmem>>, vector<1x1x8x128xf32>
    %731 = vector.shape_cast %730 : vector<1x1x8x128xf32> to vector<8x128xf32>
    %732 = arith.addf %731, %719 : vector<8x128xf32>
    %c0_605 = arith.constant 0 : index
    %c27_606 = arith.constant 27 : index
    %c0_607 = arith.constant 0 : index
    %c0_608 = arith.constant 0 : index
    %733 = vector.load %arg4[%c0_605, %c27_606, %c0_607, %c0_608] : memref<1x49x8x128xf32, #tpu.memory_space<vmem>>, vector<1x1x8x128xf32>
    %734 = vector.shape_cast %733 : vector<1x1x8x128xf32> to vector<8x128xf32>
    %735 = vector.shape_cast %732 : vector<8x128xf32> to vector<1x1x8x128xf32>
    tpu.vector_store %arg4[%c0_605, %c27_606, %c0_607, %c0_608], %735 {strides = array<i32>} : memref<1x49x8x128xf32, #tpu.memory_space<vmem>>, vector<1x1x8x128xf32>,
    %c0_609 = arith.constant 0 : index
    %c43 = arith.constant 43 : index
    %c0_610 = arith.constant 0 : index
    %c0_611 = arith.constant 0 : index
    %736 = vector.load %arg4[%c0_609, %c43, %c0_610, %c0_611] : memref<1x49x8x128xf32, #tpu.memory_space<vmem>>, vector<1x1x8x128xf32>
    %737 = vector.shape_cast %736 : vector<1x1x8x128xf32> to vector<8x128xf32>
    %738 = arith.addf %737, %723 : vector<8x128xf32>
    %c0_612 = arith.constant 0 : index
    %c43_613 = arith.constant 43 : index
    %c0_614 = arith.constant 0 : index
    %c0_615 = arith.constant 0 : index
    %739 = vector.load %arg4[%c0_612, %c43_613, %c0_614, %c0_615] : memref<1x49x8x128xf32, #tpu.memory_space<vmem>>, vector<1x1x8x128xf32>
    %740 = vector.shape_cast %739 : vector<1x1x8x128xf32> to vector<8x128xf32>
    %741 = vector.shape_cast %738 : vector<8x128xf32> to vector<1x1x8x128xf32>
    tpu.vector_store %arg4[%c0_612, %c43_613, %c0_614, %c0_615], %741 {strides = array<i32>} : memref<1x49x8x128xf32, #tpu.memory_space<vmem>>, vector<1x1x8x128xf32>,
    %cst_616 = arith.constant 0.000000e+00 : f32
    %742 = vector.broadcast %cst_616 : f32 to vector<8x128xf32>
    %cst_617 = arith.constant 0.000000e+00 : f32
    %743 = vector.broadcast %cst_617 : f32 to vector<8x128xf32>
    %cst_618 = arith.constant 0.000000e+00 : f32
    %744 = vector.broadcast %cst_618 : f32 to vector<8x128xf32>
    %c0_619 = arith.constant 0 : index
    %c0_620 = arith.constant 0 : index
    %745 = vector.load %arg5[%c0_619, %c0_620] : memref<8x128xf32, #tpu.memory_space<vmem>>, vector<8x128xf32>
    %cst_621 = arith.constant 0.957142829 : f32
    %746 = vector.broadcast %cst_621 : f32 to vector<8x128xf32>
    %747 = arith.cmpf ole, %745, %746 : vector<8x128xf32>
    %cst_622 = arith.constant 1.000000e+00 : f32
    %cst_623 = arith.constant 0.000000e+00 : f32
    %748 = vector.broadcast %cst_622 : f32 to vector<8x128xf32>
    %749 = vector.broadcast %cst_623 : f32 to vector<8x128xf32>
    %750 = arith.select %747, %748, %749 : vector<8x128xi1>, vector<8x128xf32>
    %751 = arith.addf %742, %750 : vector<8x128xf32>
    %c0_624 = arith.constant 0 : index
    %c0_625 = arith.constant 0 : index
    %752 = vector.load %arg6[%c0_624, %c0_625] : memref<8x128xf32, #tpu.memory_space<vmem>>, vector<8x128xf32>
    %cst_626 = arith.constant 0.000000e+00 : f32
    %753 = vector.broadcast %cst_626 : f32 to vector<8x128xf32>
    %754 = arith.select %747, %752, %753 : vector<8x128xi1>, vector<8x128xf32>
    %755 = arith.addf %743, %754 : vector<8x128xf32>
    %c0_627 = arith.constant 0 : index
    %c0_628 = arith.constant 0 : index
    %756 = vector.load %arg7[%c0_627, %c0_628] : memref<8x128xf32, #tpu.memory_space<vmem>>, vector<8x128xf32>
    %cst_629 = arith.constant 0.000000e+00 : f32
    %757 = vector.broadcast %cst_629 : f32 to vector<8x128xf32>
    %758 = arith.select %747, %756, %757 : vector<8x128xi1>, vector<8x128xf32>
    %759 = arith.addf %744, %758 : vector<8x128xf32>
    %c0_630 = arith.constant 0 : index
    %c12_631 = arith.constant 12 : index
    %c0_632 = arith.constant 0 : index
    %c0_633 = arith.constant 0 : index
    %760 = vector.load %arg4[%c0_630, %c12_631, %c0_632, %c0_633] : memref<1x49x8x128xf32, #tpu.memory_space<vmem>>, vector<1x1x8x128xf32>
    %761 = vector.shape_cast %760 : vector<1x1x8x128xf32> to vector<8x128xf32>
    %762 = arith.addf %761, %751 : vector<8x128xf32>
    %c0_634 = arith.constant 0 : index
    %c12_635 = arith.constant 12 : index
    %c0_636 = arith.constant 0 : index
    %c0_637 = arith.constant 0 : index
    %763 = vector.load %arg4[%c0_634, %c12_635, %c0_636, %c0_637] : memref<1x49x8x128xf32, #tpu.memory_space<vmem>>, vector<1x1x8x128xf32>
    %764 = vector.shape_cast %763 : vector<1x1x8x128xf32> to vector<8x128xf32>
    %765 = vector.shape_cast %762 : vector<8x128xf32> to vector<1x1x8x128xf32>
    tpu.vector_store %arg4[%c0_634, %c12_635, %c0_636, %c0_637], %765 {strides = array<i32>} : memref<1x49x8x128xf32, #tpu.memory_space<vmem>>, vector<1x1x8x128xf32>,
    %c0_638 = arith.constant 0 : index
    %c28 = arith.constant 28 : index
    %c0_639 = arith.constant 0 : index
    %c0_640 = arith.constant 0 : index
    %766 = vector.load %arg4[%c0_638, %c28, %c0_639, %c0_640] : memref<1x49x8x128xf32, #tpu.memory_space<vmem>>, vector<1x1x8x128xf32>
    %767 = vector.shape_cast %766 : vector<1x1x8x128xf32> to vector<8x128xf32>
    %768 = arith.addf %767, %755 : vector<8x128xf32>
    %c0_641 = arith.constant 0 : index
    %c28_642 = arith.constant 28 : index
    %c0_643 = arith.constant 0 : index
    %c0_644 = arith.constant 0 : index
    %769 = vector.load %arg4[%c0_641, %c28_642, %c0_643, %c0_644] : memref<1x49x8x128xf32, #tpu.memory_space<vmem>>, vector<1x1x8x128xf32>
    %770 = vector.shape_cast %769 : vector<1x1x8x128xf32> to vector<8x128xf32>
    %771 = vector.shape_cast %768 : vector<8x128xf32> to vector<1x1x8x128xf32>
    tpu.vector_store %arg4[%c0_641, %c28_642, %c0_643, %c0_644], %771 {strides = array<i32>} : memref<1x49x8x128xf32, #tpu.memory_space<vmem>>, vector<1x1x8x128xf32>,
    %c0_645 = arith.constant 0 : index
    %c44 = arith.constant 44 : index
    %c0_646 = arith.constant 0 : index
    %c0_647 = arith.constant 0 : index
    %772 = vector.load %arg4[%c0_645, %c44, %c0_646, %c0_647] : memref<1x49x8x128xf32, #tpu.memory_space<vmem>>, vector<1x1x8x128xf32>
    %773 = vector.shape_cast %772 : vector<1x1x8x128xf32> to vector<8x128xf32>
    %774 = arith.addf %773, %759 : vector<8x128xf32>
    %c0_648 = arith.constant 0 : index
    %c44_649 = arith.constant 44 : index
    %c0_650 = arith.constant 0 : index
    %c0_651 = arith.constant 0 : index
    %775 = vector.load %arg4[%c0_648, %c44_649, %c0_650, %c0_651] : memref<1x49x8x128xf32, #tpu.memory_space<vmem>>, vector<1x1x8x128xf32>
    %776 = vector.shape_cast %775 : vector<1x1x8x128xf32> to vector<8x128xf32>
    %777 = vector.shape_cast %774 : vector<8x128xf32> to vector<1x1x8x128xf32>
    tpu.vector_store %arg4[%c0_648, %c44_649, %c0_650, %c0_651], %777 {strides = array<i32>} : memref<1x49x8x128xf32, #tpu.memory_space<vmem>>, vector<1x1x8x128xf32>,
    %cst_652 = arith.constant 0.000000e+00 : f32
    %778 = vector.broadcast %cst_652 : f32 to vector<8x128xf32>
    %cst_653 = arith.constant 0.000000e+00 : f32
    %779 = vector.broadcast %cst_653 : f32 to vector<8x128xf32>
    %cst_654 = arith.constant 0.000000e+00 : f32
    %780 = vector.broadcast %cst_654 : f32 to vector<8x128xf32>
    %c0_655 = arith.constant 0 : index
    %c0_656 = arith.constant 0 : index
    %781 = vector.load %arg5[%c0_655, %c0_656] : memref<8x128xf32, #tpu.memory_space<vmem>>, vector<8x128xf32>
    %cst_657 = arith.constant 0.978571414 : f32
    %782 = vector.broadcast %cst_657 : f32 to vector<8x128xf32>
    %783 = arith.cmpf ole, %781, %782 : vector<8x128xf32>
    %cst_658 = arith.constant 1.000000e+00 : f32
    %cst_659 = arith.constant 0.000000e+00 : f32
    %784 = vector.broadcast %cst_658 : f32 to vector<8x128xf32>
    %785 = vector.broadcast %cst_659 : f32 to vector<8x128xf32>
    %786 = arith.select %783, %784, %785 : vector<8x128xi1>, vector<8x128xf32>
    %787 = arith.addf %778, %786 : vector<8x128xf32>
    %c0_660 = arith.constant 0 : index
    %c0_661 = arith.constant 0 : index
    %788 = vector.load %arg6[%c0_660, %c0_661] : memref<8x128xf32, #tpu.memory_space<vmem>>, vector<8x128xf32>
    %cst_662 = arith.constant 0.000000e+00 : f32
    %789 = vector.broadcast %cst_662 : f32 to vector<8x128xf32>
    %790 = arith.select %783, %788, %789 : vector<8x128xi1>, vector<8x128xf32>
    %791 = arith.addf %779, %790 : vector<8x128xf32>
    %c0_663 = arith.constant 0 : index
    %c0_664 = arith.constant 0 : index
    %792 = vector.load %arg7[%c0_663, %c0_664] : memref<8x128xf32, #tpu.memory_space<vmem>>, vector<8x128xf32>
    %cst_665 = arith.constant 0.000000e+00 : f32
    %793 = vector.broadcast %cst_665 : f32 to vector<8x128xf32>
    %794 = arith.select %783, %792, %793 : vector<8x128xi1>, vector<8x128xf32>
    %795 = arith.addf %780, %794 : vector<8x128xf32>
    %c0_666 = arith.constant 0 : index
    %c13_667 = arith.constant 13 : index
    %c0_668 = arith.constant 0 : index
    %c0_669 = arith.constant 0 : index
    %796 = vector.load %arg4[%c0_666, %c13_667, %c0_668, %c0_669] : memref<1x49x8x128xf32, #tpu.memory_space<vmem>>, vector<1x1x8x128xf32>
    %797 = vector.shape_cast %796 : vector<1x1x8x128xf32> to vector<8x128xf32>
    %798 = arith.addf %797, %787 : vector<8x128xf32>
    %c0_670 = arith.constant 0 : index
    %c13_671 = arith.constant 13 : index
    %c0_672 = arith.constant 0 : index
    %c0_673 = arith.constant 0 : index
    %799 = vector.load %arg4[%c0_670, %c13_671, %c0_672, %c0_673] : memref<1x49x8x128xf32, #tpu.memory_space<vmem>>, vector<1x1x8x128xf32>
    %800 = vector.shape_cast %799 : vector<1x1x8x128xf32> to vector<8x128xf32>
    %801 = vector.shape_cast %798 : vector<8x128xf32> to vector<1x1x8x128xf32>
    tpu.vector_store %arg4[%c0_670, %c13_671, %c0_672, %c0_673], %801 {strides = array<i32>} : memref<1x49x8x128xf32, #tpu.memory_space<vmem>>, vector<1x1x8x128xf32>,
    %c0_674 = arith.constant 0 : index
    %c29 = arith.constant 29 : index
    %c0_675 = arith.constant 0 : index
    %c0_676 = arith.constant 0 : index
    %802 = vector.load %arg4[%c0_674, %c29, %c0_675, %c0_676] : memref<1x49x8x128xf32, #tpu.memory_space<vmem>>, vector<1x1x8x128xf32>
    %803 = vector.shape_cast %802 : vector<1x1x8x128xf32> to vector<8x128xf32>
    %804 = arith.addf %803, %791 : vector<8x128xf32>
    %c0_677 = arith.constant 0 : index
    %c29_678 = arith.constant 29 : index
    %c0_679 = arith.constant 0 : index
    %c0_680 = arith.constant 0 : index
    %805 = vector.load %arg4[%c0_677, %c29_678, %c0_679, %c0_680] : memref<1x49x8x128xf32, #tpu.memory_space<vmem>>, vector<1x1x8x128xf32>
    %806 = vector.shape_cast %805 : vector<1x1x8x128xf32> to vector<8x128xf32>
    %807 = vector.shape_cast %804 : vector<8x128xf32> to vector<1x1x8x128xf32>
    tpu.vector_store %arg4[%c0_677, %c29_678, %c0_679, %c0_680], %807 {strides = array<i32>} : memref<1x49x8x128xf32, #tpu.memory_space<vmem>>, vector<1x1x8x128xf32>,
    %c0_681 = arith.constant 0 : index
    %c45 = arith.constant 45 : index
    %c0_682 = arith.constant 0 : index
    %c0_683 = arith.constant 0 : index
    %808 = vector.load %arg4[%c0_681, %c45, %c0_682, %c0_683] : memref<1x49x8x128xf32, #tpu.memory_space<vmem>>, vector<1x1x8x128xf32>
    %809 = vector.shape_cast %808 : vector<1x1x8x128xf32> to vector<8x128xf32>
    %810 = arith.addf %809, %795 : vector<8x128xf32>
    %c0_684 = arith.constant 0 : index
    %c45_685 = arith.constant 45 : index
    %c0_686 = arith.constant 0 : index
    %c0_687 = arith.constant 0 : index
    %811 = vector.load %arg4[%c0_684, %c45_685, %c0_686, %c0_687] : memref<1x49x8x128xf32, #tpu.memory_space<vmem>>, vector<1x1x8x128xf32>
    %812 = vector.shape_cast %811 : vector<1x1x8x128xf32> to vector<8x128xf32>
    %813 = vector.shape_cast %810 : vector<8x128xf32> to vector<1x1x8x128xf32>
    tpu.vector_store %arg4[%c0_684, %c45_685, %c0_686, %c0_687], %813 {strides = array<i32>} : memref<1x49x8x128xf32, #tpu.memory_space<vmem>>, vector<1x1x8x128xf32>,
    %cst_688 = arith.constant 0.000000e+00 : f32
    %814 = vector.broadcast %cst_688 : f32 to vector<8x128xf32>
    %cst_689 = arith.constant 0.000000e+00 : f32
    %815 = vector.broadcast %cst_689 : f32 to vector<8x128xf32>
    %cst_690 = arith.constant 0.000000e+00 : f32
    %816 = vector.broadcast %cst_690 : f32 to vector<8x128xf32>
    %c0_691 = arith.constant 0 : index
    %c0_692 = arith.constant 0 : index
    %817 = vector.load %arg5[%c0_691, %c0_692] : memref<8x128xf32, #tpu.memory_space<vmem>>, vector<8x128xf32>
    %cst_693 = arith.constant 1.000000e+00 : f32
    %818 = vector.broadcast %cst_693 : f32 to vector<8x128xf32>
    %819 = arith.cmpf ole, %817, %818 : vector<8x128xf32>
    %cst_694 = arith.constant 1.000000e+00 : f32
    %cst_695 = arith.constant 0.000000e+00 : f32
    %820 = vector.broadcast %cst_694 : f32 to vector<8x128xf32>
    %821 = vector.broadcast %cst_695 : f32 to vector<8x128xf32>
    %822 = arith.select %819, %820, %821 : vector<8x128xi1>, vector<8x128xf32>
    %823 = arith.addf %814, %822 : vector<8x128xf32>
    %c0_696 = arith.constant 0 : index
    %c0_697 = arith.constant 0 : index
    %824 = vector.load %arg6[%c0_696, %c0_697] : memref<8x128xf32, #tpu.memory_space<vmem>>, vector<8x128xf32>
    %cst_698 = arith.constant 0.000000e+00 : f32
    %825 = vector.broadcast %cst_698 : f32 to vector<8x128xf32>
    %826 = arith.select %819, %824, %825 : vector<8x128xi1>, vector<8x128xf32>
    %827 = arith.addf %815, %826 : vector<8x128xf32>
    %c0_699 = arith.constant 0 : index
    %c0_700 = arith.constant 0 : index
    %828 = vector.load %arg7[%c0_699, %c0_700] : memref<8x128xf32, #tpu.memory_space<vmem>>, vector<8x128xf32>
    %cst_701 = arith.constant 0.000000e+00 : f32
    %829 = vector.broadcast %cst_701 : f32 to vector<8x128xf32>
    %830 = arith.select %819, %828, %829 : vector<8x128xi1>, vector<8x128xf32>
    %831 = arith.addf %816, %830 : vector<8x128xf32>
    %c0_702 = arith.constant 0 : index
    %c14_703 = arith.constant 14 : index
    %c0_704 = arith.constant 0 : index
    %c0_705 = arith.constant 0 : index
    %832 = vector.load %arg4[%c0_702, %c14_703, %c0_704, %c0_705] : memref<1x49x8x128xf32, #tpu.memory_space<vmem>>, vector<1x1x8x128xf32>
    %833 = vector.shape_cast %832 : vector<1x1x8x128xf32> to vector<8x128xf32>
    %834 = arith.addf %833, %823 : vector<8x128xf32>
    %c0_706 = arith.constant 0 : index
    %c14_707 = arith.constant 14 : index
    %c0_708 = arith.constant 0 : index
    %c0_709 = arith.constant 0 : index
    %835 = vector.load %arg4[%c0_706, %c14_707, %c0_708, %c0_709] : memref<1x49x8x128xf32, #tpu.memory_space<vmem>>, vector<1x1x8x128xf32>
    %836 = vector.shape_cast %835 : vector<1x1x8x128xf32> to vector<8x128xf32>
    %837 = vector.shape_cast %834 : vector<8x128xf32> to vector<1x1x8x128xf32>
    tpu.vector_store %arg4[%c0_706, %c14_707, %c0_708, %c0_709], %837 {strides = array<i32>} : memref<1x49x8x128xf32, #tpu.memory_space<vmem>>, vector<1x1x8x128xf32>,
    %c0_710 = arith.constant 0 : index
    %c30 = arith.constant 30 : index
    %c0_711 = arith.constant 0 : index
    %c0_712 = arith.constant 0 : index
    %838 = vector.load %arg4[%c0_710, %c30, %c0_711, %c0_712] : memref<1x49x8x128xf32, #tpu.memory_space<vmem>>, vector<1x1x8x128xf32>
    %839 = vector.shape_cast %838 : vector<1x1x8x128xf32> to vector<8x128xf32>
    %840 = arith.addf %839, %827 : vector<8x128xf32>
    %c0_713 = arith.constant 0 : index
    %c30_714 = arith.constant 30 : index
    %c0_715 = arith.constant 0 : index
    %c0_716 = arith.constant 0 : index
    %841 = vector.load %arg4[%c0_713, %c30_714, %c0_715, %c0_716] : memref<1x49x8x128xf32, #tpu.memory_space<vmem>>, vector<1x1x8x128xf32>
    %842 = vector.shape_cast %841 : vector<1x1x8x128xf32> to vector<8x128xf32>
    %843 = vector.shape_cast %840 : vector<8x128xf32> to vector<1x1x8x128xf32>
    tpu.vector_store %arg4[%c0_713, %c30_714, %c0_715, %c0_716], %843 {strides = array<i32>} : memref<1x49x8x128xf32, #tpu.memory_space<vmem>>, vector<1x1x8x128xf32>,
    %c0_717 = arith.constant 0 : index
    %c46 = arith.constant 46 : index
    %c0_718 = arith.constant 0 : index
    %c0_719 = arith.constant 0 : index
    %844 = vector.load %arg4[%c0_717, %c46, %c0_718, %c0_719] : memref<1x49x8x128xf32, #tpu.memory_space<vmem>>, vector<1x1x8x128xf32>
    %845 = vector.shape_cast %844 : vector<1x1x8x128xf32> to vector<8x128xf32>
    %846 = arith.addf %845, %831 : vector<8x128xf32>
    %c0_720 = arith.constant 0 : index
    %c46_721 = arith.constant 46 : index
    %c0_722 = arith.constant 0 : index
    %c0_723 = arith.constant 0 : index
    %847 = vector.load %arg4[%c0_720, %c46_721, %c0_722, %c0_723] : memref<1x49x8x128xf32, #tpu.memory_space<vmem>>, vector<1x1x8x128xf32>
    %848 = vector.shape_cast %847 : vector<1x1x8x128xf32> to vector<8x128xf32>
    %849 = vector.shape_cast %846 : vector<8x128xf32> to vector<1x1x8x128xf32>
    tpu.vector_store %arg4[%c0_720, %c46_721, %c0_722, %c0_723], %849 {strides = array<i32>} : memref<1x49x8x128xf32, #tpu.memory_space<vmem>>, vector<1x1x8x128xf32>,
    %cst_724 = arith.constant 0.000000e+00 : f32
    %850 = vector.broadcast %cst_724 : f32 to vector<8x128xf32>
    %cst_725 = arith.constant 0.000000e+00 : f32
    %851 = vector.broadcast %cst_725 : f32 to vector<8x128xf32>
    %cst_726 = arith.constant 0.000000e+00 : f32
    %852 = vector.broadcast %cst_726 : f32 to vector<8x128xf32>
    %c0_727 = arith.constant 0 : index
    %c0_728 = arith.constant 0 : index
    %853 = vector.load %arg5[%c0_727, %c0_728] : memref<8x128xf32, #tpu.memory_space<vmem>>, vector<8x128xf32>
    %cst_729 = arith.constant 2.000000e+00 : f32
    %854 = vector.broadcast %cst_729 : f32 to vector<8x128xf32>
    %855 = arith.cmpf ole, %853, %854 : vector<8x128xf32>
    %cst_730 = arith.constant 1.000000e+00 : f32
    %cst_731 = arith.constant 0.000000e+00 : f32
    %856 = vector.broadcast %cst_730 : f32 to vector<8x128xf32>
    %857 = vector.broadcast %cst_731 : f32 to vector<8x128xf32>
    %858 = arith.select %855, %856, %857 : vector<8x128xi1>, vector<8x128xf32>
    %859 = arith.addf %850, %858 : vector<8x128xf32>
    %c0_732 = arith.constant 0 : index
    %c0_733 = arith.constant 0 : index
    %860 = vector.load %arg6[%c0_732, %c0_733] : memref<8x128xf32, #tpu.memory_space<vmem>>, vector<8x128xf32>
    %cst_734 = arith.constant 0.000000e+00 : f32
    %861 = vector.broadcast %cst_734 : f32 to vector<8x128xf32>
    %862 = arith.select %855, %860, %861 : vector<8x128xi1>, vector<8x128xf32>
    %863 = arith.addf %851, %862 : vector<8x128xf32>
    %c0_735 = arith.constant 0 : index
    %c0_736 = arith.constant 0 : index
    %864 = vector.load %arg7[%c0_735, %c0_736] : memref<8x128xf32, #tpu.memory_space<vmem>>, vector<8x128xf32>
    %cst_737 = arith.constant 0.000000e+00 : f32
    %865 = vector.broadcast %cst_737 : f32 to vector<8x128xf32>
    %866 = arith.select %855, %864, %865 : vector<8x128xi1>, vector<8x128xf32>
    %867 = arith.addf %852, %866 : vector<8x128xf32>
    %c0_738 = arith.constant 0 : index
    %c15_739 = arith.constant 15 : index
    %c0_740 = arith.constant 0 : index
    %c0_741 = arith.constant 0 : index
    %868 = vector.load %arg4[%c0_738, %c15_739, %c0_740, %c0_741] : memref<1x49x8x128xf32, #tpu.memory_space<vmem>>, vector<1x1x8x128xf32>
    %869 = vector.shape_cast %868 : vector<1x1x8x128xf32> to vector<8x128xf32>
    %870 = arith.addf %869, %859 : vector<8x128xf32>
    %c0_742 = arith.constant 0 : index
    %c15_743 = arith.constant 15 : index
    %c0_744 = arith.constant 0 : index
    %c0_745 = arith.constant 0 : index
    %871 = vector.load %arg4[%c0_742, %c15_743, %c0_744, %c0_745] : memref<1x49x8x128xf32, #tpu.memory_space<vmem>>, vector<1x1x8x128xf32>
    %872 = vector.shape_cast %871 : vector<1x1x8x128xf32> to vector<8x128xf32>
    %873 = vector.shape_cast %870 : vector<8x128xf32> to vector<1x1x8x128xf32>
    tpu.vector_store %arg4[%c0_742, %c15_743, %c0_744, %c0_745], %873 {strides = array<i32>} : memref<1x49x8x128xf32, #tpu.memory_space<vmem>>, vector<1x1x8x128xf32>,
    %c0_746 = arith.constant 0 : index
    %c31 = arith.constant 31 : index
    %c0_747 = arith.constant 0 : index
    %c0_748 = arith.constant 0 : index
    %874 = vector.load %arg4[%c0_746, %c31, %c0_747, %c0_748] : memref<1x49x8x128xf32, #tpu.memory_space<vmem>>, vector<1x1x8x128xf32>
    %875 = vector.shape_cast %874 : vector<1x1x8x128xf32> to vector<8x128xf32>
    %876 = arith.addf %875, %863 : vector<8x128xf32>
    %c0_749 = arith.constant 0 : index
    %c31_750 = arith.constant 31 : index
    %c0_751 = arith.constant 0 : index
    %c0_752 = arith.constant 0 : index
    %877 = vector.load %arg4[%c0_749, %c31_750, %c0_751, %c0_752] : memref<1x49x8x128xf32, #tpu.memory_space<vmem>>, vector<1x1x8x128xf32>
    %878 = vector.shape_cast %877 : vector<1x1x8x128xf32> to vector<8x128xf32>
    %879 = vector.shape_cast %876 : vector<8x128xf32> to vector<1x1x8x128xf32>
    tpu.vector_store %arg4[%c0_749, %c31_750, %c0_751, %c0_752], %879 {strides = array<i32>} : memref<1x49x8x128xf32, #tpu.memory_space<vmem>>, vector<1x1x8x128xf32>,
    %c0_753 = arith.constant 0 : index
    %c47 = arith.constant 47 : index
    %c0_754 = arith.constant 0 : index
    %c0_755 = arith.constant 0 : index
    %880 = vector.load %arg4[%c0_753, %c47, %c0_754, %c0_755] : memref<1x49x8x128xf32, #tpu.memory_space<vmem>>, vector<1x1x8x128xf32>
    %881 = vector.shape_cast %880 : vector<1x1x8x128xf32> to vector<8x128xf32>
    %882 = arith.addf %881, %867 : vector<8x128xf32>
    %c0_756 = arith.constant 0 : index
    %c47_757 = arith.constant 47 : index
    %c0_758 = arith.constant 0 : index
    %c0_759 = arith.constant 0 : index
    %883 = vector.load %arg4[%c0_756, %c47_757, %c0_758, %c0_759] : memref<1x49x8x128xf32, #tpu.memory_space<vmem>>, vector<1x1x8x128xf32>
    %884 = vector.shape_cast %883 : vector<1x1x8x128xf32> to vector<8x128xf32>
    %885 = vector.shape_cast %882 : vector<8x128xf32> to vector<1x1x8x128xf32>
    tpu.vector_store %arg4[%c0_756, %c47_757, %c0_758, %c0_759], %885 {strides = array<i32>} : memref<1x49x8x128xf32, #tpu.memory_space<vmem>>, vector<1x1x8x128xf32>,
    return
  }
  func.func @transform_0(%arg0: i32, %arg1: i32) -> (i32, i32, i32, i32) {
    %c0_i32 = arith.constant 0 : i32
    %c0_i32_0 = arith.constant 0 : i32
    %c0_i32_1 = arith.constant 0 : i32
    return %arg0, %c0_i32, %arg1, %c0_i32_0 : i32, i32, i32, i32
  }
  func.func @transform_1(%arg0: i32, %arg1: i32) -> (i32, i32, i32) {
    %c0_i32 = arith.constant 0 : i32
    %c0_i32_0 = arith.constant 0 : i32
    return %arg0, %arg1, %c0_i32 : i32, i32, i32
  }
  func.func @transform_2(%arg0: i32, %arg1: i32) -> (i32, i32, i32, i32) {
    %c0_i32 = arith.constant 0 : i32
    %c0_i32_0 = arith.constant 0 : i32
    %c0_i32_1 = arith.constant 0 : i32
    %c0_i32_2 = arith.constant 0 : i32
    return %arg0, %c0_i32, %c0_i32_0, %c0_i32_1 : i32, i32, i32, i32
  }
}

</mosaic_0001>

<bundles_post_ra>
// kernel: tpu_custom_call.1
= control target key start
LH: loop header
LB: loop body
LE: loop exit
PB: predicated region body
PF: predicated region fallthrough
CT: control target
= control target key end

     0   :  { %s2244_s0 = inlined_call_operand.hbm [shape: f32[2,19,16,128], index: 0, kind: input, shape index: {}]   ;;  %s2245_s1 = inlined_call_operand.hbm [shape: s32[2,16,128], index: 1, kind: input, shape index: {}]   ;;  %s2246_s2 = inlined_call_operand.hbm [shape: f32[2,49,8,128], index: 2, kind: output, shape index: {}]  }
   0x1   :  { %2257 = sst [smem:[#allocation22_spill]] %s2244_s0 }
   0x2   :  { %7 = vsyncpa [#allocation6], 0 }
   0x3   :  { %9 = vsyncpa [#allocation6 + $0x1], 0 }
   0x4   :  { %10 = vsyncpa [#allocation9], 0 }
   0x5   :  { %12 = vsyncpa [#allocation9 + $0x1], 0 }
   0x6   :  { %13 = vsyncpa [#allocation7], 0 }
   0x7   :  { %15 = vsyncpa [#allocation7 + $0x1], 0  ;;  %s1482_s9 = smov 0   ;;  %s1484_s10 = smov 0  }
   0x8   :  { %s1486_s11 = smov 0   ;;  %s1488_s12 = smov 0  }
   0x9   :  { %s1490_s13 = smov 0   ;;  %s1492_s14 = smov 0  }
   0xa   :  { %s1494_s15 = smov 0   ;;  %s1496_s16 = smov 0  }
   0xb   :  { %s1498_s17 = smov 0   ;;  %s1500_s18 = smov 0  }
   0xc   :  { %s1502_s19 = smov 0  }
   0xd LB: > { %2258 = sst [smem:[#allocation14_spill]] %s1415_s9  ;;  %s984_s20 = sadd.s32 4294967295, %s1455_s19   ;;  %s1455_s19 = sphi %s1502_s19, %s21_s19   ;;  %s1451_s18 = sphi %s1500_s18, %s2298_s18   ;;  %s1447_s17 = sphi %s1498_s17, %s2297_s17   ;;  %s1443_s16 = sphi %s1496_s16, %s2296_s16   ;;  %s1439_s15 = sphi %s1494_s15, %s2295_s15   ;;  %s1435_s14 = sphi %s1492_s14, %s2288_s14   ;;  %s1431_s13 = sphi %s1490_s13, %s2294_s13   ;;  %s1427_s12 = sphi %s1488_s12, %s2293_s12   ;;  %s1423_s11 = sphi %s1486_s11, %s2286_s11   ;;  %s1419_s10 = sphi %s1484_s10, %s2292_s10   ;;  %s1415_s9 = sphi %s1482_s9, %s2291_s9  }
   0xe   : > { %2259 = sst [smem:[#allocation15_spill]] %s1423_s11  ;;  %s985_s21 = sadd.s32 4294967294, %s1455_s19  }
   0xf   : > { %2260 = sst [smem:[#allocation16_spill]] %s1435_s14  ;;  %s30_s22 = sadd.s32 1, %s1447_s17 }
  0x10   : > { %s33_s23 = sadd.s32 1, %s1451_s18  ;;  %p31_p0 = scmp.ge.s32.totalorder %s30_s22, 2 }
  0x11   : > { %s42_s24 = sadd.s32 1, %s1435_s14  ;;  %p49_p1 = scmp.ne.s32.totalorder %s1435_s14, %s1431_s13 }
  0x12   : > { %p50_p2 = scmp.eq.s32.totalorder %s1455_s19, 0  ;;  %s2300_s22 = smov (%p31_p0, %s30_s22), 0 }
  0x13   : > { %2261 = sst [smem:[#allocation17_spill]] %s2300_s22  ;;  %s2302_s23 = smov (!%p31_p0, %s33_s23), %s1451_s18 }
  0x14   : > { %s38_s25 = ssub.s32 %s1447_s17, %s2300_s22  ;;  %p1548_p3 = por %p50_p2, %p49_p1 }
  0x15   : > { %p35_p4 = scmp.ge.s32.totalorder %s2302_s23, 2  ;;  %p55_p5 = scmp.ne.s32.totalorder %s1431_s13, %s1427_s12 }
  0x16   : > { %p56_p6 = scmp.eq.s32.totalorder %s984_s20, 0  ;;  %s96_s27 = sadd.s32 1, %s1423_s11 }
  0x17   : > { %s2304_s23 = smov (%p35_p4, %s2302_s23), 0  ;;  %p106_p8 = scmp.ne.s32.totalorder %s1423_s11, %s1419_s10 }
  0x18   : > { %2263 = sst [smem:[#allocation18_spill]] %s2304_s23  ;;  %p1556_p7 = por %p56_p6, %p55_p5 }
  0x19   : > { %s37_s29 = ssub.s32 %s1451_s18, %s2304_s23  ;;  %p107_p9 = scmp.eq.s32.totalorder %s984_s20, 3 }
  0x1a   : > { %s39_s30 = sor.u32 %s38_s25, %s37_s29  ;;  %p94_p10 = scmp.eq.s32.totalorder %s37_s29, 0 }
  0x1b   : > { %p40_p11 = scmp.eq.s32.totalorder %s39_s30, 0  ;;  %p1564_p12 = por %p107_p9, %p106_p8 }
  0x1c   : > { %s1569_s4 = scalar_select %p94_p10, %s1423_s11, %s96_s27  }
  0x1d   : > { %s1572_s5 = scalar_select %p40_p11, %s1435_s14, %s42_s24  }
  0x1e   : > { %2266 = sst [smem:[#allocation19_spill]] %s1569_s4  ;;  %p112_p13 = scmp.ne.s32.totalorder %s1419_s10, %s1415_s9 }
  0x1f   : > { %2267 = sst [smem:[#allocation20_spill]] %s1572_s5  ;;  %p113_p0 = scmp.eq.s32.totalorder %s985_s21, 3 }
  0x20   : > { %p1136_p1 = scmp.lt.s32.totalorder %s1455_s19, 4  ;;  %s1582_s7 = sand.u32 1, %s1435_s14  }
  0x21   : > { %p1577_p2 = por %p113_p0, %p112_p13  ;;  %s1114_s8 = smul.u32 152, %s1582_s7 }
  0x22   : > { %s1115_s12 = smul.u32 38, %s1451_s18  ;;  %p1588_p4 = pnand %p1136_p1, %p1548_p3 }
  0x23   : > { %s2268_s6 = scalar_select %p1577_p2, 1, 0 }
  0x24   : > { %s142_s24 = sadd.s32 %s1447_s17, %s1115_s12  ;;  %s137_s21 = scalar_lea.vmem [#allocation5], %s1114_s8 }
  0x25   : > { %2269 = sst [smem:[#allocation21_spill]] %s2268_s6  ;;  %s145_s25 = sshll.u32 %s137_s21, 4  ;;  %s146_s25 = int_to_ptr.vmem [resolvable:$true] %s145_s25 }
  0x26   : > { %s988_s27 = sshll.u32 %s142_s24, 7  ;;  %s2271_s0 = sld [smem:[#allocation22_spill]] }
  0x27   : > { %s134_s22 = scalar_lea.sflag [#allocation6], %s1582_s7  ;;  %p1277_p5 = pneg %p1588_p4 }
  0x28   : > { %s1288_s5 = scalar_lea.vmem %s146_s25, 2432  ;;  %s1457_s26 = smov [#allocation5]  }
  0x29   : > { %p1289_p6 = scmp.ne.s32.totalorder %s146_s25, %s1288_s5  ;;  %s1293_s14 = sshll.u32 %s1457_s26, 4  ;;  %s1294_s14 = int_to_ptr.vmem [resolvable:$false] %s1293_s14 }
  0x2a   : > { %s1295_s8 = scalar_lea.vmem %s1294_s14, 4864  ;;  %p1296_p9 = scmp.lt.s32.totalorder %s146_s25, %s1294_s14 }
  0x2b   : > { %p1291_p3 = pnand %p1289_p6, %p1277_p5  ;;  %p1297_p10 = scmp.lt.s32.totalorder %s1295_s8, %s1288_s5 }
  0x2c   : > { %s144_s23 = scalar_lea.hbm %s2271_s0, %s988_s27 }
  0x2d   : > { %p1292_p8 = pneg %p1291_p3  ;;  %p1298_p11 = por %p1297_p10, %p1296_p9 }
  0x2f   : > { %p1299_p13 = pnand %p1298_p11, %p1292_p8 }
  0x31   : > { %1302 = shalt.err (!%p1299_p13)
}
  0x32   : > { %s1458_s12 = smov 256   ;;  %s1459_s24 = smov 128  }
  0x33   : > { %s1460_s21 = smov 8   ;;  %p992_p0 = scmp.ge.s32.totalorder %s1455_s19, 1 }
  0x34   : > { %1128 = dma.hbm_to_vmem [thread:$0]  (!%p1588_p4), %s144_s23, 2432, %s146_s25, %s134_s22, %s1458_s12, %s1459_s24, %s1460_s21  }
  0x35   : > { %p173_p1 = scmp.lt.s32.totalorder %s1455_s19, 5  ;;  %s989_s14 = sshll.u32 %s1582_s7, 3 }
  0x36   : > { %s990_s27 = sshll.u32 %s1451_s18, 1  ;;  %s159_s29 = scalar_lea.vmem [#allocation8], %s989_s14 }
  0x37   : > { %p1607_p6 = pnand %p992_p0, %p173_p1  ;;  %s168_s30 = sshll.u32 %s159_s29, 4  ;;  %s169_s30 = int_to_ptr.vmem [resolvable:$true] %s168_s30 }
  0x38   : > { %s164_s26 = sadd.s32 %s1447_s17, %s990_s27  ;;  %s156_s6 = scalar_lea.sflag [#allocation9], %s1582_s7 }
  0x39   : > { %s991_s8 = sshll.u32 %s164_s26, 7  ;;  %s1316_s9 = scalar_lea.vmem %s169_s30, 128 }
  0x3a   : > { %s166_s11 = scalar_lea.hbm %s2245_s1, %s991_s8  ;;  %p1317_p3 = scmp.ne.s32.totalorder %s169_s30, %s1316_s9 }
  0x3b   : > { %s1461_s22 = smov [#allocation8]  }
  0x3c   : > { %p1319_p8 = pnand %p1317_p3, %p1277_p5  ;;  %s1321_s23 = sshll.u32 %s1461_s22, 4  ;;  %s1322_s23 = int_to_ptr.vmem [resolvable:$false] %s1321_s23 }
  0x3d   : > { %s1323_s25 = scalar_lea.vmem %s1322_s23, 256  ;;  %p1324_p10 = scmp.lt.s32.totalorder %s169_s30, %s1322_s23 }
  0x3e   : > { %p1320_p9 = pneg %p1319_p8  ;;  %p1325_p11 = scmp.lt.s32.totalorder %s1323_s25, %s1316_s9 }
  0x40   : > { %p1326_p13 = por %p1325_p11, %p1324_p10 }
  0x42   : > { %p1327_p0 = pnand %p1326_p13, %p1320_p9 }
  0x44   : > { %1330 = shalt.err (!%p1327_p0)
}
  0x45   : > { %1131 = dma.hbm_to_vmem [thread:$0]  (!%p1588_p4), %s166_s11, 128, %s169_s30, %s156_s6  }
  0x46   : > { %177 = sbr.rel (%p1607_p6) target bundleno = 267 (0x10b), region = 28  ;;  %s179_s0 = sand.u32 (!%p1607_p6), 1, %s1431_s13  }
  0x47   : > { %s1116_s4 = smul.u32 (!%p1607_p6), 152, %s179_s0  ;;  %s180_s7 = scalar_lea.sflag (!%p1607_p6), [#allocation6], %s179_s0 }
  0x49   : > { %s1625_s12 = scalar_lea.vmem (!%p1607_p6), [#allocation5], %s1116_s4 }
  0x4b   : > { %1402 = dma.done.wait (%p1556_p7), %s180_s7, 2432  }
  0x4c   : > { %1404 = vsyncadd (%p1556_p7), %s180_s7, 4294964864  ;;  %s993_s9 = sshll.u32 %s179_s0, 3  ;;  %s189_s24 = scalar_lea.sflag [#allocation9], %s179_s0 }
  0x4d   : > { %s1631_s20 = scalar_lea.vmem [#allocation8], %s993_s9 }
  0x4e   : > { %1406 = dma.done.wait (%p1556_p7), %s189_s24, 128  }
  0x4f   : > { %1408 = vsyncadd (%p1556_p7), %s189_s24, 4294967168  ;;  %s215_s11 = sand.u32 1, %s1419_s10   ;;  %p994_p4 = scmp.ne.s32.totalorder %s1439_s15, 0 }
  0x50   : > { %s1117_s6 = smul.u32 392, %s215_s11 }
  0x51   : > { %221 = sbr.rel (%p994_p4) target bundleno = 112 (0x70), region = 40 }
  0x52   : > { %s1640_s21 = scalar_lea.vmem [#allocation10], %s1117_s6 }
  0x56   : > { %v1462_v0 = vmov 0.0  }
  0x57   : > { %222 = vst [vmem:[%s1640_s21] sm:$0xff] %v1462_v0  ;;  %223 = vst [vmem:[%s1640_s21 + $0x8] sm:$0xff] %v1462_v0 }
  0x58   : > { %224 = vst [vmem:[%s1640_s21 + $0x10] sm:$0xff] %v1462_v0  ;;  %225 = vst [vmem:[%s1640_s21 + $0x18] sm:$0xff] %v1462_v0 }
  0x59   : > { %226 = vst [vmem:[%s1640_s21 + $0x20] sm:$0xff] %v1462_v0  ;;  %227 = vst [vmem:[%s1640_s21 + $0x28] sm:$0xff] %v1462_v0 }
  0x5a   : > { %228 = vst [vmem:[%s1640_s21 + $0x30] sm:$0xff] %v1462_v0  ;;  %229 = vst [vmem:[%s1640_s21 + $0x38] sm:$0xff] %v1462_v0 }
  0x5b   : > { %230 = vst [vmem:[%s1640_s21 + $0x40] sm:$0xff] %v1462_v0  ;;  %231 = vst [vmem:[%s1640_s21 + $0x48] sm:$0xff] %v1462_v0 }
  0x5c   : > { %232 = vst [vmem:[%s1640_s21 + $0x50] sm:$0xff] %v1462_v0  ;;  %233 = vst [vmem:[%s1640_s21 + $0x58] sm:$0xff] %v1462_v0 }
  0x5d   : > { %234 = vst [vmem:[%s1640_s21 + $0x60] sm:$0xff] %v1462_v0  ;;  %235 = vst [vmem:[%s1640_s21 + $0x68] sm:$0xff] %v1462_v0 }
  0x5e   : > { %236 = vst [vmem:[%s1640_s21 + $0x70] sm:$0xff] %v1462_v0  ;;  %237 = vst [vmem:[%s1640_s21 + $0x78] sm:$0xff] %v1462_v0 }
  0x5f   : > { %238 = vst [vmem:[%s1640_s21 + $0x80] sm:$0xff] %v1462_v0  ;;  %239 = vst [vmem:[%s1640_s21 + $0x88] sm:$0xff] %v1462_v0 }
  0x60   : > { %240 = vst [vmem:[%s1640_s21 + $0x90] sm:$0xff] %v1462_v0  ;;  %241 = vst [vmem:[%s1640_s21 + $0x98] sm:$0xff] %v1462_v0 }
  0x61   : > { %242 = vst [vmem:[%s1640_s21 + $0xa0] sm:$0xff] %v1462_v0  ;;  %243 = vst [vmem:[%s1640_s21 + $0xa8] sm:$0xff] %v1462_v0 }
  0x62   : > { %244 = vst [vmem:[%s1640_s21 + $0xb0] sm:$0xff] %v1462_v0  ;;  %245 = vst [vmem:[%s1640_s21 + $0xb8] sm:$0xff] %v1462_v0 }
  0x63   : > { %246 = vst [vmem:[%s1640_s21 + $0xc0] sm:$0xff] %v1462_v0  ;;  %247 = vst [vmem:[%s1640_s21 + $0xc8] sm:$0xff] %v1462_v0 }
  0x64   : > { %248 = vst [vmem:[%s1640_s21 + $0xd0] sm:$0xff] %v1462_v0  ;;  %249 = vst [vmem:[%s1640_s21 + $0xd8] sm:$0xff] %v1462_v0 }
  0x65   : > { %250 = vst [vmem:[%s1640_s21 + $0xe0] sm:$0xff] %v1462_v0  ;;  %251 = vst [vmem:[%s1640_s21 + $0xe8] sm:$0xff] %v1462_v0 }
  0x66   : > { %252 = vst [vmem:[%s1640_s21 + $0xf0] sm:$0xff] %v1462_v0  ;;  %253 = vst [vmem:[%s1640_s21 + $0xf8] sm:$0xff] %v1462_v0 }
  0x67   : > { %254 = vst [vmem:[%s1640_s21 + $0x100] sm:$0xff] %v1462_v0  ;;  %255 = vst [vmem:[%s1640_s21 + $0x108] sm:$0xff] %v1462_v0 }
  0x68   : > { %256 = vst [vmem:[%s1640_s21 + $0x110] sm:$0xff] %v1462_v0  ;;  %257 = vst [vmem:[%s1640_s21 + $0x118] sm:$0xff] %v1462_v0 }
  0x69   : > { %258 = vst [vmem:[%s1640_s21 + $0x120] sm:$0xff] %v1462_v0  ;;  %259 = vst [vmem:[%s1640_s21 + $0x128] sm:$0xff] %v1462_v0 }
  0x6a   : > { %260 = vst [vmem:[%s1640_s21 + $0x130] sm:$0xff] %v1462_v0  ;;  %261 = vst [vmem:[%s1640_s21 + $0x138] sm:$0xff] %v1462_v0 }
  0x6b   : > { %262 = vst [vmem:[%s1640_s21 + $0x140] sm:$0xff] %v1462_v0  ;;  %263 = vst [vmem:[%s1640_s21 + $0x148] sm:$0xff] %v1462_v0 }
  0x6c   : > { %264 = vst [vmem:[%s1640_s21 + $0x150] sm:$0xff] %v1462_v0  ;;  %265 = vst [vmem:[%s1640_s21 + $0x158] sm:$0xff] %v1462_v0 }
  0x6d   : > { %266 = vst [vmem:[%s1640_s21 + $0x160] sm:$0xff] %v1462_v0  ;;  %267 = vst [vmem:[%s1640_s21 + $0x168] sm:$0xff] %v1462_v0 }
  0x6e   : > { %268 = vst [vmem:[%s1640_s21 + $0x170] sm:$0xff] %v1462_v0  ;;  %269 = vst [vmem:[%s1640_s21 + $0x178] sm:$0xff] %v1462_v0 }
  0x6f   : > { %270 = vst [vmem:[%s1640_s21 + $0x180] sm:$0xff] %v1462_v0 }
  0x70 PF: > { %s995_s28 = sshll.u32 %s1439_s15, 3  ;;  %v273_v1 = vlaneseq  ;;  %v1694_v2 = vld [vmem:[%s1625_s12] sm:$0xff]  ;;  %v1697_v3 = vld [vmem:[%s1625_s12 + $0x8] sm:$0xff]  ;;  %v1703_v7 = vld [vmem:[%s1625_s12 + $0x10] sm:$0xff]  ;;  %v1463_v36 = vmov 0.0   ;;  %s1118_s15 = smul.u32 6272, %s1443_s16 }
  0x71   : > { %v272_v4 = vld [vmem:[%s1631_s20] sm:$0xff]  ;;  %v275_v5 = vstv %s995_s28  ;;  %v284_v6 = vmax.f32 %v1694_v2, %v1697_v3  ;;  %v1706_v9 = vld [vmem:[%s1625_s12 + $0x18] sm:$0xff]  ;;  %v1714_v14 = vld [vmem:[%s1625_s12 + $0x28] sm:$0xff]  ;;  %s873_s14 = sshll.u32 %s1640_s21, 4  ;;  %s2184_s29 = scalar_lea.sflag [#allocation7], %s215_s11  ;;  %s2174_s14 = int_to_ptr.vmem [resolvable:$true] %s873_s14 }
  0x72   : > { %v274_v8 = vshrl.u32 %v273_v1, 7  ;;  %vm277_vm0 = vcmp.ne.s32.totalorder %v272_v4, 4294967295  ;;  %v1710_v12 = vld [vmem:[%s1625_s12 + $0x20] sm:$0xff]  ;;  %v1726_v18 = vld [vmem:[%s1625_s12 + $0x30] sm:$0xff]  ;;  %v1733_v20 = vld [vmem:[%s1625_s12 + $0x38] sm:$0xff]  ;;  %s2172_s27 = scalar_lea.hbm %s2246_s2, %s1118_s15  ;;  %s1331_s30 = scalar_lea.vmem %s2174_s14, 6272 }
  0x73   : > { %v287_v10 = vmax.f32 %v284_v6, %v1703_v7  ;;  %v1745_v24 = vld [vmem:[%s1625_s12 + $0x40] sm:$0xff]  ;;  %v1757_v28 = vld [vmem:[%s1625_s12 + $0x48] sm:$0xff]  ;;  %v1769_v32 = vld [vmem:[%s1625_s12 + $0x50] sm:$0xff]  ;;  %p1332_p7 = scmp.ne.s32.totalorder %s2174_s14, %s1331_s30  ;;  %s1464_s26 = smov [#allocation10]  }
  0x74   : > { %v276_v11 = vadd.s32 %v275_v5, %v274_v8  ;;  %v1785_v39 = vld [vmem:[%s1625_s12 + $0x58] sm:$0xff]  ;;  %v1797_v43 = vld [vmem:[%s1625_s12 + $0x60] sm:$0xff]  ;;  %v1809_v48 = vld [vmem:[%s1625_s12 + $0x68] sm:$0xff]  ;;  %s1335_s8 = sshll.u32 %s1464_s26, 4  ;;  %s1336_s8 = int_to_ptr.vmem [resolvable:$false] %s1335_s8 }
  0x75   : > { %v290_v13 = vmax.f32 %v287_v10, %v1706_v9  ;;  %v1818_v51 = vld [vmem:[%s1625_s12 + $0x70] sm:$0xff]  ;;  %v1825_v53 = vld [vmem:[%s1625_s12 + $0x78] sm:$0xff]  ;;  %v1833_v56 = vld [vmem:[%s1625_s12 + $0x80] sm:$0xff]  ;;  %p1333_p5 = pnand %p1332_p7, %p1564_p12  ;;  %s1337_s22 = scalar_lea.vmem %s1336_s8, 12544 }
  0x76   : > { %vm278_vm1 = vcmp.lt.s32.totalorder %v276_v11, 16  ;;  %v1015_v38 = vld [vmem:[%s1640_s21 + $0x180] sm:$0xff]  ;;  %v1840_v58 = vld [vmem:[%s1625_s12 + $0x88] sm:$0xff]  ;;  %v1031_v15 = vld [vmem:[%s1640_s21 + $0x110] sm:$0xff]  ;;  %p1338_p6 = scmp.lt.s32.totalorder %s2174_s14, %s1336_s8  ;;  %p1339_p3 = scmp.lt.s32.totalorder %s1337_s22, %s1331_s30 }
  0x77   : > { %vm1716_vm2 = vmand %vm277_vm0, %vm278_vm1  ;;  %v293_v16 = vmax.f32 %v290_v13, %v1710_v12  ;;  %v1847_v61 = vld [vmem:[%s1625_s12 + $0x90] sm:$0xff]  ;;  %p1334_p1 = pneg %p1333_p5 }
  0x78   : > { %v1723_v17 = vsel %vm1716_vm2, %v272_v4, 0  ;;  %v1014_v37 = vsel %vm1716_vm2, 1.0, %v1463_v36  ;;  %p1340_p8 = por %p1339_p3, %p1338_p6 }
  0x79   : > { %v296_v19 = vmax.f32 %v293_v16, %v1714_v14  ;;  %vm340_vm3 = vcmp.eq.s32.totalorder %v1723_v17, 0  ;;  %vm348_vm4 = vcmp.eq.s32.totalorder %v1723_v17, 1  ;;  %vm356_vm5 = vcmp.eq.s32.totalorder %v1723_v17, 2 }
  0x7a   : > { %v341_v21 = vsel %vm340_vm3, %v1694_v2, 0.0  ;;  %vm364_vm6 = vcmp.eq.s32.totalorder %v1723_v17, 3  ;;  %vm372_vm7 = vcmp.eq.s32.totalorder %v1723_v17, 4  ;;  %vm380_vm8 = vcmp.eq.s32.totalorder %v1723_v17, 5  ;;  %p1341_p9 = pnand %p1340_p8, %p1334_p1 }
  0x7b   : > { %v299_v22 = vmax.f32 %v296_v19, %v1726_v18  ;;  %v349_v23 = vsel %vm348_vm4, %v1697_v3, %v341_v21  ;;  %vm388_vm9 = vcmp.eq.s32.totalorder %v1723_v17, 6  ;;  %vm396_vm10 = vcmp.eq.s32.totalorder %v1723_v17, 7 }
  0x7c   : > { %v357_v25 = vsel %vm356_vm5, %v1703_v7, %v349_v23  ;;  %vm404_vm11 = vcmp.eq.s32.totalorder %v1723_v17, 8  ;;  %vm412_vm12 = vcmp.eq.s32.totalorder %v1723_v17, 9  ;;  %vm2253_vm13 = vcmp.eq.s32.totalorder %v1723_v17, 10 }
  0x7d   : > { %v302_v26 = vmax.f32 %v299_v22, %v1733_v20  ;;  %v365_v27 = vsel %vm364_vm6, %v1706_v9, %v357_v25  ;;  %vm2254_vm14 = vcmp.eq.s32.totalorder %v1723_v17, 11  ;;  %vm2255_vm15 = vcmp.eq.s32.totalorder %v1723_v17, 12 }
  0x7e   : > { %v373_v29 = vsel %vm372_vm7, %v1710_v12, %v365_v27  ;;  %vm2256_vm0 = vcmp.eq.s32.totalorder %v1723_v17, 13  ;;  %v506_v45 = vadd.f32 %v1015_v38, %v1014_v37  ;;  %vm452_vm1 = vcmp.eq.s32.totalorder %v1723_v17, 14 }
  0x7f   : > { %v305_v30 = vmax.f32 %v302_v26, %v1745_v24  ;;  %v381_v31 = vsel %vm380_vm8, %v1714_v14, %v373_v29 }
  0x80   : > { %v389_v33 = vsel %vm388_vm9, %v1726_v18, %v381_v31  ;;  %1016 = vst [vmem:[%s1640_s21 + $0x180] sm:$0xff] %v506_v45 }
  0x81   : > { %v308_v34 = vmax.f32 %v305_v30, %v1757_v28  ;;  %v397_v35 = vsel %vm396_vm10, %v1733_v20, %v389_v33 }
  0x82   : > { %v405_v40 = vsel %vm404_vm11, %v1745_v24, %v397_v35 }
  0x83   : > { %v311_v41 = vmax.f32 %v308_v34, %v1769_v32  ;;  %v413_v42 = vsel %vm412_vm12, %v1757_v28, %v405_v40 }
  0x84   : > { %v421_v44 = vsel %vm2253_vm13, %v1769_v32, %v413_v42  ;;  %vm460_vm13 = vcmp.eq.s32.totalorder %v1723_v17, 15 }
  0x85   : > { %v314_v46 = vmax.f32 %v311_v41, %v1785_v39  ;;  %v429_v47 = vsel %vm2254_vm14, %v1785_v39, %v421_v44  ;;  %vm468_vm14 = vcmp.eq.s32.totalorder %v1723_v17, 16 }
  0x86   : > { %v437_v49 = vsel %vm2255_vm15, %v1797_v43, %v429_v47  ;;  %vm476_vm15 = vcmp.eq.s32.totalorder %v1723_v17, 17 }
  0x87   : > { %v317_v50 = vmax.f32 %v314_v46, %v1797_v43  ;;  %v445_v52 = vsel %vm2256_vm0, %v1809_v48, %v437_v49  ;;  %vm484_vm0 = vcmp.eq.s32.totalorder %v1723_v17, 18 }
  0x88   : > { %v453_v54 = vsel %vm452_vm1, %v1818_v51, %v445_v52 }
  0x89   : > { %v320_v55 = vmax.f32 %v317_v50, %v1809_v48  ;;  %v461_v57 = vsel %vm460_vm13, %v1825_v53, %v453_v54 }
  0x8a   : > { %v469_v59 = vsel %vm468_vm14, %v1833_v56, %v461_v57 }
  0x8b   : > { %v323_v60 = vmax.f32 %v320_v55, %v1818_v51  ;;  %v477_v62 = vsel %vm476_vm15, %v1840_v58, %v469_v59 }
  0x8c   : > { %v1855_v63 = vsel %vm484_vm0, %v1847_v61, %v477_v62 }
  0x8d   : > { %v326_v0 = vmax.f32 %v323_v60, %v1825_v53 }
  0x8f   : > { %v329_v1 = vmax.f32 %v326_v0, %v1833_v56 }
  0x91   : > { %v332_v4 = vmax.f32 %v329_v1, %v1840_v58 }
  0x93   : > { %v1861_v5 = vmax.f32 %v332_v4, %v1847_v61 }
  0x95   : > { %v336_v6 = vsub.f32 %v1694_v2, %v1861_v5  ;;  %v344_v8 = vsub.f32 %v1697_v3, %v1861_v5  ;;  %v352_v10 = vsub.f32 %v1703_v7, %v1861_v5  ;;  %v360_v11 = vsub.f32 %v1706_v9, %v1861_v5 }
  0x96   : > { %v368_v13 = vsub.f32 %v1710_v12, %v1861_v5  ;;  %v376_v23 = vsub.f32 %v1714_v14, %v1861_v5  ;;  %v384_v3 = vsub.f32 %v1726_v18, %v1861_v5  ;;  %v392_v9 = vsub.f32 %v1733_v20, %v1861_v5 }
  0x97   : > { %v337_v16 = vmul.f32 1.442695, %v336_v6  ;;  %v345_v19 = vmul.f32 1.442695, %v344_v8  ;;  %v353_v21 = vmul.f32 1.442695, %v352_v10  ;;  %v400_v25 = vsub.f32 %v1745_v24, %v1861_v5 }
  0x98   : > { %v361_v22 = vmul.f32 1.442695, %v360_v11  ;;  %v369_v2 = vmul.f32 1.442695, %v368_v13  ;;  %v377_v7 = vmul.f32 1.442695, %v376_v23  ;;  %v490_v14 = vsub.f32 %v1855_v63, %v1861_v5 }
  0x99   : > { %1233 = vpow2.f32 %v337_v16  ;;  %v385_v12 = vmul.f32 1.442695, %v384_v3  ;;  %v393_v26 = vmul.f32 1.442695, %v392_v9  ;;  %v408_v27 = vsub.f32 %v1757_v28, %v1861_v5 }
  0x9a   : > { %1235 = vpow2.f32 %v345_v19  ;;  %v343_v18 = vsel %vm340_vm3, 0.8373, %v1463_v36  ;;  %v401_v29 = vmul.f32 1.442695, %v400_v25  ;;  %v416_v20 = vsub.f32 %v1769_v32, %v1861_v5 }
  0x9b   : > { %1237 = vpow2.f32 %v353_v21  ;;  %v351_v24 = vsel %vm348_vm4, 0.918, %v343_v18  ;;  %v409_v30 = vmul.f32 1.442695, %v408_v27  ;;  %v424_v31 = vsub.f32 %v1785_v39, %v1861_v5 }
  0x9c   : > { %1239 = vpow2.f32 %v361_v22  ;;  %v417_v28 = vmul.f32 1.442695, %v416_v20  ;;  %v432_v34 = vsub.f32 %v1797_v43, %v1861_v5  ;;  %v359_v32 = vsel %vm356_vm5, 0.866, %v351_v24 }
  0x9d   : > { %1241 = vpow2.f32 %v369_v2  ;;  %v440_v38 = vsub.f32 %v1809_v48, %v1861_v5  ;;  %v425_v42 = vmul.f32 1.442695, %v424_v31  ;;  %v448_v45 = vsub.f32 %v1818_v51, %v1861_v5 }
  0x9e   : > { %1243 = vpow2.f32 %v377_v7  ;;  %v433_v47 = vmul.f32 1.442695, %v432_v34  ;;  %v367_v50 = vsel %vm364_vm6, 1.0345, %v359_v32  ;;  %v456_v55 = vsub.f32 %v1825_v53, %v1861_v5 }
  0x9f   : > { %1245 = vpow2.f32 %v385_v12  ;;  %v441_v54 = vmul.f32 1.442695, %v440_v38  ;;  %v449_v59 = vmul.f32 1.442695, %v448_v45  ;;  %v464_v62 = vsub.f32 %v1833_v56, %v1861_v5 }
  0xa0   : > { %1247 = vpow2.f32 %v393_v26  ;;  %v375_v1 = vsel %vm372_vm7, 1.0166, %v367_v50  ;;  %v457_v6 = vmul.f32 1.442695, %v456_v55  ;;  %v472_v53 = vsub.f32 %v1840_v58, %v1861_v5 }
  0xa1   : > { %1249 = vpow2.f32 %v401_v29  ;;  %v465_v13 = vmul.f32 1.442695, %v464_v62  ;;  %v480_v56 = vsub.f32 %v1847_v61, %v1861_v5  ;;  %v383_v19 = vsel %vm380_vm8, 0.9969, %v375_v1 }
  0xa2   : > { %1251 = vpow2.f32 %v409_v30  ;;  %v473_v58 = vmul.f32 1.442695, %v472_v53  ;;  %v391_v9 = vsel %vm388_vm9, 0.9754, %v383_v19 }
  0xa3   : > { %1253 = vpow2.f32 %v417_v28  ;;  %v481_v3 = vmul.f32 1.442695, %v480_v56  ;;  %v399_v26 = vsel %vm396_vm10, 1.0489, %v391_v9 }
  0xa4   : > { %1255 = vpow2.f32 %v425_v42  ;;  %v407_v30 = vsel %vm404_vm11, 0.8786, %v399_v26  ;;  %v1029_v26 = vld [vmem:[%s1640_s21 + $0x90] sm:$0xff] }
  0xa5   : > { %1257 = vpow2.f32 %v433_v47  ;;  %v415_v34 = vsel %vm412_vm12, 1.0023, %v407_v30 }
  0xa6   : > { %v1234_v33 = vpop.eup %1233  ;;  %1259 = vpow2.f32 %v441_v54 }
  0xa7   : > { %v1236_v35 = vpop.eup %1235  ;;  %v342_v37 = vsel %vm340_vm3, %v1234_v33, 0.0  ;;  %1261 = vpow2.f32 %v449_v59  ;;  %vm2275_vm3 = vcmp.eq.s32.totalorder %v1723_v17, 10 }
  0xa8   : > { %v1238_v40 = vpop.eup %1237  ;;  %v347_v41 = vadd.f32 %v1236_v35, %v1234_v33  ;;  %v350_v39 = vsel %vm348_vm4, %v1236_v35, %v342_v37  ;;  %1263 = vpow2.f32 %v457_v6  ;;  %vm2276_vm4 = vmmov %vm2275_vm3 }
  0xa9   : > { %v1240_v44 = vpop.eup %1239  ;;  %v358_v43 = vsel %vm356_vm5, %v1238_v40, %v350_v39  ;;  %1265 = vpow2.f32 %v465_v13  ;;  %vm2277_vm5 = vcmp.eq.s32.totalorder %v1723_v17, 11 }
  0xaa   : > { %v355_v46 = vadd.f32 %v1238_v40, %v347_v41  ;;  %v1242_v49 = vpop.eup %1241  ;;  %v366_v48 = vsel %vm364_vm6, %v1240_v44, %v358_v43  ;;  %1267 = vpow2.f32 %v473_v58  ;;  %v423_v41 = vsel %vm2276_vm4, 0.9539, %v415_v34  ;;  %vm2278_vm6 = vmmov %vm2277_vm5  ;;  %v1025_v58 = vld [vmem:[%s1640_s21 + $0x108] sm:$0xff]  ;;  %v1035_v34 = vld [vmem:[%s1640_s21 + $0x98] sm:$0xff] }
  0xab   : > { %v1244_v57 = vpop.eup %1243  ;;  %v374_v51 = vsel %vm372_vm7, %v1242_v49, %v366_v48  ;;  %1269 = vpow2.f32 %v481_v3  ;;  %v431_v43 = vsel %vm2278_vm6, 0.9843, %v423_v41  ;;  %vm2279_vm7 = vcmp.eq.s32.totalorder %v1723_v17, 12 }
  0xac   : > { %v363_v52 = vadd.f32 %v1240_v44, %v355_v46  ;;  %v1246_v0 = vpop.eup %1245  ;;  %v382_v10 = vsel %vm380_vm8, %v1244_v57, %v374_v51  ;;  %vm2280_vm8 = vmmov %vm2279_vm7 }
  0xad   : > { %v1248_v8 = vpop.eup %1247  ;;  %v390_v21 = vsel %vm388_vm9, %v1246_v0, %v382_v10  ;;  %v439_v48 = vsel %vm2280_vm8, 1.1116, %v431_v43  ;;  %vm2281_vm9 = vcmp.eq.s32.totalorder %v1723_v17, 13  ;;  %v1021_v17 = vld [vmem:[%s1640_s21 + $0x8] sm:$0xff]  ;;  %v1043_v43 = vld [vmem:[%s1640_s21 + $0x120] sm:$0xff] }
  0xae   : > { %v371_v60 = vadd.f32 %v1242_v49, %v363_v52  ;;  %v1250_v16 = vpop.eup %1249  ;;  %v398_v61 = vsel %vm396_vm10, %v1248_v8, %v390_v21  ;;  %vm2282_vm10 = vmmov %vm2281_vm9  ;;  %v1017_v21 = vld [vmem:[%s1640_s21 + $0x80] sm:$0xff] }
  0xaf   : > { %v1252_v23 = vpop.eup %1251  ;;  %v406_v27 = vsel %vm404_vm11, %v1250_v16, %v398_v61  ;;  %v447_v54 = vsel %vm2282_vm10, 0.9037, %v439_v48  ;;  %v1045_v48 = vld [vmem:[%s1640_s21 + $0x28] sm:$0xff] }
  0xb0   : > { %v379_v4 = vadd.f32 %v1244_v57, %v371_v60  ;;  %v1254_v7 = vpop.eup %1253  ;;  %v414_v31 = vsel %vm412_vm12, %v1252_v23, %v406_v27  ;;  %v455_v57 = vsel %vm452_vm1, 1.0865, %v447_v54 }
  0xb1   : > { %v1256_v25 = vpop.eup %1255  ;;  %v422_v35 = vsel %vm2275_vm3, %v1254_v7, %v414_v31  ;;  %v463_v60 = vsel %vm460_vm13, 1.0955, %v455_v57  ;;  %v1049_v57 = vld [vmem:[%s1640_s21 + $0x128] sm:$0xff] }
  0xb2   : > { %v387_v11 = vadd.f32 %v1246_v0, %v379_v4  ;;  %v1258_v29 = vpop.eup %1257  ;;  %v430_v39 = vsel %vm2277_vm5, %v1256_v25, %v422_v35  ;;  %v471_v62 = vsel %vm468_vm14, 1.0865, %v463_v60  ;;  %v1037_v35 = vld [vmem:[%s1640_s21 + $0x118] sm:$0xff] }
  0xb3   : > { %v1260_v24 = vpop.eup %1259  ;;  %v438_v45 = vsel %vm2279_vm7, %v1258_v29, %v430_v39  ;;  %v479_v1 = vsel %vm476_vm15, 1.1529, %v471_v62 }
  0xb4   : > { %v395_v22 = vadd.f32 %v1248_v8, %v387_v11  ;;  %v1262_v28 = vpop.eup %1261  ;;  %v446_v50 = vsel %vm2281_vm9, %v1260_v24, %v438_v45  ;;  %v487_v10 = vsel %vm484_vm0, 1.0507, %v479_v1  ;;  %v1053_v1 = vld [vmem:[%s1640_s21 + $0xb0] sm:$0xff] }
  0xb5   : > { %v1264_v32 = vpop.eup %1263  ;;  %v454_v55 = vsel %vm452_vm1, %v1262_v28, %v446_v50  ;;  %v1985_v56 = vsel %vm1716_vm2, %v487_v10, 0.0  ;;  %v1047_v50 = vld [vmem:[%s1640_s21 + $0xa8] sm:$0xff] }
  0xb6   : > { %v403_v2 = vadd.f32 %v1250_v16, %v395_v22  ;;  %v1266_v40 = vpop.eup %1265  ;;  %v462_v59 = vsel %vm460_vm13, %v1264_v32, %v454_v55  ;;  %v518_v16 = vld [vmem:[%s1640_s21] sm:$0xff] }
  0xb7   : > { %v1268_v44 = vpop.eup %1267  ;;  %v470_v51 = vsel %vm468_vm14, %v1266_v40, %v462_v59  ;;  %v1019_v22 = vld [vmem:[%s1640_s21 + $0x100] sm:$0xff] }
  0xb8   : > { %v411_v12 = vadd.f32 %v1252_v23, %v403_v2  ;;  %v1270_v47 = vpop.eup %1269  ;;  %v478_v0 = vsel %vm476_vm15, %v1268_v44, %v470_v51  ;;  %v1023_v2 = vld [vmem:[%s1640_s21 + $0x88] sm:$0xff] }
  0xb9   : > { %v486_v4 = vsel %vm484_vm0, %v1270_v47, %v478_v0  ;;  %v1051_v0 = vld [vmem:[%s1640_s21 + $0x30] sm:$0xff] }
  0xba   : > { %v419_v18 = vadd.f32 %v1254_v7, %v411_v12  ;;  %v1027_v7 = vld [vmem:[%s1640_s21 + $0x10] sm:$0xff] }
  0xbc   : > { %v427_v20 = vadd.f32 %v1256_v25, %v419_v18 }
  0xbe   : > { %v435_v33 = vadd.f32 %v1258_v29, %v427_v20 }
  0xc0   : > { %v443_v37 = vadd.f32 %v1260_v24, %v435_v33 }
  0xc2   : > { %v451_v38 = vadd.f32 %v1262_v28, %v443_v37  ;;  %v1033_v28 = vld [vmem:[%s1640_s21 + $0x18] sm:$0xff] }
  0xc4   : > { %v459_v42 = vadd.f32 %v1264_v32, %v451_v38  ;;  %v1039_v38 = vld [vmem:[%s1640_s21 + $0x20] sm:$0xff] }
  0xc6   : > { %v467_v46 = vadd.f32 %v1266_v40, %v459_v42 }
  0xc8   : > { %v475_v49 = vadd.f32 %v1268_v44, %v467_v46  ;;  %v1041_v44 = vld [vmem:[%s1640_s21 + $0xa0] sm:$0xff] }
  0xca   : > { %v483_v52 = vadd.f32 %v1270_v47, %v475_v49 }
  0xcc   : > { %1271 = vlog2.f32 %v483_v52 }
  0xcd   : > { %1273 = vrcp.f32 %v483_v52 }
  0xd9   : > { %v1272_v6 = vpop.eup %1271 }
  0xda   : > { %v1274_v53 = vpop.eup %1273  ;;  %v489_v8 = vmul.f32 0.6931472, %v1272_v6 }
  0xdb   : > { %v493_v11 = vmul.f32 %v1274_v53, %v486_v4  ;;  %v1055_v4 = vld [vmem:[%s1640_s21 + $0x130] sm:$0xff] }
  0xdc   : > { %v491_v13 = vsub.f32 %v489_v8, %v490_v14 }
  0xdd   : > { %v1990_v19 = vsel %vm1716_vm2, %v493_v11, 1.0 }
  0xde   : > { %v496_v23 = vmul.f32 %v491_v13, %v487_v10  ;;  %vm509_vm11 = vcmp.le.f32.partialorder %v1990_v19, 0.7  ;;  %vm530_vm12 = vcmp.le.f32.partialorder %v1990_v19, 0.7214286  ;;  %vm552_vm13 = vcmp.le.f32.partialorder %v1990_v19, 0.74285716 }
  0xdf   : > { %v510_v63 = vsel %vm509_vm11, 1.0, %v1463_v36  ;;  %v516_v5 = vsel %vm509_vm11, %v1985_v56, 0.0  ;;  %v531_v14 = vsel %vm530_vm12, 1.0, %v1463_v36  ;;  %v537_v3 = vsel %vm530_vm12, %v1985_v56, 0.0 }
  0xe0   : > { %v2007_v9 = vsel %vm1716_vm2, %v496_v23, 0.0  ;;  %v519_v61 = vadd.f32 %v518_v16, %v510_v63  ;;  %v527_v12 = vadd.f32 %v1019_v22, %v516_v5  ;;  %v541_v25 = vadd.f32 %v1021_v17, %v531_v14  ;;  %v1059_v22 = vld [vmem:[%s1640_s21 + $0xb8] sm:$0xff]  ;;  %v1063_v5 = vld [vmem:[%s1640_s21 + $0x40] sm:$0xff] }
  0xe1   : > { %v513_v27 = vsel %vm509_vm11, %v2007_v9, 0.0  ;;  %v534_v18 = vsel %vm530_vm12, %v2007_v9, 0.0  ;;  %v549_v29 = vadd.f32 %v1025_v58, %v537_v3  ;;  %v553_v20 = vsel %vm552_vm13, 1.0, %v1463_v36  ;;  %v1061_v17 = vld [vmem:[%s1640_s21 + $0x138] sm:$0xff]  ;;  %v1065_v14 = vld [vmem:[%s1640_s21 + $0xc0] sm:$0xff] }
  0xe2   : > { %520 = vst [vmem:[%s1640_s21] sm:$0xff] %v519_v61  ;;  %v523_v24 = vadd.f32 %v1017_v21, %v513_v27  ;;  %1020 = vst [vmem:[%s1640_s21 + $0x100] sm:$0xff] %v527_v12  ;;  %v545_v30 = vadd.f32 %v1023_v2, %v534_v18  ;;  %v563_v31 = vadd.f32 %v1027_v7, %v553_v20  ;;  %v556_v33 = vsel %vm552_vm13, %v2007_v9, 0.0  ;;  %v1057_v21 = vld [vmem:[%s1640_s21 + $0x38] sm:$0xff]  ;;  %v1067_v61 = vld [vmem:[%s1640_s21 + $0x140] sm:$0xff] }
  0xe3   : > { %1022 = vst [vmem:[%s1640_s21 + $0x8] sm:$0xff] %v541_v25  ;;  %1026 = vst [vmem:[%s1640_s21 + $0x108] sm:$0xff] %v549_v29  ;;  %v567_v37 = vadd.f32 %v1029_v26, %v556_v33  ;;  %v559_v32 = vsel %vm552_vm13, %v1985_v56, 0.0  ;;  %vm574_vm2 = vcmp.le.f32.partialorder %v1990_v19, 0.76428574  ;;  %v1069_v18 = vld [vmem:[%s1640_s21 + $0x48] sm:$0xff] }
  0xe4   : > { %vm596_vm14 = vcmp.le.f32.partialorder %v1990_v19, 0.78571427  ;;  %1018 = vst [vmem:[%s1640_s21 + $0x80] sm:$0xff] %v523_v24  ;;  %1024 = vst [vmem:[%s1640_s21 + $0x88] sm:$0xff] %v545_v30  ;;  %v571_v40 = vadd.f32 %v1031_v15, %v559_v32  ;;  %v575_v41 = vsel %vm574_vm2, 1.0, %v1463_v36  ;;  %v578_v39 = vsel %vm574_vm2, %v2007_v9, 0.0 }
  0xe5   : > { %1028 = vst [vmem:[%s1640_s21 + $0x10] sm:$0xff] %v563_v31  ;;  %v581_v42 = vsel %vm574_vm2, %v1985_v56, 0.0  ;;  %1030 = vst [vmem:[%s1640_s21 + $0x90] sm:$0xff] %v567_v37  ;;  %v585_v45 = vadd.f32 %v1033_v28, %v575_v41  ;;  %v589_v46 = vadd.f32 %v1035_v34, %v578_v39  ;;  %v597_v49 = vsel %vm596_vm14, 1.0, %v1463_v36  ;;  %v1071_v29 = vld [vmem:[%s1640_s21 + $0xc8] sm:$0xff]  ;;  %v1077_v37 = vld [vmem:[%s1640_s21 + $0xd0] sm:$0xff] }
  0xe6   : > { %v593_v47 = vadd.f32 %v1037_v35, %v581_v42  ;;  %1032 = vst [vmem:[%s1640_s21 + $0x110] sm:$0xff] %v571_v40  ;;  %v607_v52 = vadd.f32 %v1039_v38, %v597_v49  ;;  %v600_v54 = vsel %vm596_vm14, %v2007_v9, 0.0  ;;  %v603_v55 = vsel %vm596_vm14, %v1985_v56, 0.0  ;;  %v1073_v30 = vld [vmem:[%s1640_s21 + $0x148] sm:$0xff]  ;;  %v1075_v35 = vld [vmem:[%s1640_s21 + $0x50] sm:$0xff] }
  0xe7   : > { %vm618_vm15 = vcmp.le.f32.partialorder %v1990_v19, 0.80714285  ;;  %1034 = vst [vmem:[%s1640_s21 + $0x18] sm:$0xff] %v585_v45  ;;  %1036 = vst [vmem:[%s1640_s21 + $0x98] sm:$0xff] %v589_v46  ;;  %v611_v59 = vadd.f32 %v1041_v44, %v600_v54  ;;  %v615_v60 = vadd.f32 %v1043_v43, %v603_v55  ;;  %vm640_vm0 = vcmp.le.f32.partialorder %v1990_v19, 0.82857144 }
  0xe8   : > { %1038 = vst [vmem:[%s1640_s21 + $0x118] sm:$0xff] %v593_v47  ;;  %v619_v51 = vsel %vm618_vm15, 1.0, %v1463_v36  ;;  %v622_v62 = vsel %vm618_vm15, %v2007_v9, 0.0  ;;  %1040 = vst [vmem:[%s1640_s21 + $0x20] sm:$0xff] %v607_v52  ;;  %v625_v8 = vsel %vm618_vm15, %v1985_v56, 0.0  ;;  %v641_v11 = vsel %vm640_vm0, 1.0, %v1463_v36 }
  0xe9   : > { %v629_v6 = vadd.f32 %v1045_v48, %v619_v51  ;;  %v633_v53 = vadd.f32 %v1047_v50, %v622_v62  ;;  %1042 = vst [vmem:[%s1640_s21 + $0xa0] sm:$0xff] %v611_v59  ;;  %1044 = vst [vmem:[%s1640_s21 + $0x120] sm:$0xff] %v615_v60  ;;  %v637_v10 = vadd.f32 %v1049_v57, %v625_v8  ;;  %v644_v13 = vsel %vm640_vm0, %v2007_v9, 0.0  ;;  %v1079_v32 = vld [vmem:[%s1640_s21 + $0x150] sm:$0xff]  ;;  %v1081_v45 = vld [vmem:[%s1640_s21 + $0x58] sm:$0xff] }
  0xea   : > { %v647_v16 = vsel %vm640_vm0, %v1985_v56, 0.0  ;;  %v651_v58 = vadd.f32 %v1051_v0, %v641_v11  ;;  %v655_v23 = vadd.f32 %v1053_v1, %v644_v13  ;;  %vm662_vm1 = vcmp.le.f32.partialorder %v1990_v19, 0.85  ;;  %v1083_v46 = vld [vmem:[%s1640_s21 + $0xd8] sm:$0xff]  ;;  %v1087_v52 = vld [vmem:[%s1640_s21 + $0x60] sm:$0xff]  ;;  %v1097_v11 = vld [vmem:[%s1640_s21 + $0x168] sm:$0xff] }
  0xeb   : > { %1046 = vst [vmem:[%s1640_s21 + $0x28] sm:$0xff] %v629_v6  ;;  %1048 = vst [vmem:[%s1640_s21 + $0xa8] sm:$0xff] %v633_v53  ;;  %v659_v63 = vadd.f32 %v1055_v4, %v647_v16  ;;  %v663_v2 = vsel %vm662_vm1, 1.0, %v1463_v36  ;;  %v666_v3 = vsel %vm662_vm1, %v2007_v9, 0.0  ;;  %v669_v7 = vsel %vm662_vm1, %v1985_v56, 0.0  ;;  %v1085_v47 = vld [vmem:[%s1640_s21 + $0x158] sm:$0xff] }
  0xec   : > { %1050 = vst [vmem:[%s1640_s21 + $0x128] sm:$0xff] %v637_v10  ;;  %vm684_vm3 = vcmp.le.f32.partialorder %v1990_v19, 0.87142855  ;;  %1052 = vst [vmem:[%s1640_s21 + $0x30] sm:$0xff] %v651_v58  ;;  %v673_v12 = vadd.f32 %v1057_v21, %v663_v2  ;;  %v677_v25 = vadd.f32 %v1059_v22, %v666_v3  ;;  %v681_v26 = vadd.f32 %v1061_v17, %v669_v7  ;;  %v1089_v54 = vld [vmem:[%s1640_s21 + $0xe0] sm:$0xff]  ;;  %v1093_v4 = vld [vmem:[%s1640_s21 + $0x68] sm:$0xff] }
  0xed   : > { %1054 = vst [vmem:[%s1640_s21 + $0xb0] sm:$0xff] %v655_v23  ;;  %1056 = vst [vmem:[%s1640_s21 + $0x130] sm:$0xff] %v659_v63  ;;  %v685_v27 = vsel %vm684_vm3, 1.0, %v1463_v36  ;;  %v688_v15 = vsel %vm684_vm3, %v2007_v9, 0.0  ;;  %v691_v24 = vsel %vm684_vm3, %v1985_v56, 0.0  ;;  %v1091_v60 = vld [vmem:[%s1640_s21 + $0x160] sm:$0xff] }
  0xee   : > { %v695_v20 = vadd.f32 %v1063_v5, %v685_v27  ;;  %vm706_vm4 = vcmp.le.f32.partialorder %v1990_v19, 0.89285713  ;;  %1058 = vst [vmem:[%s1640_s21 + $0x38] sm:$0xff] %v673_v12  ;;  %1060 = vst [vmem:[%s1640_s21 + $0xb8] sm:$0xff] %v677_v25  ;;  %v699_v31 = vadd.f32 %v1065_v14, %v688_v15  ;;  %v703_v33 = vadd.f32 %v1067_v61, %v691_v24  ;;  %v1095_v6 = vld [vmem:[%s1640_s21 + $0xe8] sm:$0xff]  ;;  %v1099_v17 = vld [vmem:[%s1640_s21 + $0x70] sm:$0xff] }
  0xef   : > { %1062 = vst [vmem:[%s1640_s21 + $0x138] sm:$0xff] %v681_v26  ;;  %v707_v28 = vsel %vm706_vm4, 1.0, %v1463_v36  ;;  %v710_v34 = vsel %vm706_vm4, %v2007_v9, 0.0  ;;  %v713_v41 = vsel %vm706_vm4, %v1985_v56, 0.0  ;;  %vm728_vm5 = vcmp.le.f32.partialorder %v1990_v19, 0.9142857 }
  0xf0   : > { %1064 = vst [vmem:[%s1640_s21 + $0x40] sm:$0xff] %v695_v20  ;;  %v717_v38 = vadd.f32 %v1069_v18, %v707_v28  ;;  %v721_v40 = vadd.f32 %v1071_v29, %v710_v34  ;;  %1066 = vst [vmem:[%s1640_s21 + $0xc0] sm:$0xff] %v699_v31  ;;  %v725_v39 = vadd.f32 %v1073_v30, %v713_v41  ;;  %v729_v42 = vsel %vm728_vm5, 1.0, %v1463_v36  ;;  %v1101_v58 = vld [vmem:[%s1640_s21 + $0xf0] sm:$0xff]  ;;  %v1105_v12 = vld [vmem:[%s1640_s21 + $0x78] sm:$0xff] }
  0xf1   : > { %1068 = vst [vmem:[%s1640_s21 + $0x140] sm:$0xff] %v703_v33  ;;  %v732_v44 = vsel %vm728_vm5, %v2007_v9, 0.0  ;;  %v735_v43 = vsel %vm728_vm5, %v1985_v56, 0.0  ;;  %v739_v49 = vadd.f32 %v1075_v35, %v729_v42  ;;  %vm750_vm6 = vcmp.le.f32.partialorder %v1990_v19, 0.9357143  ;;  %v1103_v23 = vld [vmem:[%s1640_s21 + $0x170] sm:$0xff] }
  0xf2   : > { %1070 = vst [vmem:[%s1640_s21 + $0x48] sm:$0xff] %v717_v38  ;;  %1072 = vst [vmem:[%s1640_s21 + $0xc8] sm:$0xff] %v721_v40  ;;  %v743_v48 = vadd.f32 %v1077_v37, %v732_v44  ;;  %v747_v50 = vadd.f32 %v1079_v32, %v735_v43  ;;  %v751_v55 = vsel %vm750_vm6, 1.0, %v1463_v36  ;;  %v754_v57 = vsel %vm750_vm6, %v2007_v9, 0.0  ;;  %v1107_v25 = vld [vmem:[%s1640_s21 + $0xf8] sm:$0xff] }
  0xf3   : > { %1074 = vst [vmem:[%s1640_s21 + $0x148] sm:$0xff] %v725_v39  ;;  %v757_v59 = vsel %vm750_vm6, %v1985_v56, 0.0  ;;  %vm772_vm7 = vcmp.le.f32.partialorder %v1990_v19, 0.95714283  ;;  %1076 = vst [vmem:[%s1640_s21 + $0x50] sm:$0xff] %v739_v49  ;;  %v761_v51 = vadd.f32 %v1081_v45, %v751_v55  ;;  %v765_v62 = vadd.f32 %v1083_v46, %v754_v57  ;;  %v1109_v26 = vld [vmem:[%s1640_s21 + $0x178] sm:$0xff] }
  0xf4   : > { %1078 = vst [vmem:[%s1640_s21 + $0xd0] sm:$0xff] %v743_v48  ;;  %1080 = vst [vmem:[%s1640_s21 + $0x150] sm:$0xff] %v747_v50  ;;  %v769_v0 = vadd.f32 %v1085_v47, %v757_v59  ;;  %v773_v1 = vsel %vm772_vm7, 1.0, %v1463_v36  ;;  %v776_v8 = vsel %vm772_vm7, %v2007_v9, 0.0  ;;  %v779_v10 = vsel %vm772_vm7, %v1985_v56, 0.0 }
  0xf5   : > { %v783_v53 = vadd.f32 %v1087_v52, %v773_v1  ;;  %vm794_vm8 = vcmp.le.f32.partialorder %v1990_v19, 0.9785714  ;;  %1082 = vst [vmem:[%s1640_s21 + $0x58] sm:$0xff] %v761_v51  ;;  %1084 = vst [vmem:[%s1640_s21 + $0xd8] sm:$0xff] %v765_v62  ;;  %v787_v13 = vadd.f32 %v1089_v54, %v776_v8  ;;  %v791_v16 = vadd.f32 %v1091_v60, %v779_v10 }
  0xf6   : > { %1086 = vst [vmem:[%s1640_s21 + $0x158] sm:$0xff] %v769_v0  ;;  %v795_v21 = vsel %vm794_vm8, 1.0, %v1463_v36  ;;  %v798_v22 = vsel %vm794_vm8, %v2007_v9, 0.0  ;;  %v801_v14 = vsel %vm794_vm8, %v1985_v56, 0.0  ;;  %vm816_vm9 = vcmp.le.f32.partialorder %v1990_v19, 1.0 }
  0xf7   : > { %1088 = vst [vmem:[%s1640_s21 + $0x60] sm:$0xff] %v783_v53  ;;  %v805_v63 = vadd.f32 %v1093_v4, %v795_v21  ;;  %v809_v5 = vadd.f32 %v1095_v6, %v798_v22  ;;  %1090 = vst [vmem:[%s1640_s21 + $0xe0] sm:$0xff] %v787_v13  ;;  %v813_v2 = vadd.f32 %v1097_v11, %v801_v14  ;;  %v817_v3 = vsel %vm816_vm9, 1.0, %v1463_v36 }
  0xf8   : > { %1092 = vst [vmem:[%s1640_s21 + $0x160] sm:$0xff] %v791_v16  ;;  %v820_v7 = vsel %vm816_vm9, %v2007_v9, 0.0  ;;  %v823_v61 = vsel %vm816_vm9, %v1985_v56, 0.0  ;;  %v827_v27 = vadd.f32 %v1099_v17, %v817_v3  ;;  %vm838_vm10 = vcmp.le.f32.partialorder %v1990_v19, 2.0 }
  0xf9   : > { %1094 = vst [vmem:[%s1640_s21 + $0x68] sm:$0xff] %v805_v63  ;;  %1096 = vst [vmem:[%s1640_s21 + $0xe8] sm:$0xff] %v809_v5  ;;  %v831_v18 = vadd.f32 %v1101_v58, %v820_v7  ;;  %v835_v29 = vadd.f32 %v1103_v23, %v823_v61  ;;  %v839_v20 = vsel %vm838_vm10, 1.0, %v1463_v36  ;;  %v842_v15 = vsel %vm838_vm10, %v2007_v9, 0.0 }
  0xfa   : > { %1098 = vst [vmem:[%s1640_s21 + $0x168] sm:$0xff] %v813_v2  ;;  %v845_v24 = vsel %vm838_vm10, %v1985_v56, 0.0  ;;  %1100 = vst [vmem:[%s1640_s21 + $0x70] sm:$0xff] %v827_v27  ;;  %v849_v19 = vadd.f32 %v1105_v12, %v839_v20  ;;  %v853_v36 = vadd.f32 %v1107_v25, %v842_v15 }
  0xfb   : > { %1102 = vst [vmem:[%s1640_s21 + $0xf0] sm:$0xff] %v831_v18  ;;  %1104 = vst [vmem:[%s1640_s21 + $0x170] sm:$0xff] %v835_v29  ;;  %v857_v30 = vadd.f32 %v1109_v26, %v845_v24 }
  0xfc   : > { %1106 = vst [vmem:[%s1640_s21 + $0x78] sm:$0xff] %v849_v19  ;;  %1108 = vst [vmem:[%s1640_s21 + $0xf8] sm:$0xff] %v853_v36 }
  0xfd   : > { %1110 = vst [vmem:[%s1640_s21 + $0x178] sm:$0xff] %v857_v30 }
  0xfe   : > { %1344 = shalt.err (!%p1341_p9)
}
  0xff   : > { %s1345_s23 = scalar_lea.hbm %s2172_s27, 6272  ;;  %s1349_s4 = scalar_lea.hbm %s2246_s2, 12544 }
 0x100   : > { %p1346_p10 = scmp.ne.s32.totalorder %s2172_s27, %s1345_s23  ;;  %p1350_p0 = scmp.lt.s32.totalorder %s2172_s27, %s2246_s2 }
 0x101   : > { %p1351_p4 = scmp.lt.s32.totalorder %s1349_s4, %s1345_s23 }
 0x102   : > { %p1347_p11 = pnand %p1346_p10, %p1564_p12 }
 0x103   : > { %p1352_p7 = por %p1351_p4, %p1350_p0 }
 0x104   : > { %p1348_p13 = pneg %p1347_p11 }
 0x106   : > { %p1353_p5 = pnand %p1352_p7, %p1348_p13 }
 0x108   : > { %1356 = shalt.err (!%p1353_p5)
}
 0x109   : > { %s1465_s9 = smov 128   ;;  %s1466_s24 = smov 8  }
 0x10a   : > { %1123 = dma.vmem_to_hbm [thread:$0]  (%p1564_p12), %s2174_s14, 6272, %s2172_s27, %s2184_s29, %s1465_s9, %s1465_s9, %s1466_s24  }
 0x10b PF: > { %s2283_s20 = sld [smem:[#allocation14_spill]]  ;;  %p1137_p1 = scmp.ge.s32.totalorder %s1455_s19, 2 }
 0x10d   : > { %p1133_p6 = pnand %p1137_p1, %p1577_p2 }
 0x10f   : > { %p1134_p3 = pneg %p1133_p6 }
 0x111   : > { %s888_s6 = sand.u32 1, %s2283_s20  }
 0x112   : > { %s889_s21 = scalar_lea.sflag [#allocation7], %s888_s6 }
 0x113   : > { %1410 = dma.done.wait (%p1134_p3), %s889_s21, 6272  }
 0x114   : > { %1412 = vsyncadd (%p1134_p3), %s889_s21, 4294961024  ;;  %s21_s19 = sadd.s32 1, %s1455_s19   ;;  %s2285_s28 = sld [smem:[#allocation15_spill]] }
 0x115   : > { %p18_p8 = scmp.ge.s32.totalorder %s21_s19, 6   ;;  %s2286_s11 = sld [smem:[#allocation19_spill]] }
 0x116   : > { %s2287_s3 = sld [smem:[#allocation16_spill]]  ;;  %s2291_s9 = smov %s1419_s10 }
 0x117   : > { %s2288_s14 = sld [smem:[#allocation20_spill]]  ;;  %s2293_s12 = smov %s1431_s13 }
 0x118   : > { %s2289_s5 = sld [smem:[#allocation17_spill]]  ;;  %s2295_s15 = smov %s1447_s17 }
 0x119   : > { %s2290_s27 = sld [smem:[#allocation18_spill]]  ;;  %s2296_s16 = smov %s1451_s18 }
 0x11a   : > { %s2292_s10 = smov %s2285_s28 }
 0x11b   :  { %20 = sbr.rel (!%p18_p8) target bundleno = 13 (0xd), region = 156 }
 0x11c   : > { %s2294_s13 = smov %s2287_s3 }
 0x11e   : > { %s2297_s17 = smov %s2289_s5 }
 0x11f   : > { %s2298_s18 = smov %s2290_s27 }
 0x120   :  { %894 = vsyncpa [#allocation6], 1 }
 0x121   :  { %896 = vsyncpa [#allocation6 + $0x1], 1 }
 0x122   :  { %897 = vsyncpa [#allocation9], 1 }
 0x123   :  { %899 = vsyncpa [#allocation9 + $0x1], 1 }
 0x124   :  { %900 = vsyncpa [#allocation7], 1 }
 0x125   :  { %902 = vsyncpa [#allocation7 + $0x1], 1 }

</bundles_post_ra>
